<compile_context>
chip_gen: v6e
topology: v6e:2x2x1
jax: 0.10.0
libtpu: 0.0.40
codegen_flags: <defaults>
</compile_context>

<pallas_src>
import numpy as np
import jax
import jax.numpy as jnp
from jax.experimental import pallas as pl
from jax.experimental.pallas import tpu as pltpu

# ----------------------------- static config ------------------------------
B = 2            # batch
TS_DIM = 3       # time-series dim
EVENT_DIM = 2    # event dim
TF_DIM = 2       # time-feature dim
H_DIM = 16       # hidden dim
Z_DIM = 8        # latent dim
T_PAST = 8       # past time-series length
T_EVENT = 6      # past event length
HORIZON = 4      # forecast horizon
T_ALL = T_PAST + HORIZON
DEC_BOUND = 0.1
LOG_SQRT_2PI = 0.9189385332046727

H = H_DIM

# name -> ((rows, cols), fan_in); weights stored (in_features, out_features)
PARAM_SPECS = {
    # phi_ts : Linear(ts,h) -> ReLU -> Linear(h,h)
    "pts_w1": ((TS_DIM, H), TS_DIM), "pts_b1": ((1, H), TS_DIM),
    "pts_w2": ((H, H), H),           "pts_b2": ((1, H), H),
    # phi_tf : Linear(tf,h) -> ReLU -> Linear(h,h)
    "ptf_w1": ((TF_DIM, H), TF_DIM), "ptf_b1": ((1, H), TF_DIM),
    "ptf_w2": ((H, H), H),           "ptf_b2": ((1, H), H),
    # ts_encoder GRU(2h -> h)  (gate order r,z,n; weights transposed)
    "tse_wih": ((2 * H, 3 * H), H),  "tse_whh": ((H, 3 * H), H),
    "tse_bih": ((1, 3 * H), H),      "tse_bhh": ((1, 3 * H), H),
    # event encoder: phi_x Linear(event,h) + GRU(h -> h)
    "ev_w": ((EVENT_DIM, H), EVENT_DIM), "ev_b": ((1, H), EVENT_DIM),
    "eve_wih": ((H, 3 * H), H),      "eve_whh": ((H, 3 * H), H),
    "eve_bih": ((1, 3 * H), H),      "eve_bhh": ((1, 3 * H), H),
    # ts_decoder GRUCell(2h -> 2h)
    "dcell_wih": ((2 * H, 6 * H), 2 * H), "dcell_whh": ((2 * H, 6 * H), 2 * H),
    "dcell_bih": ((1, 6 * H), 2 * H),     "dcell_bhh": ((1, 6 * H), 2 * H),
    # dec_mean : Linear(2h,h) -> ReLU -> Linear(h,ts)
    "dm_w1": ((2 * H, H), 2 * H),    "dm_b1": ((1, H), 2 * H),
    "dm_w2": ((H, TS_DIM), H),       "dm_b2": ((1, TS_DIM), H),
    # dec_std : Linear(2h,ts) -> Softplus
    "ds_w": ((2 * H, TS_DIM), 2 * H), "ds_b": ((1, TS_DIM), 2 * H),
    # prior encoder
    "pr_wm": ((2 * H, Z_DIM), 2 * H), "pr_bm": ((1, Z_DIM), 2 * H),
    "pr_ws": ((2 * H, Z_DIM), 2 * H), "pr_bs": ((1, Z_DIM), 2 * H),
    # posterior encoder
    "po_wm": ((2 * H, Z_DIM), 2 * H), "po_bm": ((1, Z_DIM), 2 * H),
    "po_ws": ((2 * H, Z_DIM), 2 * H), "po_bs": ((1, Z_DIM), 2 * H),
    # hidden decoder Linear(z,h)
    "hd_w": ((Z_DIM, H), Z_DIM),     "hd_b": ((1, H), Z_DIM),
    # phi_dec Linear(3h,2h)
    "pd_w": ((3 * H, 2 * H), 3 * H), "pd_b": ((1, 2 * H), 3 * H),
}
PARAM_NAMES = list(PARAM_SPECS)
PARAM_INDEX = {n: i for i, n in enumerate(PARAM_NAMES)}
N_PARAMS = len(PARAM_NAMES)
SLAB_R = 48     # max rows over all params (pd_w)
SLAB_C = 96     # max cols over all params (6*H)


# --------------------- packed data-buffer layout (time-major) ---------------
def _align8(x):
    return (x + 7) // 8 * 8


N_TS = T_ALL * B          # phi_ts input rows: [ts_past ; ts_trg]
N_TF = T_ALL * B          # phi_tf input rows: [ts_tf_past ; tf_future]
N_EV = T_EVENT * B        # event rows
N_ED = HORIZON * B        # decoder-sample noise rows
ROW_TS = 0
ROW_TF = _align8(ROW_TS + N_TS)
ROW_EV = _align8(ROW_TF + N_TF)
ROW_ED = _align8(ROW_EV + N_EV)
ROW_EZ = _align8(ROW_ED + N_ED)
DATA_ROWS = _align8(ROW_EZ + B)
DATA_COLS = 8             # >= max(TS_DIM, TF_DIM, EVENT_DIM, Z_DIM)


# ------------------------------ small helpers ------------------------------
def _sigmoid(x):
    # exact sigmoid via tanh: single EUP op, numerically stable for large |x|.
    return 0.5 * jnp.tanh(0.5 * x) + 0.5


def _softplus(x):
    # stable softplus (matches F.softplus behaviour: no overflow for large x).
    return jnp.maximum(x, 0.0) + jnp.log(1.0 + jnp.exp(-jnp.abs(x)))


def _relu(x):
    return jnp.maximum(x, 0.0)


def _linear(x, w, b):
    return jnp.dot(x, w, preferred_element_type=jnp.float32) + b


def _sum_all(x):  # (R, C) -> (1, 1), no rank-0 intermediates
    return jnp.sum(jnp.sum(x, axis=1, keepdims=True), axis=0, keepdims=True)


# ------------------------------- the kernel --------------------------------
def vsmhn_kernel(data_ref, params_ref, ll_ref, kl_ref):
    def P(name):
        i = PARAM_INDEX[name]
        (r, c), _ = PARAM_SPECS[name]
        return params_ref[i, :r, :c]

    # ---- packed data (time-major 2-D slabs) --------------------------------
    ts_all = data_ref[ROW_TS:ROW_TS + N_TS, :TS_DIM]       # (24, 3) past+target
    tf_all = data_ref[ROW_TF:ROW_TF + N_TF, :TF_DIM]       # (24, 2) past+future
    ev_all = data_ref[ROW_EV:ROW_EV + N_EV, :EVENT_DIM]    # (12, 2)
    eps_dec = data_ref[ROW_ED:ROW_ED + N_ED, :TS_DIM]      # (8, 3)
    eps_z = data_ref[ROW_EZ:ROW_EZ + B, :Z_DIM]            # (2, 8)

    # ---- hoisted loop-invariant parameters ----------------------------------
    pts_w1, pts_b1, pts_w2, pts_b2 = P("pts_w1"), P("pts_b1"), P("pts_w2"), P("pts_b2")
    ptf_w1, ptf_b1, ptf_w2, ptf_b2 = P("ptf_w1"), P("ptf_b1"), P("ptf_w2"), P("ptf_b2")
    tse_wih, tse_whh, tse_bih, tse_bhh = P("tse_wih"), P("tse_whh"), P("tse_bih"), P("tse_bhh")
    ev_w, ev_b = P("ev_w"), P("ev_b")
    eve_wih, eve_whh, eve_bih, eve_bhh = P("eve_wih"), P("eve_whh"), P("eve_bih"), P("eve_bhh")
    dcell_wih, dcell_whh = P("dcell_wih"), P("dcell_whh")
    dcell_bih, dcell_bhh = P("dcell_bih"), P("dcell_bhh")
    dm_w1, dm_b1, dm_w2, dm_b2 = P("dm_w1"), P("dm_b1"), P("dm_w2"), P("dm_b2")
    ds_w, ds_b = P("ds_w"), P("ds_b")

    def phi_ts(x):
        return _linear(_relu(_linear(x, pts_w1, pts_b1)), pts_w2, pts_b2)

    def phi_tf(x):
        return _linear(_relu(_linear(x, ptf_w1, ptf_b1)), ptf_w2, ptf_b2)

    def gru_step(x, hprev, wih, whh, bih, bhh, hd):
        # PyTorch GRU / GRUCell equations, gate order (r, z, n), gates fused:
        # one full-width matmul per operand, then slice gates out of the result.
        gi = jnp.dot(x, wih, preferred_element_type=jnp.float32) + bih       # (B, 3hd)
        gh = jnp.dot(hprev, whh, preferred_element_type=jnp.float32) + bhh   # (B, 3hd)
        rz = _sigmoid(gi[:, :2 * hd] + gh[:, :2 * hd])
        r = rz[:, :hd]
        z = rz[:, hd:]
        n = jnp.tanh(gi[:, 2 * hd:] + r * gh[:, 2 * hd:])
        return (1.0 - z) * n + z * hprev

    # ---- batched feature projections (off the serial GRU chain) ------------
    ts_h = phi_ts(ts_all)                   # (24, 16)
    tf_h = phi_tf(tf_all)                   # (24, 16)  reused by encoder & decoder
    ev_h = _linear(ev_all, ev_w, ev_b)      # (12, 16)
    joint_enc = jnp.concatenate([ts_h, tf_h], axis=-1)    # (24, 32)

    # ---- ts_encoder: past, then continue over target (zero init) -----------
    h_ts = jnp.zeros((B, H), jnp.float32)
    for t in range(T_PAST):
        h_ts = gru_step(joint_enc[t * B:(t + 1) * B, :], h_ts,
                        tse_wih, tse_whh, tse_bih, tse_bhh, H)
    ts_hidden = h_ts
    for t in range(T_PAST, T_ALL):
        h_ts = gru_step(joint_enc[t * B:(t + 1) * B, :], h_ts,
                        tse_wih, tse_whh, tse_bih, tse_bhh, H)
    ts_hidden_tau = h_ts

    # ---- event encoder ------------------------------------------------------
    h_ev = jnp.zeros((B, H), jnp.float32)
    for t in range(T_EVENT):
        h_ev = gru_step(ev_h[t * B:(t + 1) * B, :], h_ev,
                        eve_wih, eve_whh, eve_bih, eve_bhh, H)
    event_hidden = h_ev

    joint_hidden = jnp.concatenate([ts_hidden, event_hidden], axis=-1)        # (B, 32)
    joint_hidden_tau = jnp.concatenate([ts_hidden_tau, event_hidden], axis=-1)

    # ---- prior / posterior ---------------------------------------------------
    pz_mu = _linear(joint_hidden, P("pr_wm"), P("pr_bm"))
    pz_std = _softplus(_linear(joint_hidden, P("pr_ws"), P("pr_bs")))
    qz_mu = _linear(joint_hidden_tau, P("po_wm"), P("po_bm"))
    qz_std = _softplus(_linear(joint_hidden_tau, P("po_ws"), P("po_bs")))

    # KL( q || p ) for diagonal Normals, per element
    kl = (jnp.log(pz_std) - jnp.log(qz_std)
          + (qz_std * qz_std + (qz_mu - pz_mu) ** 2) / (2.0 * pz_std * pz_std)
          - 0.5)

    # ---- latent sample + decoder init ---------------------------------------
    z_lat = qz_mu + qz_std * eps_z                                   # rsample
    z_dec = _linear(z_lat, P("hd_w"), P("hd_b"))
    hdec = _linear(jnp.concatenate([joint_hidden, z_dec], axis=-1),
                   P("pd_w"), P("pd_b"))

    # ---- autoregressive decoder ---------------------------------------------
    ll_acc = jnp.zeros((B, TS_DIM), jnp.float32)
    x_h = ts_h[(T_PAST - 1) * B:T_PAST * B, :]     # phi_ts(ts_past[:, -1]) precomputed
    for t in range(HORIZON):
        tf_h_t = tf_h[(T_PAST + t) * B:(T_PAST + t + 1) * B, :]   # reuse batched phi_tf
        joint = jnp.concatenate([x_h, tf_h_t], axis=-1)
        hdec = gru_step(joint, hdec,
                        dcell_wih, dcell_whh, dcell_bih, dcell_bhh, 2 * H)
        x_mu = _linear(_relu(_linear(hdec, dm_w1, dm_b1)), dm_w2, dm_b2)
        x_std = _softplus(_linear(hdec, ds_w, ds_b)) + DEC_BOUND
        trg_t = ts_all[(T_PAST + t) * B:(T_PAST + t + 1) * B, :]
        dev = (trg_t - x_mu) * pl.reciprocal(x_std, approx=True)
        ll_acc = ll_acc + (-0.5 * dev * dev - jnp.log(x_std) - LOG_SQRT_2PI)
        if t + 1 < HORIZON:   # last sample is never consumed in the reference
            ts_t = x_mu + x_std * eps_dec[t * B:(t + 1) * B, :]     # sample
            x_h = phi_ts(ts_t)

    # ---- in-kernel final reductions (scalar outputs) -------------------------
    # torch.mean(torch.sum(likelihoods, (-1, -2)))  ==  total_sum / B
    ll_ref[...] = _sum_all(ll_acc) * (1.0 / B)
    kl_ref[...] = _sum_all(kl) * (1.0 / (B * Z_DIM))


# ------------------------------ JAX wrapper ---------------------------------
@jax.jit
def vsmhn_forward(packed_params, ts_past, event_past, ts_tf_past, ts_trg,
                  tf_future, key):
    """packed_params: (N_PARAMS, 48, 96) f32, produced once by pack_params()."""
    k1, k2 = jax.random.split(key)
    eps_z = jax.random.normal(k1, (B, Z_DIM), jnp.float32)
    eps_dec = jax.random.normal(k2, (HORIZON * B, TS_DIM), jnp.float32)

    # One time-major staging buffer: folds the batch->time reordering and all
    # sequence/noise tensors into a single HBM->VMEM transfer (2 input DMAs
    # total for the whole kernel, incl. the packed parameters).
    ts_cat = jnp.concatenate([ts_past, ts_trg], axis=1)          # (B, 12, 3)
    tf_cat = jnp.concatenate([ts_tf_past, tf_future], axis=1)    # (B, 12, 2)
    ts_tm = jnp.transpose(ts_cat, (1, 0, 2)).reshape(N_TS, TS_DIM)
    tf_tm = jnp.transpose(tf_cat, (1, 0, 2)).reshape(N_TF, TF_DIM)
    ev_tm = jnp.transpose(event_past, (1, 0, 2)).reshape(N_EV, EVENT_DIM)

    data = jnp.zeros((DATA_ROWS, DATA_COLS), jnp.float32)
    data = data.at[ROW_TS:ROW_TS + N_TS, :TS_DIM].set(ts_tm.astype(jnp.float32))
    data = data.at[ROW_TF:ROW_TF + N_TF, :TF_DIM].set(tf_tm.astype(jnp.float32))
    data = data.at[ROW_EV:ROW_EV + N_EV, :EVENT_DIM].set(ev_tm.astype(jnp.float32))
    data = data.at[ROW_ED:ROW_ED + N_ED, :TS_DIM].set(eps_dec)
    data = data.at[ROW_EZ:ROW_EZ + B, :Z_DIM].set(eps_z)

    vmem = pl.BlockSpec(memory_space=pltpu.MemorySpace.VMEM)
    ll, kl = pl.pallas_call(
        vsmhn_kernel,
        out_shape=(jax.ShapeDtypeStruct((1, 1), jnp.float32),
                   jax.ShapeDtypeStruct((1, 1), jnp.float32)),
        in_specs=[vmem, vmem],
        out_specs=(vmem, vmem),
        # No grid: single invocation, everything resident in VMEM (no pipelining
        # machinery / double-buffering).  Working set << VMEM on v5e/v6e/v7x.
    )(data, packed_params)
    return ll[0, 0], kl[0, 0]


# --------------------------- parameter creation ------------------------------
def init_params():
    keys = jax.random.split(jax.random.PRNGKey(42), N_PARAMS)
    params = {}
    for name, k in zip(PARAM_NAMES, keys):
        (r, c), fan_in = PARAM_SPECS[name]
        bound = 1.0 / (fan_in ** 0.5)
        params[name] = jax.random.uniform(k, (r, c), jnp.float32, -bound, bound)
    return params


def pack_params(params):
    """Pack all 40 weight/bias tensors into one contiguous (N,48,96) f32 buffer.

    Done ONCE outside jit; the kernel slices each parameter out with static
    indices, so the pallas_call sees a single parameter DMA instead of ~40.
    """
    buf = np.zeros((N_PARAMS, SLAB_R, SLAB_C), np.float32)
    for name in PARAM_NAMES:
        i = PARAM_INDEX[name]
        (r, c), _ = PARAM_SPECS[name]
        buf[i, :r, :c] = np.asarray(params[name], np.float32)
    return jnp.asarray(buf)


# ----------------------------------- main ------------------------------------
if __name__ == "__main__":
    key = jax.random.PRNGKey(0)
    k1, k2, k3, k4, k5, k6 = jax.random.split(key, 6)
    ts_past = jax.random.normal(k1, (B, T_PAST, TS_DIM), jnp.float32)
    event_past = jax.random.normal(k2, (B, T_EVENT, EVENT_DIM), jnp.float32)
    ts_tf_past = jax.random.normal(k3, (B, T_PAST, TF_DIM), jnp.float32)
    ts_trg = jax.random.normal(k4, (B, HORIZON, TS_DIM), jnp.float32)
    tf_future = jax.random.normal(k5, (B, HORIZON, TF_DIM), jnp.float32)

    params = init_params()
    packed = pack_params(params)   # one-time packing, outside jit

    loglike, kl_mean = vsmhn_forward(packed, ts_past, event_past, ts_tf_past,
                                     ts_trg, tf_future, k6)
    jax.block_until_ready((loglike, kl_mean))
    print("KERNEL_OK")
</pallas_src>

<mosaic_0001>
module attributes {stable_mosaic.version = 11 : i64} {
  func.func @vsmhn_kernel(%arg0: memref<80x8xf32, #tpu.memory_space<vmem>>, %arg1: memref<40x48x96xf32, #tpu.memory_space<vmem>>, %arg2: memref<1x1xf32, #tpu.memory_space<vmem>>, %arg3: memref<1x1xf32, #tpu.memory_space<vmem>>) attributes {dimension_semantics = [], scalar_prefetch = 0 : i64, scratch_operands = 0 : i64, tpu.core_type = #tpu.core_type<tc>} {
    %c0 = arith.constant 0 : index
    %c0_0 = arith.constant 0 : index
    %0 = vector.load %arg0[%c0, %c0_0] : memref<80x8xf32, #tpu.memory_space<vmem>>, vector<24x3xf32>
    %c24 = arith.constant 24 : index
    %c0_1 = arith.constant 0 : index
    %1 = vector.load %arg0[%c24, %c0_1] : memref<80x8xf32, #tpu.memory_space<vmem>>, vector<24x2xf32>
    %c48 = arith.constant 48 : index
    %c0_2 = arith.constant 0 : index
    %2 = vector.load %arg0[%c48, %c0_2] : memref<80x8xf32, #tpu.memory_space<vmem>>, vector<12x2xf32>
    %c64 = arith.constant 64 : index
    %c0_3 = arith.constant 0 : index
    %3 = vector.load %arg0[%c64, %c0_3] : memref<80x8xf32, #tpu.memory_space<vmem>>, vector<8x3xf32>
    %c72 = arith.constant 72 : index
    %c0_4 = arith.constant 0 : index
    %4 = vector.load %arg0[%c72, %c0_4] : memref<80x8xf32, #tpu.memory_space<vmem>>, vector<2x8xf32>
    %c0_5 = arith.constant 0 : index
    %c0_6 = arith.constant 0 : index
    %c0_7 = arith.constant 0 : index
    %5 = vector.load %arg1[%c0_5, %c0_6, %c0_7] : memref<40x48x96xf32, #tpu.memory_space<vmem>>, vector<1x3x16xf32>
    %6 = vector.shape_cast %5 : vector<1x3x16xf32> to vector<3x16xf32>
    %c1 = arith.constant 1 : index
    %c0_8 = arith.constant 0 : index
    %c0_9 = arith.constant 0 : index
    %7 = vector.load %arg1[%c1, %c0_8, %c0_9] : memref<40x48x96xf32, #tpu.memory_space<vmem>>, vector<1x1x16xf32>
    %8 = vector.shape_cast %7 : vector<1x1x16xf32> to vector<1x16xf32>
    %c2 = arith.constant 2 : index
    %c0_10 = arith.constant 0 : index
    %c0_11 = arith.constant 0 : index
    %9 = vector.load %arg1[%c2, %c0_10, %c0_11] : memref<40x48x96xf32, #tpu.memory_space<vmem>>, vector<1x16x16xf32>
    %10 = vector.shape_cast %9 : vector<1x16x16xf32> to vector<16x16xf32>
    %c3 = arith.constant 3 : index
    %c0_12 = arith.constant 0 : index
    %c0_13 = arith.constant 0 : index
    %11 = vector.load %arg1[%c3, %c0_12, %c0_13] : memref<40x48x96xf32, #tpu.memory_space<vmem>>, vector<1x1x16xf32>
    %12 = vector.shape_cast %11 : vector<1x1x16xf32> to vector<1x16xf32>
    %c4 = arith.constant 4 : index
    %c0_14 = arith.constant 0 : index
    %c0_15 = arith.constant 0 : index
    %13 = vector.load %arg1[%c4, %c0_14, %c0_15] : memref<40x48x96xf32, #tpu.memory_space<vmem>>, vector<1x2x16xf32>
    %14 = vector.shape_cast %13 : vector<1x2x16xf32> to vector<2x16xf32>
    %c5 = arith.constant 5 : index
    %c0_16 = arith.constant 0 : index
    %c0_17 = arith.constant 0 : index
    %15 = vector.load %arg1[%c5, %c0_16, %c0_17] : memref<40x48x96xf32, #tpu.memory_space<vmem>>, vector<1x1x16xf32>
    %16 = vector.shape_cast %15 : vector<1x1x16xf32> to vector<1x16xf32>
    %c6 = arith.constant 6 : index
    %c0_18 = arith.constant 0 : index
    %c0_19 = arith.constant 0 : index
    %17 = vector.load %arg1[%c6, %c0_18, %c0_19] : memref<40x48x96xf32, #tpu.memory_space<vmem>>, vector<1x16x16xf32>
    %18 = vector.shape_cast %17 : vector<1x16x16xf32> to vector<16x16xf32>
    %c7 = arith.constant 7 : index
    %c0_20 = arith.constant 0 : index
    %c0_21 = arith.constant 0 : index
    %19 = vector.load %arg1[%c7, %c0_20, %c0_21] : memref<40x48x96xf32, #tpu.memory_space<vmem>>, vector<1x1x16xf32>
    %20 = vector.shape_cast %19 : vector<1x1x16xf32> to vector<1x16xf32>
    %c8 = arith.constant 8 : index
    %c0_22 = arith.constant 0 : index
    %c0_23 = arith.constant 0 : index
    %21 = vector.load %arg1[%c8, %c0_22, %c0_23] : memref<40x48x96xf32, #tpu.memory_space<vmem>>, vector<1x32x48xf32>
    %22 = vector.shape_cast %21 : vector<1x32x48xf32> to vector<32x48xf32>
    %c9 = arith.constant 9 : index
    %c0_24 = arith.constant 0 : index
    %c0_25 = arith.constant 0 : index
    %23 = vector.load %arg1[%c9, %c0_24, %c0_25] : memref<40x48x96xf32, #tpu.memory_space<vmem>>, vector<1x16x48xf32>
    %24 = vector.shape_cast %23 : vector<1x16x48xf32> to vector<16x48xf32>
    %c10 = arith.constant 10 : index
    %c0_26 = arith.constant 0 : index
    %c0_27 = arith.constant 0 : index
    %25 = vector.load %arg1[%c10, %c0_26, %c0_27] : memref<40x48x96xf32, #tpu.memory_space<vmem>>, vector<1x1x48xf32>
    %26 = vector.shape_cast %25 : vector<1x1x48xf32> to vector<1x48xf32>
    %c11 = arith.constant 11 : index
    %c0_28 = arith.constant 0 : index
    %c0_29 = arith.constant 0 : index
    %27 = vector.load %arg1[%c11, %c0_28, %c0_29] : memref<40x48x96xf32, #tpu.memory_space<vmem>>, vector<1x1x48xf32>
    %28 = vector.shape_cast %27 : vector<1x1x48xf32> to vector<1x48xf32>
    %c12 = arith.constant 12 : index
    %c0_30 = arith.constant 0 : index
    %c0_31 = arith.constant 0 : index
    %29 = vector.load %arg1[%c12, %c0_30, %c0_31] : memref<40x48x96xf32, #tpu.memory_space<vmem>>, vector<1x2x16xf32>
    %30 = vector.shape_cast %29 : vector<1x2x16xf32> to vector<2x16xf32>
    %c13 = arith.constant 13 : index
    %c0_32 = arith.constant 0 : index
    %c0_33 = arith.constant 0 : index
    %31 = vector.load %arg1[%c13, %c0_32, %c0_33] : memref<40x48x96xf32, #tpu.memory_space<vmem>>, vector<1x1x16xf32>
    %32 = vector.shape_cast %31 : vector<1x1x16xf32> to vector<1x16xf32>
    %c14 = arith.constant 14 : index
    %c0_34 = arith.constant 0 : index
    %c0_35 = arith.constant 0 : index
    %33 = vector.load %arg1[%c14, %c0_34, %c0_35] : memref<40x48x96xf32, #tpu.memory_space<vmem>>, vector<1x16x48xf32>
    %34 = vector.shape_cast %33 : vector<1x16x48xf32> to vector<16x48xf32>
    %c15 = arith.constant 15 : index
    %c0_36 = arith.constant 0 : index
    %c0_37 = arith.constant 0 : index
    %35 = vector.load %arg1[%c15, %c0_36, %c0_37] : memref<40x48x96xf32, #tpu.memory_space<vmem>>, vector<1x16x48xf32>
    %36 = vector.shape_cast %35 : vector<1x16x48xf32> to vector<16x48xf32>
    %c16 = arith.constant 16 : index
    %c0_38 = arith.constant 0 : index
    %c0_39 = arith.constant 0 : index
    %37 = vector.load %arg1[%c16, %c0_38, %c0_39] : memref<40x48x96xf32, #tpu.memory_space<vmem>>, vector<1x1x48xf32>
    %38 = vector.shape_cast %37 : vector<1x1x48xf32> to vector<1x48xf32>
    %c17 = arith.constant 17 : index
    %c0_40 = arith.constant 0 : index
    %c0_41 = arith.constant 0 : index
    %39 = vector.load %arg1[%c17, %c0_40, %c0_41] : memref<40x48x96xf32, #tpu.memory_space<vmem>>, vector<1x1x48xf32>
    %40 = vector.shape_cast %39 : vector<1x1x48xf32> to vector<1x48xf32>
    %c18 = arith.constant 18 : index
    %c0_42 = arith.constant 0 : index
    %c0_43 = arith.constant 0 : index
    %41 = vector.load %arg1[%c18, %c0_42, %c0_43] : memref<40x48x96xf32, #tpu.memory_space<vmem>>, vector<1x32x96xf32>
    %42 = vector.shape_cast %41 : vector<1x32x96xf32> to vector<32x96xf32>
    %c19 = arith.constant 19 : index
    %c0_44 = arith.constant 0 : index
    %c0_45 = arith.constant 0 : index
    %43 = vector.load %arg1[%c19, %c0_44, %c0_45] : memref<40x48x96xf32, #tpu.memory_space<vmem>>, vector<1x32x96xf32>
    %44 = vector.shape_cast %43 : vector<1x32x96xf32> to vector<32x96xf32>
    %c20 = arith.constant 20 : index
    %c0_46 = arith.constant 0 : index
    %c0_47 = arith.constant 0 : index
    %45 = vector.load %arg1[%c20, %c0_46, %c0_47] : memref<40x48x96xf32, #tpu.memory_space<vmem>>, vector<1x1x96xf32>
    %46 = vector.shape_cast %45 : vector<1x1x96xf32> to vector<1x96xf32>
    %c21 = arith.constant 21 : index
    %c0_48 = arith.constant 0 : index
    %c0_49 = arith.constant 0 : index
    %47 = vector.load %arg1[%c21, %c0_48, %c0_49] : memref<40x48x96xf32, #tpu.memory_space<vmem>>, vector<1x1x96xf32>
    %48 = vector.shape_cast %47 : vector<1x1x96xf32> to vector<1x96xf32>
    %c22 = arith.constant 22 : index
    %c0_50 = arith.constant 0 : index
    %c0_51 = arith.constant 0 : index
    %49 = vector.load %arg1[%c22, %c0_50, %c0_51] : memref<40x48x96xf32, #tpu.memory_space<vmem>>, vector<1x32x16xf32>
    %50 = vector.shape_cast %49 : vector<1x32x16xf32> to vector<32x16xf32>
    %c23 = arith.constant 23 : index
    %c0_52 = arith.constant 0 : index
    %c0_53 = arith.constant 0 : index
    %51 = vector.load %arg1[%c23, %c0_52, %c0_53] : memref<40x48x96xf32, #tpu.memory_space<vmem>>, vector<1x1x16xf32>
    %52 = vector.shape_cast %51 : vector<1x1x16xf32> to vector<1x16xf32>
    %c24_54 = arith.constant 24 : index
    %c0_55 = arith.constant 0 : index
    %c0_56 = arith.constant 0 : index
    %53 = vector.load %arg1[%c24_54, %c0_55, %c0_56] : memref<40x48x96xf32, #tpu.memory_space<vmem>>, vector<1x16x3xf32>
    %54 = vector.shape_cast %53 : vector<1x16x3xf32> to vector<16x3xf32>
    %c25 = arith.constant 25 : index
    %c0_57 = arith.constant 0 : index
    %c0_58 = arith.constant 0 : index
    %55 = vector.load %arg1[%c25, %c0_57, %c0_58] : memref<40x48x96xf32, #tpu.memory_space<vmem>>, vector<1x1x3xf32>
    %56 = vector.shape_cast %55 : vector<1x1x3xf32> to vector<1x3xf32>
    %c26 = arith.constant 26 : index
    %c0_59 = arith.constant 0 : index
    %c0_60 = arith.constant 0 : index
    %57 = vector.load %arg1[%c26, %c0_59, %c0_60] : memref<40x48x96xf32, #tpu.memory_space<vmem>>, vector<1x32x3xf32>
    %58 = vector.shape_cast %57 : vector<1x32x3xf32> to vector<32x3xf32>
    %c27 = arith.constant 27 : index
    %c0_61 = arith.constant 0 : index
    %c0_62 = arith.constant 0 : index
    %59 = vector.load %arg1[%c27, %c0_61, %c0_62] : memref<40x48x96xf32, #tpu.memory_space<vmem>>, vector<1x1x3xf32>
    %60 = vector.shape_cast %59 : vector<1x1x3xf32> to vector<1x3xf32>
    %cst = arith.constant dense<0.000000e+00> : vector<24x16xf32>
    %61 = tpu.matmul %0, %6, %cst {dimension_numbers = #tpu.dot_dimension_numbers<[1], [0], [0], [1], [0, 0, 1, 1], [], []>} : vector<24x3xf32>, vector<3x16xf32>, vector<24x16xf32> -> vector<24x16xf32>
    %62 = vector.broadcast %8 : vector<1x16xf32> to vector<24x16xf32>
    %63 = arith.addf %61, %62 : vector<24x16xf32>
    %cst_63 = arith.constant 0.000000e+00 : f32
    %64 = vector.broadcast %cst_63 : f32 to vector<24x16xf32>
    %65 = arith.maximumf %63, %64 : vector<24x16xf32>
    %cst_64 = arith.constant dense<0.000000e+00> : vector<24x16xf32>
    %66 = tpu.matmul %65, %10, %cst_64 {dimension_numbers = #tpu.dot_dimension_numbers<[1], [0], [0], [1], [0, 0, 1, 1], [], []>} : vector<24x16xf32>, vector<16x16xf32>, vector<24x16xf32> -> vector<24x16xf32>
    %67 = vector.broadcast %12 : vector<1x16xf32> to vector<24x16xf32>
    %68 = arith.addf %66, %67 : vector<24x16xf32>
    %cst_65 = arith.constant dense<0.000000e+00> : vector<24x16xf32>
    %69 = tpu.matmul %1, %14, %cst_65 {dimension_numbers = #tpu.dot_dimension_numbers<[1], [0], [0], [1], [0, 0, 1, 1], [], []>} : vector<24x2xf32>, vector<2x16xf32>, vector<24x16xf32> -> vector<24x16xf32>
    %70 = vector.broadcast %16 : vector<1x16xf32> to vector<24x16xf32>
    %71 = arith.addf %69, %70 : vector<24x16xf32>
    %cst_66 = arith.constant 0.000000e+00 : f32
    %72 = vector.broadcast %cst_66 : f32 to vector<24x16xf32>
    %73 = arith.maximumf %71, %72 : vector<24x16xf32>
    %cst_67 = arith.constant dense<0.000000e+00> : vector<24x16xf32>
    %74 = tpu.matmul %73, %18, %cst_67 {dimension_numbers = #tpu.dot_dimension_numbers<[1], [0], [0], [1], [0, 0, 1, 1], [], []>} : vector<24x16xf32>, vector<16x16xf32>, vector<24x16xf32> -> vector<24x16xf32>
    %75 = vector.broadcast %20 : vector<1x16xf32> to vector<24x16xf32>
    %76 = arith.addf %74, %75 : vector<24x16xf32>
    %cst_68 = arith.constant dense<0.000000e+00> : vector<12x16xf32>
    %77 = tpu.matmul %2, %30, %cst_68 {dimension_numbers = #tpu.dot_dimension_numbers<[1], [0], [0], [1], [0, 0, 1, 1], [], []>} : vector<12x2xf32>, vector<2x16xf32>, vector<12x16xf32> -> vector<12x16xf32>
    %78 = vector.broadcast %32 : vector<1x16xf32> to vector<12x16xf32>
    %79 = arith.addf %77, %78 : vector<12x16xf32>
    %80 = tpu.concatenate %68, %76 in 1 : vector<24x16xf32>, vector<24x16xf32> -> vector<24x32xf32>
    %cst_69 = arith.constant 0.000000e+00 : f32
    %81 = vector.broadcast %cst_69 : f32 to vector<2x16xf32>
    %82 = vector.extract_strided_slice %80 {offsets = [0, 0], sizes = [2, 32], strides = [1, 1]} : vector<24x32xf32> to vector<2x32xf32>
    %cst_70 = arith.constant dense<0.000000e+00> : vector<2x48xf32>
    %83 = tpu.matmul %82, %22, %cst_70 {dimension_numbers = #tpu.dot_dimension_numbers<[1], [0], [0], [1], [0, 0, 1, 1], [], []>} : vector<2x32xf32>, vector<32x48xf32>, vector<2x48xf32> -> vector<2x48xf32>
    %84 = vector.broadcast %26 : vector<1x48xf32> to vector<2x48xf32>
    %85 = arith.addf %83, %84 : vector<2x48xf32>
    %cst_71 = arith.constant dense<0.000000e+00> : vector<2x48xf32>
    %86 = tpu.matmul %81, %24, %cst_71 {dimension_numbers = #tpu.dot_dimension_numbers<[1], [0], [0], [1], [0, 0, 1, 1], [], []>} : vector<2x16xf32>, vector<16x48xf32>, vector<2x48xf32> -> vector<2x48xf32>
    %87 = vector.broadcast %28 : vector<1x48xf32> to vector<2x48xf32>
    %88 = arith.addf %86, %87 : vector<2x48xf32>
    %89 = vector.extract_strided_slice %85 {offsets = [0, 0], sizes = [2, 32], strides = [1, 1]} : vector<2x48xf32> to vector<2x32xf32>
    %90 = vector.extract_strided_slice %88 {offsets = [0, 0], sizes = [2, 32], strides = [1, 1]} : vector<2x48xf32> to vector<2x32xf32>
    %91 = arith.addf %89, %90 : vector<2x32xf32>
    %cst_72 = arith.constant 5.000000e-01 : f32
    %92 = vector.broadcast %cst_72 : f32 to vector<2x32xf32>
    %93 = arith.mulf %92, %91 : vector<2x32xf32>
    %94 = math.tanh %93 : vector<2x32xf32>
    %cst_73 = arith.constant 5.000000e-01 : f32
    %95 = vector.broadcast %cst_73 : f32 to vector<2x32xf32>
    %96 = arith.mulf %95, %94 : vector<2x32xf32>
    %cst_74 = arith.constant 5.000000e-01 : f32
    %97 = vector.broadcast %cst_74 : f32 to vector<2x32xf32>
    %98 = arith.addf %96, %97 : vector<2x32xf32>
    %99 = vector.extract_strided_slice %98 {offsets = [0, 0], sizes = [2, 16], strides = [1, 1]} : vector<2x32xf32> to vector<2x16xf32>
    %100 = vector.extract_strided_slice %98 {offsets = [0, 16], sizes = [2, 16], strides = [1, 1]} : vector<2x32xf32> to vector<2x16xf32>
    %101 = vector.extract_strided_slice %85 {offsets = [0, 32], sizes = [2, 16], strides = [1, 1]} : vector<2x48xf32> to vector<2x16xf32>
    %102 = vector.extract_strided_slice %88 {offsets = [0, 32], sizes = [2, 16], strides = [1, 1]} : vector<2x48xf32> to vector<2x16xf32>
    %103 = arith.mulf %99, %102 : vector<2x16xf32>
    %104 = arith.addf %101, %103 : vector<2x16xf32>
    %105 = math.tanh %104 : vector<2x16xf32>
    %cst_75 = arith.constant 1.000000e+00 : f32
    %106 = vector.broadcast %cst_75 : f32 to vector<2x16xf32>
    %107 = arith.subf %106, %100 : vector<2x16xf32>
    %108 = arith.mulf %107, %105 : vector<2x16xf32>
    %109 = arith.mulf %100, %81 : vector<2x16xf32>
    %110 = arith.addf %108, %109 : vector<2x16xf32>
    %111 = vector.extract_strided_slice %80 {offsets = [2, 0], sizes = [2, 32], strides = [1, 1]} : vector<24x32xf32> to vector<2x32xf32>
    %cst_76 = arith.constant dense<0.000000e+00> : vector<2x48xf32>
    %112 = tpu.matmul %111, %22, %cst_76 {dimension_numbers = #tpu.dot_dimension_numbers<[1], [0], [0], [1], [0, 0, 1, 1], [], []>} : vector<2x32xf32>, vector<32x48xf32>, vector<2x48xf32> -> vector<2x48xf32>
    %113 = vector.broadcast %26 : vector<1x48xf32> to vector<2x48xf32>
    %114 = arith.addf %112, %113 : vector<2x48xf32>
    %cst_77 = arith.constant dense<0.000000e+00> : vector<2x48xf32>
    %115 = tpu.matmul %110, %24, %cst_77 {dimension_numbers = #tpu.dot_dimension_numbers<[1], [0], [0], [1], [0, 0, 1, 1], [], []>} : vector<2x16xf32>, vector<16x48xf32>, vector<2x48xf32> -> vector<2x48xf32>
    %116 = vector.broadcast %28 : vector<1x48xf32> to vector<2x48xf32>
    %117 = arith.addf %115, %116 : vector<2x48xf32>
    %118 = vector.extract_strided_slice %114 {offsets = [0, 0], sizes = [2, 32], strides = [1, 1]} : vector<2x48xf32> to vector<2x32xf32>
    %119 = vector.extract_strided_slice %117 {offsets = [0, 0], sizes = [2, 32], strides = [1, 1]} : vector<2x48xf32> to vector<2x32xf32>
    %120 = arith.addf %118, %119 : vector<2x32xf32>
    %cst_78 = arith.constant 5.000000e-01 : f32
    %121 = vector.broadcast %cst_78 : f32 to vector<2x32xf32>
    %122 = arith.mulf %121, %120 : vector<2x32xf32>
    %123 = math.tanh %122 : vector<2x32xf32>
    %cst_79 = arith.constant 5.000000e-01 : f32
    %124 = vector.broadcast %cst_79 : f32 to vector<2x32xf32>
    %125 = arith.mulf %124, %123 : vector<2x32xf32>
    %cst_80 = arith.constant 5.000000e-01 : f32
    %126 = vector.broadcast %cst_80 : f32 to vector<2x32xf32>
    %127 = arith.addf %125, %126 : vector<2x32xf32>
    %128 = vector.extract_strided_slice %127 {offsets = [0, 0], sizes = [2, 16], strides = [1, 1]} : vector<2x32xf32> to vector<2x16xf32>
    %129 = vector.extract_strided_slice %127 {offsets = [0, 16], sizes = [2, 16], strides = [1, 1]} : vector<2x32xf32> to vector<2x16xf32>
    %130 = vector.extract_strided_slice %114 {offsets = [0, 32], sizes = [2, 16], strides = [1, 1]} : vector<2x48xf32> to vector<2x16xf32>
    %131 = vector.extract_strided_slice %117 {offsets = [0, 32], sizes = [2, 16], strides = [1, 1]} : vector<2x48xf32> to vector<2x16xf32>
    %132 = arith.mulf %128, %131 : vector<2x16xf32>
    %133 = arith.addf %130, %132 : vector<2x16xf32>
    %134 = math.tanh %133 : vector<2x16xf32>
    %cst_81 = arith.constant 1.000000e+00 : f32
    %135 = vector.broadcast %cst_81 : f32 to vector<2x16xf32>
    %136 = arith.subf %135, %129 : vector<2x16xf32>
    %137 = arith.mulf %136, %134 : vector<2x16xf32>
    %138 = arith.mulf %129, %110 : vector<2x16xf32>
    %139 = arith.addf %137, %138 : vector<2x16xf32>
    %140 = vector.extract_strided_slice %80 {offsets = [4, 0], sizes = [2, 32], strides = [1, 1]} : vector<24x32xf32> to vector<2x32xf32>
    %cst_82 = arith.constant dense<0.000000e+00> : vector<2x48xf32>
    %141 = tpu.matmul %140, %22, %cst_82 {dimension_numbers = #tpu.dot_dimension_numbers<[1], [0], [0], [1], [0, 0, 1, 1], [], []>} : vector<2x32xf32>, vector<32x48xf32>, vector<2x48xf32> -> vector<2x48xf32>
    %142 = vector.broadcast %26 : vector<1x48xf32> to vector<2x48xf32>
    %143 = arith.addf %141, %142 : vector<2x48xf32>
    %cst_83 = arith.constant dense<0.000000e+00> : vector<2x48xf32>
    %144 = tpu.matmul %139, %24, %cst_83 {dimension_numbers = #tpu.dot_dimension_numbers<[1], [0], [0], [1], [0, 0, 1, 1], [], []>} : vector<2x16xf32>, vector<16x48xf32>, vector<2x48xf32> -> vector<2x48xf32>
    %145 = vector.broadcast %28 : vector<1x48xf32> to vector<2x48xf32>
    %146 = arith.addf %144, %145 : vector<2x48xf32>
    %147 = vector.extract_strided_slice %143 {offsets = [0, 0], sizes = [2, 32], strides = [1, 1]} : vector<2x48xf32> to vector<2x32xf32>
    %148 = vector.extract_strided_slice %146 {offsets = [0, 0], sizes = [2, 32], strides = [1, 1]} : vector<2x48xf32> to vector<2x32xf32>
    %149 = arith.addf %147, %148 : vector<2x32xf32>
    %cst_84 = arith.constant 5.000000e-01 : f32
    %150 = vector.broadcast %cst_84 : f32 to vector<2x32xf32>
    %151 = arith.mulf %150, %149 : vector<2x32xf32>
    %152 = math.tanh %151 : vector<2x32xf32>
    %cst_85 = arith.constant 5.000000e-01 : f32
    %153 = vector.broadcast %cst_85 : f32 to vector<2x32xf32>
    %154 = arith.mulf %153, %152 : vector<2x32xf32>
    %cst_86 = arith.constant 5.000000e-01 : f32
    %155 = vector.broadcast %cst_86 : f32 to vector<2x32xf32>
    %156 = arith.addf %154, %155 : vector<2x32xf32>
    %157 = vector.extract_strided_slice %156 {offsets = [0, 0], sizes = [2, 16], strides = [1, 1]} : vector<2x32xf32> to vector<2x16xf32>
    %158 = vector.extract_strided_slice %156 {offsets = [0, 16], sizes = [2, 16], strides = [1, 1]} : vector<2x32xf32> to vector<2x16xf32>
    %159 = vector.extract_strided_slice %143 {offsets = [0, 32], sizes = [2, 16], strides = [1, 1]} : vector<2x48xf32> to vector<2x16xf32>
    %160 = vector.extract_strided_slice %146 {offsets = [0, 32], sizes = [2, 16], strides = [1, 1]} : vector<2x48xf32> to vector<2x16xf32>
    %161 = arith.mulf %157, %160 : vector<2x16xf32>
    %162 = arith.addf %159, %161 : vector<2x16xf32>
    %163 = math.tanh %162 : vector<2x16xf32>
    %cst_87 = arith.constant 1.000000e+00 : f32
    %164 = vector.broadcast %cst_87 : f32 to vector<2x16xf32>
    %165 = arith.subf %164, %158 : vector<2x16xf32>
    %166 = arith.mulf %165, %163 : vector<2x16xf32>
    %167 = arith.mulf %158, %139 : vector<2x16xf32>
    %168 = arith.addf %166, %167 : vector<2x16xf32>
    %169 = vector.extract_strided_slice %80 {offsets = [6, 0], sizes = [2, 32], strides = [1, 1]} : vector<24x32xf32> to vector<2x32xf32>
    %cst_88 = arith.constant dense<0.000000e+00> : vector<2x48xf32>
    %170 = tpu.matmul %169, %22, %cst_88 {dimension_numbers = #tpu.dot_dimension_numbers<[1], [0], [0], [1], [0, 0, 1, 1], [], []>} : vector<2x32xf32>, vector<32x48xf32>, vector<2x48xf32> -> vector<2x48xf32>
    %171 = vector.broadcast %26 : vector<1x48xf32> to vector<2x48xf32>
    %172 = arith.addf %170, %171 : vector<2x48xf32>
    %cst_89 = arith.constant dense<0.000000e+00> : vector<2x48xf32>
    %173 = tpu.matmul %168, %24, %cst_89 {dimension_numbers = #tpu.dot_dimension_numbers<[1], [0], [0], [1], [0, 0, 1, 1], [], []>} : vector<2x16xf32>, vector<16x48xf32>, vector<2x48xf32> -> vector<2x48xf32>
    %174 = vector.broadcast %28 : vector<1x48xf32> to vector<2x48xf32>
    %175 = arith.addf %173, %174 : vector<2x48xf32>
    %176 = vector.extract_strided_slice %172 {offsets = [0, 0], sizes = [2, 32], strides = [1, 1]} : vector<2x48xf32> to vector<2x32xf32>
    %177 = vector.extract_strided_slice %175 {offsets = [0, 0], sizes = [2, 32], strides = [1, 1]} : vector<2x48xf32> to vector<2x32xf32>
    %178 = arith.addf %176, %177 : vector<2x32xf32>
    %cst_90 = arith.constant 5.000000e-01 : f32
    %179 = vector.broadcast %cst_90 : f32 to vector<2x32xf32>
    %180 = arith.mulf %179, %178 : vector<2x32xf32>
    %181 = math.tanh %180 : vector<2x32xf32>
    %cst_91 = arith.constant 5.000000e-01 : f32
    %182 = vector.broadcast %cst_91 : f32 to vector<2x32xf32>
    %183 = arith.mulf %182, %181 : vector<2x32xf32>
    %cst_92 = arith.constant 5.000000e-01 : f32
    %184 = vector.broadcast %cst_92 : f32 to vector<2x32xf32>
    %185 = arith.addf %183, %184 : vector<2x32xf32>
    %186 = vector.extract_strided_slice %185 {offsets = [0, 0], sizes = [2, 16], strides = [1, 1]} : vector<2x32xf32> to vector<2x16xf32>
    %187 = vector.extract_strided_slice %185 {offsets = [0, 16], sizes = [2, 16], strides = [1, 1]} : vector<2x32xf32> to vector<2x16xf32>
    %188 = vector.extract_strided_slice %172 {offsets = [0, 32], sizes = [2, 16], strides = [1, 1]} : vector<2x48xf32> to vector<2x16xf32>
    %189 = vector.extract_strided_slice %175 {offsets = [0, 32], sizes = [2, 16], strides = [1, 1]} : vector<2x48xf32> to vector<2x16xf32>
    %190 = arith.mulf %186, %189 : vector<2x16xf32>
    %191 = arith.addf %188, %190 : vector<2x16xf32>
    %192 = math.tanh %191 : vector<2x16xf32>
    %cst_93 = arith.constant 1.000000e+00 : f32
    %193 = vector.broadcast %cst_93 : f32 to vector<2x16xf32>
    %194 = arith.subf %193, %187 : vector<2x16xf32>
    %195 = arith.mulf %194, %192 : vector<2x16xf32>
    %196 = arith.mulf %187, %168 : vector<2x16xf32>
    %197 = arith.addf %195, %196 : vector<2x16xf32>
    %198 = vector.extract_strided_slice %80 {offsets = [8, 0], sizes = [2, 32], strides = [1, 1]} : vector<24x32xf32> to vector<2x32xf32>
    %cst_94 = arith.constant dense<0.000000e+00> : vector<2x48xf32>
    %199 = tpu.matmul %198, %22, %cst_94 {dimension_numbers = #tpu.dot_dimension_numbers<[1], [0], [0], [1], [0, 0, 1, 1], [], []>} : vector<2x32xf32>, vector<32x48xf32>, vector<2x48xf32> -> vector<2x48xf32>
    %200 = vector.broadcast %26 : vector<1x48xf32> to vector<2x48xf32>
    %201 = arith.addf %199, %200 : vector<2x48xf32>
    %cst_95 = arith.constant dense<0.000000e+00> : vector<2x48xf32>
    %202 = tpu.matmul %197, %24, %cst_95 {dimension_numbers = #tpu.dot_dimension_numbers<[1], [0], [0], [1], [0, 0, 1, 1], [], []>} : vector<2x16xf32>, vector<16x48xf32>, vector<2x48xf32> -> vector<2x48xf32>
    %203 = vector.broadcast %28 : vector<1x48xf32> to vector<2x48xf32>
    %204 = arith.addf %202, %203 : vector<2x48xf32>
    %205 = vector.extract_strided_slice %201 {offsets = [0, 0], sizes = [2, 32], strides = [1, 1]} : vector<2x48xf32> to vector<2x32xf32>
    %206 = vector.extract_strided_slice %204 {offsets = [0, 0], sizes = [2, 32], strides = [1, 1]} : vector<2x48xf32> to vector<2x32xf32>
    %207 = arith.addf %205, %206 : vector<2x32xf32>
    %cst_96 = arith.constant 5.000000e-01 : f32
    %208 = vector.broadcast %cst_96 : f32 to vector<2x32xf32>
    %209 = arith.mulf %208, %207 : vector<2x32xf32>
    %210 = math.tanh %209 : vector<2x32xf32>
    %cst_97 = arith.constant 5.000000e-01 : f32
    %211 = vector.broadcast %cst_97 : f32 to vector<2x32xf32>
    %212 = arith.mulf %211, %210 : vector<2x32xf32>
    %cst_98 = arith.constant 5.000000e-01 : f32
    %213 = vector.broadcast %cst_98 : f32 to vector<2x32xf32>
    %214 = arith.addf %212, %213 : vector<2x32xf32>
    %215 = vector.extract_strided_slice %214 {offsets = [0, 0], sizes = [2, 16], strides = [1, 1]} : vector<2x32xf32> to vector<2x16xf32>
    %216 = vector.extract_strided_slice %214 {offsets = [0, 16], sizes = [2, 16], strides = [1, 1]} : vector<2x32xf32> to vector<2x16xf32>
    %217 = vector.extract_strided_slice %201 {offsets = [0, 32], sizes = [2, 16], strides = [1, 1]} : vector<2x48xf32> to vector<2x16xf32>
    %218 = vector.extract_strided_slice %204 {offsets = [0, 32], sizes = [2, 16], strides = [1, 1]} : vector<2x48xf32> to vector<2x16xf32>
    %219 = arith.mulf %215, %218 : vector<2x16xf32>
    %220 = arith.addf %217, %219 : vector<2x16xf32>
    %221 = math.tanh %220 : vector<2x16xf32>
    %cst_99 = arith.constant 1.000000e+00 : f32
    %222 = vector.broadcast %cst_99 : f32 to vector<2x16xf32>
    %223 = arith.subf %222, %216 : vector<2x16xf32>
    %224 = arith.mulf %223, %221 : vector<2x16xf32>
    %225 = arith.mulf %216, %197 : vector<2x16xf32>
    %226 = arith.addf %224, %225 : vector<2x16xf32>
    %227 = vector.extract_strided_slice %80 {offsets = [10, 0], sizes = [2, 32], strides = [1, 1]} : vector<24x32xf32> to vector<2x32xf32>
    %cst_100 = arith.constant dense<0.000000e+00> : vector<2x48xf32>
    %228 = tpu.matmul %227, %22, %cst_100 {dimension_numbers = #tpu.dot_dimension_numbers<[1], [0], [0], [1], [0, 0, 1, 1], [], []>} : vector<2x32xf32>, vector<32x48xf32>, vector<2x48xf32> -> vector<2x48xf32>
    %229 = vector.broadcast %26 : vector<1x48xf32> to vector<2x48xf32>
    %230 = arith.addf %228, %229 : vector<2x48xf32>
    %cst_101 = arith.constant dense<0.000000e+00> : vector<2x48xf32>
    %231 = tpu.matmul %226, %24, %cst_101 {dimension_numbers = #tpu.dot_dimension_numbers<[1], [0], [0], [1], [0, 0, 1, 1], [], []>} : vector<2x16xf32>, vector<16x48xf32>, vector<2x48xf32> -> vector<2x48xf32>
    %232 = vector.broadcast %28 : vector<1x48xf32> to vector<2x48xf32>
    %233 = arith.addf %231, %232 : vector<2x48xf32>
    %234 = vector.extract_strided_slice %230 {offsets = [0, 0], sizes = [2, 32], strides = [1, 1]} : vector<2x48xf32> to vector<2x32xf32>
    %235 = vector.extract_strided_slice %233 {offsets = [0, 0], sizes = [2, 32], strides = [1, 1]} : vector<2x48xf32> to vector<2x32xf32>
    %236 = arith.addf %234, %235 : vector<2x32xf32>
    %cst_102 = arith.constant 5.000000e-01 : f32
    %237 = vector.broadcast %cst_102 : f32 to vector<2x32xf32>
    %238 = arith.mulf %237, %236 : vector<2x32xf32>
    %239 = math.tanh %238 : vector<2x32xf32>
    %cst_103 = arith.constant 5.000000e-01 : f32
    %240 = vector.broadcast %cst_103 : f32 to vector<2x32xf32>
    %241 = arith.mulf %240, %239 : vector<2x32xf32>
    %cst_104 = arith.constant 5.000000e-01 : f32
    %242 = vector.broadcast %cst_104 : f32 to vector<2x32xf32>
    %243 = arith.addf %241, %242 : vector<2x32xf32>
    %244 = vector.extract_strided_slice %243 {offsets = [0, 0], sizes = [2, 16], strides = [1, 1]} : vector<2x32xf32> to vector<2x16xf32>
    %245 = vector.extract_strided_slice %243 {offsets = [0, 16], sizes = [2, 16], strides = [1, 1]} : vector<2x32xf32> to vector<2x16xf32>
    %246 = vector.extract_strided_slice %230 {offsets = [0, 32], sizes = [2, 16], strides = [1, 1]} : vector<2x48xf32> to vector<2x16xf32>
    %247 = vector.extract_strided_slice %233 {offsets = [0, 32], sizes = [2, 16], strides = [1, 1]} : vector<2x48xf32> to vector<2x16xf32>
    %248 = arith.mulf %244, %247 : vector<2x16xf32>
    %249 = arith.addf %246, %248 : vector<2x16xf32>
    %250 = math.tanh %249 : vector<2x16xf32>
    %cst_105 = arith.constant 1.000000e+00 : f32
    %251 = vector.broadcast %cst_105 : f32 to vector<2x16xf32>
    %252 = arith.subf %251, %245 : vector<2x16xf32>
    %253 = arith.mulf %252, %250 : vector<2x16xf32>
    %254 = arith.mulf %245, %226 : vector<2x16xf32>
    %255 = arith.addf %253, %254 : vector<2x16xf32>
    %256 = vector.extract_strided_slice %80 {offsets = [12, 0], sizes = [2, 32], strides = [1, 1]} : vector<24x32xf32> to vector<2x32xf32>
    %cst_106 = arith.constant dense<0.000000e+00> : vector<2x48xf32>
    %257 = tpu.matmul %256, %22, %cst_106 {dimension_numbers = #tpu.dot_dimension_numbers<[1], [0], [0], [1], [0, 0, 1, 1], [], []>} : vector<2x32xf32>, vector<32x48xf32>, vector<2x48xf32> -> vector<2x48xf32>
    %258 = vector.broadcast %26 : vector<1x48xf32> to vector<2x48xf32>
    %259 = arith.addf %257, %258 : vector<2x48xf32>
    %cst_107 = arith.constant dense<0.000000e+00> : vector<2x48xf32>
    %260 = tpu.matmul %255, %24, %cst_107 {dimension_numbers = #tpu.dot_dimension_numbers<[1], [0], [0], [1], [0, 0, 1, 1], [], []>} : vector<2x16xf32>, vector<16x48xf32>, vector<2x48xf32> -> vector<2x48xf32>
    %261 = vector.broadcast %28 : vector<1x48xf32> to vector<2x48xf32>
    %262 = arith.addf %260, %261 : vector<2x48xf32>
    %263 = vector.extract_strided_slice %259 {offsets = [0, 0], sizes = [2, 32], strides = [1, 1]} : vector<2x48xf32> to vector<2x32xf32>
    %264 = vector.extract_strided_slice %262 {offsets = [0, 0], sizes = [2, 32], strides = [1, 1]} : vector<2x48xf32> to vector<2x32xf32>
    %265 = arith.addf %263, %264 : vector<2x32xf32>
    %cst_108 = arith.constant 5.000000e-01 : f32
    %266 = vector.broadcast %cst_108 : f32 to vector<2x32xf32>
    %267 = arith.mulf %266, %265 : vector<2x32xf32>
    %268 = math.tanh %267 : vector<2x32xf32>
    %cst_109 = arith.constant 5.000000e-01 : f32
    %269 = vector.broadcast %cst_109 : f32 to vector<2x32xf32>
    %270 = arith.mulf %269, %268 : vector<2x32xf32>
    %cst_110 = arith.constant 5.000000e-01 : f32
    %271 = vector.broadcast %cst_110 : f32 to vector<2x32xf32>
    %272 = arith.addf %270, %271 : vector<2x32xf32>
    %273 = vector.extract_strided_slice %272 {offsets = [0, 0], sizes = [2, 16], strides = [1, 1]} : vector<2x32xf32> to vector<2x16xf32>
    %274 = vector.extract_strided_slice %272 {offsets = [0, 16], sizes = [2, 16], strides = [1, 1]} : vector<2x32xf32> to vector<2x16xf32>
    %275 = vector.extract_strided_slice %259 {offsets = [0, 32], sizes = [2, 16], strides = [1, 1]} : vector<2x48xf32> to vector<2x16xf32>
    %276 = vector.extract_strided_slice %262 {offsets = [0, 32], sizes = [2, 16], strides = [1, 1]} : vector<2x48xf32> to vector<2x16xf32>
    %277 = arith.mulf %273, %276 : vector<2x16xf32>
    %278 = arith.addf %275, %277 : vector<2x16xf32>
    %279 = math.tanh %278 : vector<2x16xf32>
    %cst_111 = arith.constant 1.000000e+00 : f32
    %280 = vector.broadcast %cst_111 : f32 to vector<2x16xf32>
    %281 = arith.subf %280, %274 : vector<2x16xf32>
    %282 = arith.mulf %281, %279 : vector<2x16xf32>
    %283 = arith.mulf %274, %255 : vector<2x16xf32>
    %284 = arith.addf %282, %283 : vector<2x16xf32>
    %285 = vector.extract_strided_slice %80 {offsets = [14, 0], sizes = [2, 32], strides = [1, 1]} : vector<24x32xf32> to vector<2x32xf32>
    %cst_112 = arith.constant dense<0.000000e+00> : vector<2x48xf32>
    %286 = tpu.matmul %285, %22, %cst_112 {dimension_numbers = #tpu.dot_dimension_numbers<[1], [0], [0], [1], [0, 0, 1, 1], [], []>} : vector<2x32xf32>, vector<32x48xf32>, vector<2x48xf32> -> vector<2x48xf32>
    %287 = vector.broadcast %26 : vector<1x48xf32> to vector<2x48xf32>
    %288 = arith.addf %286, %287 : vector<2x48xf32>
    %cst_113 = arith.constant dense<0.000000e+00> : vector<2x48xf32>
    %289 = tpu.matmul %284, %24, %cst_113 {dimension_numbers = #tpu.dot_dimension_numbers<[1], [0], [0], [1], [0, 0, 1, 1], [], []>} : vector<2x16xf32>, vector<16x48xf32>, vector<2x48xf32> -> vector<2x48xf32>
    %290 = vector.broadcast %28 : vector<1x48xf32> to vector<2x48xf32>
    %291 = arith.addf %289, %290 : vector<2x48xf32>
    %292 = vector.extract_strided_slice %288 {offsets = [0, 0], sizes = [2, 32], strides = [1, 1]} : vector<2x48xf32> to vector<2x32xf32>
    %293 = vector.extract_strided_slice %291 {offsets = [0, 0], sizes = [2, 32], strides = [1, 1]} : vector<2x48xf32> to vector<2x32xf32>
    %294 = arith.addf %292, %293 : vector<2x32xf32>
    %cst_114 = arith.constant 5.000000e-01 : f32
    %295 = vector.broadcast %cst_114 : f32 to vector<2x32xf32>
    %296 = arith.mulf %295, %294 : vector<2x32xf32>
    %297 = math.tanh %296 : vector<2x32xf32>
    %cst_115 = arith.constant 5.000000e-01 : f32
    %298 = vector.broadcast %cst_115 : f32 to vector<2x32xf32>
    %299 = arith.mulf %298, %297 : vector<2x32xf32>
    %cst_116 = arith.constant 5.000000e-01 : f32
    %300 = vector.broadcast %cst_116 : f32 to vector<2x32xf32>
    %301 = arith.addf %299, %300 : vector<2x32xf32>
    %302 = vector.extract_strided_slice %301 {offsets = [0, 0], sizes = [2, 16], strides = [1, 1]} : vector<2x32xf32> to vector<2x16xf32>
    %303 = vector.extract_strided_slice %301 {offsets = [0, 16], sizes = [2, 16], strides = [1, 1]} : vector<2x32xf32> to vector<2x16xf32>
    %304 = vector.extract_strided_slice %288 {offsets = [0, 32], sizes = [2, 16], strides = [1, 1]} : vector<2x48xf32> to vector<2x16xf32>
    %305 = vector.extract_strided_slice %291 {offsets = [0, 32], sizes = [2, 16], strides = [1, 1]} : vector<2x48xf32> to vector<2x16xf32>
    %306 = arith.mulf %302, %305 : vector<2x16xf32>
    %307 = arith.addf %304, %306 : vector<2x16xf32>
    %308 = math.tanh %307 : vector<2x16xf32>
    %cst_117 = arith.constant 1.000000e+00 : f32
    %309 = vector.broadcast %cst_117 : f32 to vector<2x16xf32>
    %310 = arith.subf %309, %303 : vector<2x16xf32>
    %311 = arith.mulf %310, %308 : vector<2x16xf32>
    %312 = arith.mulf %303, %284 : vector<2x16xf32>
    %313 = arith.addf %311, %312 : vector<2x16xf32>
    %314 = vector.extract_strided_slice %80 {offsets = [16, 0], sizes = [2, 32], strides = [1, 1]} : vector<24x32xf32> to vector<2x32xf32>
    %cst_118 = arith.constant dense<0.000000e+00> : vector<2x48xf32>
    %315 = tpu.matmul %314, %22, %cst_118 {dimension_numbers = #tpu.dot_dimension_numbers<[1], [0], [0], [1], [0, 0, 1, 1], [], []>} : vector<2x32xf32>, vector<32x48xf32>, vector<2x48xf32> -> vector<2x48xf32>
    %316 = vector.broadcast %26 : vector<1x48xf32> to vector<2x48xf32>
    %317 = arith.addf %315, %316 : vector<2x48xf32>
    %cst_119 = arith.constant dense<0.000000e+00> : vector<2x48xf32>
    %318 = tpu.matmul %313, %24, %cst_119 {dimension_numbers = #tpu.dot_dimension_numbers<[1], [0], [0], [1], [0, 0, 1, 1], [], []>} : vector<2x16xf32>, vector<16x48xf32>, vector<2x48xf32> -> vector<2x48xf32>
    %319 = vector.broadcast %28 : vector<1x48xf32> to vector<2x48xf32>
    %320 = arith.addf %318, %319 : vector<2x48xf32>
    %321 = vector.extract_strided_slice %317 {offsets = [0, 0], sizes = [2, 32], strides = [1, 1]} : vector<2x48xf32> to vector<2x32xf32>
    %322 = vector.extract_strided_slice %320 {offsets = [0, 0], sizes = [2, 32], strides = [1, 1]} : vector<2x48xf32> to vector<2x32xf32>
    %323 = arith.addf %321, %322 : vector<2x32xf32>
    %cst_120 = arith.constant 5.000000e-01 : f32
    %324 = vector.broadcast %cst_120 : f32 to vector<2x32xf32>
    %325 = arith.mulf %324, %323 : vector<2x32xf32>
    %326 = math.tanh %325 : vector<2x32xf32>
    %cst_121 = arith.constant 5.000000e-01 : f32
    %327 = vector.broadcast %cst_121 : f32 to vector<2x32xf32>
    %328 = arith.mulf %327, %326 : vector<2x32xf32>
    %cst_122 = arith.constant 5.000000e-01 : f32
    %329 = vector.broadcast %cst_122 : f32 to vector<2x32xf32>
    %330 = arith.addf %328, %329 : vector<2x32xf32>
    %331 = vector.extract_strided_slice %330 {offsets = [0, 0], sizes = [2, 16], strides = [1, 1]} : vector<2x32xf32> to vector<2x16xf32>
    %332 = vector.extract_strided_slice %330 {offsets = [0, 16], sizes = [2, 16], strides = [1, 1]} : vector<2x32xf32> to vector<2x16xf32>
    %333 = vector.extract_strided_slice %317 {offsets = [0, 32], sizes = [2, 16], strides = [1, 1]} : vector<2x48xf32> to vector<2x16xf32>
    %334 = vector.extract_strided_slice %320 {offsets = [0, 32], sizes = [2, 16], strides = [1, 1]} : vector<2x48xf32> to vector<2x16xf32>
    %335 = arith.mulf %331, %334 : vector<2x16xf32>
    %336 = arith.addf %333, %335 : vector<2x16xf32>
    %337 = math.tanh %336 : vector<2x16xf32>
    %cst_123 = arith.constant 1.000000e+00 : f32
    %338 = vector.broadcast %cst_123 : f32 to vector<2x16xf32>
    %339 = arith.subf %338, %332 : vector<2x16xf32>
    %340 = arith.mulf %339, %337 : vector<2x16xf32>
    %341 = arith.mulf %332, %313 : vector<2x16xf32>
    %342 = arith.addf %340, %341 : vector<2x16xf32>
    %343 = vector.extract_strided_slice %80 {offsets = [18, 0], sizes = [2, 32], strides = [1, 1]} : vector<24x32xf32> to vector<2x32xf32>
    %cst_124 = arith.constant dense<0.000000e+00> : vector<2x48xf32>
    %344 = tpu.matmul %343, %22, %cst_124 {dimension_numbers = #tpu.dot_dimension_numbers<[1], [0], [0], [1], [0, 0, 1, 1], [], []>} : vector<2x32xf32>, vector<32x48xf32>, vector<2x48xf32> -> vector<2x48xf32>
    %345 = vector.broadcast %26 : vector<1x48xf32> to vector<2x48xf32>
    %346 = arith.addf %344, %345 : vector<2x48xf32>
    %cst_125 = arith.constant dense<0.000000e+00> : vector<2x48xf32>
    %347 = tpu.matmul %342, %24, %cst_125 {dimension_numbers = #tpu.dot_dimension_numbers<[1], [0], [0], [1], [0, 0, 1, 1], [], []>} : vector<2x16xf32>, vector<16x48xf32>, vector<2x48xf32> -> vector<2x48xf32>
    %348 = vector.broadcast %28 : vector<1x48xf32> to vector<2x48xf32>
    %349 = arith.addf %347, %348 : vector<2x48xf32>
    %350 = vector.extract_strided_slice %346 {offsets = [0, 0], sizes = [2, 32], strides = [1, 1]} : vector<2x48xf32> to vector<2x32xf32>
    %351 = vector.extract_strided_slice %349 {offsets = [0, 0], sizes = [2, 32], strides = [1, 1]} : vector<2x48xf32> to vector<2x32xf32>
    %352 = arith.addf %350, %351 : vector<2x32xf32>
    %cst_126 = arith.constant 5.000000e-01 : f32
    %353 = vector.broadcast %cst_126 : f32 to vector<2x32xf32>
    %354 = arith.mulf %353, %352 : vector<2x32xf32>
    %355 = math.tanh %354 : vector<2x32xf32>
    %cst_127 = arith.constant 5.000000e-01 : f32
    %356 = vector.broadcast %cst_127 : f32 to vector<2x32xf32>
    %357 = arith.mulf %356, %355 : vector<2x32xf32>
    %cst_128 = arith.constant 5.000000e-01 : f32
    %358 = vector.broadcast %cst_128 : f32 to vector<2x32xf32>
    %359 = arith.addf %357, %358 : vector<2x32xf32>
    %360 = vector.extract_strided_slice %359 {offsets = [0, 0], sizes = [2, 16], strides = [1, 1]} : vector<2x32xf32> to vector<2x16xf32>
    %361 = vector.extract_strided_slice %359 {offsets = [0, 16], sizes = [2, 16], strides = [1, 1]} : vector<2x32xf32> to vector<2x16xf32>
    %362 = vector.extract_strided_slice %346 {offsets = [0, 32], sizes = [2, 16], strides = [1, 1]} : vector<2x48xf32> to vector<2x16xf32>
    %363 = vector.extract_strided_slice %349 {offsets = [0, 32], sizes = [2, 16], strides = [1, 1]} : vector<2x48xf32> to vector<2x16xf32>
    %364 = arith.mulf %360, %363 : vector<2x16xf32>
    %365 = arith.addf %362, %364 : vector<2x16xf32>
    %366 = math.tanh %365 : vector<2x16xf32>
    %cst_129 = arith.constant 1.000000e+00 : f32
    %367 = vector.broadcast %cst_129 : f32 to vector<2x16xf32>
    %368 = arith.subf %367, %361 : vector<2x16xf32>
    %369 = arith.mulf %368, %366 : vector<2x16xf32>
    %370 = arith.mulf %361, %342 : vector<2x16xf32>
    %371 = arith.addf %369, %370 : vector<2x16xf32>
    %372 = vector.extract_strided_slice %80 {offsets = [20, 0], sizes = [2, 32], strides = [1, 1]} : vector<24x32xf32> to vector<2x32xf32>
    %cst_130 = arith.constant dense<0.000000e+00> : vector<2x48xf32>
    %373 = tpu.matmul %372, %22, %cst_130 {dimension_numbers = #tpu.dot_dimension_numbers<[1], [0], [0], [1], [0, 0, 1, 1], [], []>} : vector<2x32xf32>, vector<32x48xf32>, vector<2x48xf32> -> vector<2x48xf32>
    %374 = vector.broadcast %26 : vector<1x48xf32> to vector<2x48xf32>
    %375 = arith.addf %373, %374 : vector<2x48xf32>
    %cst_131 = arith.constant dense<0.000000e+00> : vector<2x48xf32>
    %376 = tpu.matmul %371, %24, %cst_131 {dimension_numbers = #tpu.dot_dimension_numbers<[1], [0], [0], [1], [0, 0, 1, 1], [], []>} : vector<2x16xf32>, vector<16x48xf32>, vector<2x48xf32> -> vector<2x48xf32>
    %377 = vector.broadcast %28 : vector<1x48xf32> to vector<2x48xf32>
    %378 = arith.addf %376, %377 : vector<2x48xf32>
    %379 = vector.extract_strided_slice %375 {offsets = [0, 0], sizes = [2, 32], strides = [1, 1]} : vector<2x48xf32> to vector<2x32xf32>
    %380 = vector.extract_strided_slice %378 {offsets = [0, 0], sizes = [2, 32], strides = [1, 1]} : vector<2x48xf32> to vector<2x32xf32>
    %381 = arith.addf %379, %380 : vector<2x32xf32>
    %cst_132 = arith.constant 5.000000e-01 : f32
    %382 = vector.broadcast %cst_132 : f32 to vector<2x32xf32>
    %383 = arith.mulf %382, %381 : vector<2x32xf32>
    %384 = math.tanh %383 : vector<2x32xf32>
    %cst_133 = arith.constant 5.000000e-01 : f32
    %385 = vector.broadcast %cst_133 : f32 to vector<2x32xf32>
    %386 = arith.mulf %385, %384 : vector<2x32xf32>
    %cst_134 = arith.constant 5.000000e-01 : f32
    %387 = vector.broadcast %cst_134 : f32 to vector<2x32xf32>
    %388 = arith.addf %386, %387 : vector<2x32xf32>
    %389 = vector.extract_strided_slice %388 {offsets = [0, 0], sizes = [2, 16], strides = [1, 1]} : vector<2x32xf32> to vector<2x16xf32>
    %390 = vector.extract_strided_slice %388 {offsets = [0, 16], sizes = [2, 16], strides = [1, 1]} : vector<2x32xf32> to vector<2x16xf32>
    %391 = vector.extract_strided_slice %375 {offsets = [0, 32], sizes = [2, 16], strides = [1, 1]} : vector<2x48xf32> to vector<2x16xf32>
    %392 = vector.extract_strided_slice %378 {offsets = [0, 32], sizes = [2, 16], strides = [1, 1]} : vector<2x48xf32> to vector<2x16xf32>
    %393 = arith.mulf %389, %392 : vector<2x16xf32>
    %394 = arith.addf %391, %393 : vector<2x16xf32>
    %395 = math.tanh %394 : vector<2x16xf32>
    %cst_135 = arith.constant 1.000000e+00 : f32
    %396 = vector.broadcast %cst_135 : f32 to vector<2x16xf32>
    %397 = arith.subf %396, %390 : vector<2x16xf32>
    %398 = arith.mulf %397, %395 : vector<2x16xf32>
    %399 = arith.mulf %390, %371 : vector<2x16xf32>
    %400 = arith.addf %398, %399 : vector<2x16xf32>
    %401 = vector.extract_strided_slice %80 {offsets = [22, 0], sizes = [2, 32], strides = [1, 1]} : vector<24x32xf32> to vector<2x32xf32>
    %cst_136 = arith.constant dense<0.000000e+00> : vector<2x48xf32>
    %402 = tpu.matmul %401, %22, %cst_136 {dimension_numbers = #tpu.dot_dimension_numbers<[1], [0], [0], [1], [0, 0, 1, 1], [], []>} : vector<2x32xf32>, vector<32x48xf32>, vector<2x48xf32> -> vector<2x48xf32>
    %403 = vector.broadcast %26 : vector<1x48xf32> to vector<2x48xf32>
    %404 = arith.addf %402, %403 : vector<2x48xf32>
    %cst_137 = arith.constant dense<0.000000e+00> : vector<2x48xf32>
    %405 = tpu.matmul %400, %24, %cst_137 {dimension_numbers = #tpu.dot_dimension_numbers<[1], [0], [0], [1], [0, 0, 1, 1], [], []>} : vector<2x16xf32>, vector<16x48xf32>, vector<2x48xf32> -> vector<2x48xf32>
    %406 = vector.broadcast %28 : vector<1x48xf32> to vector<2x48xf32>
    %407 = arith.addf %405, %406 : vector<2x48xf32>
    %408 = vector.extract_strided_slice %404 {offsets = [0, 0], sizes = [2, 32], strides = [1, 1]} : vector<2x48xf32> to vector<2x32xf32>
    %409 = vector.extract_strided_slice %407 {offsets = [0, 0], sizes = [2, 32], strides = [1, 1]} : vector<2x48xf32> to vector<2x32xf32>
    %410 = arith.addf %408, %409 : vector<2x32xf32>
    %cst_138 = arith.constant 5.000000e-01 : f32
    %411 = vector.broadcast %cst_138 : f32 to vector<2x32xf32>
    %412 = arith.mulf %411, %410 : vector<2x32xf32>
    %413 = math.tanh %412 : vector<2x32xf32>
    %cst_139 = arith.constant 5.000000e-01 : f32
    %414 = vector.broadcast %cst_139 : f32 to vector<2x32xf32>
    %415 = arith.mulf %414, %413 : vector<2x32xf32>
    %cst_140 = arith.constant 5.000000e-01 : f32
    %416 = vector.broadcast %cst_140 : f32 to vector<2x32xf32>
    %417 = arith.addf %415, %416 : vector<2x32xf32>
    %418 = vector.extract_strided_slice %417 {offsets = [0, 0], sizes = [2, 16], strides = [1, 1]} : vector<2x32xf32> to vector<2x16xf32>
    %419 = vector.extract_strided_slice %417 {offsets = [0, 16], sizes = [2, 16], strides = [1, 1]} : vector<2x32xf32> to vector<2x16xf32>
    %420 = vector.extract_strided_slice %404 {offsets = [0, 32], sizes = [2, 16], strides = [1, 1]} : vector<2x48xf32> to vector<2x16xf32>
    %421 = vector.extract_strided_slice %407 {offsets = [0, 32], sizes = [2, 16], strides = [1, 1]} : vector<2x48xf32> to vector<2x16xf32>
    %422 = arith.mulf %418, %421 : vector<2x16xf32>
    %423 = arith.addf %420, %422 : vector<2x16xf32>
    %424 = math.tanh %423 : vector<2x16xf32>
    %cst_141 = arith.constant 1.000000e+00 : f32
    %425 = vector.broadcast %cst_141 : f32 to vector<2x16xf32>
    %426 = arith.subf %425, %419 : vector<2x16xf32>
    %427 = arith.mulf %426, %424 : vector<2x16xf32>
    %428 = arith.mulf %419, %400 : vector<2x16xf32>
    %429 = arith.addf %427, %428 : vector<2x16xf32>
    %cst_142 = arith.constant 0.000000e+00 : f32
    %430 = vector.broadcast %cst_142 : f32 to vector<2x16xf32>
    %431 = vector.extract_strided_slice %79 {offsets = [0, 0], sizes = [2, 16], strides = [1, 1]} : vector<12x16xf32> to vector<2x16xf32>
    %cst_143 = arith.constant dense<0.000000e+00> : vector<2x48xf32>
    %432 = tpu.matmul %431, %34, %cst_143 {dimension_numbers = #tpu.dot_dimension_numbers<[1], [0], [0], [1], [0, 0, 1, 1], [], []>} : vector<2x16xf32>, vector<16x48xf32>, vector<2x48xf32> -> vector<2x48xf32>
    %433 = vector.broadcast %38 : vector<1x48xf32> to vector<2x48xf32>
    %434 = arith.addf %432, %433 : vector<2x48xf32>
    %cst_144 = arith.constant dense<0.000000e+00> : vector<2x48xf32>
    %435 = tpu.matmul %430, %36, %cst_144 {dimension_numbers = #tpu.dot_dimension_numbers<[1], [0], [0], [1], [0, 0, 1, 1], [], []>} : vector<2x16xf32>, vector<16x48xf32>, vector<2x48xf32> -> vector<2x48xf32>
    %436 = vector.broadcast %40 : vector<1x48xf32> to vector<2x48xf32>
    %437 = arith.addf %435, %436 : vector<2x48xf32>
    %438 = vector.extract_strided_slice %434 {offsets = [0, 0], sizes = [2, 32], strides = [1, 1]} : vector<2x48xf32> to vector<2x32xf32>
    %439 = vector.extract_strided_slice %437 {offsets = [0, 0], sizes = [2, 32], strides = [1, 1]} : vector<2x48xf32> to vector<2x32xf32>
    %440 = arith.addf %438, %439 : vector<2x32xf32>
    %cst_145 = arith.constant 5.000000e-01 : f32
    %441 = vector.broadcast %cst_145 : f32 to vector<2x32xf32>
    %442 = arith.mulf %441, %440 : vector<2x32xf32>
    %443 = math.tanh %442 : vector<2x32xf32>
    %cst_146 = arith.constant 5.000000e-01 : f32
    %444 = vector.broadcast %cst_146 : f32 to vector<2x32xf32>
    %445 = arith.mulf %444, %443 : vector<2x32xf32>
    %cst_147 = arith.constant 5.000000e-01 : f32
    %446 = vector.broadcast %cst_147 : f32 to vector<2x32xf32>
    %447 = arith.addf %445, %446 : vector<2x32xf32>
    %448 = vector.extract_strided_slice %447 {offsets = [0, 0], sizes = [2, 16], strides = [1, 1]} : vector<2x32xf32> to vector<2x16xf32>
    %449 = vector.extract_strided_slice %447 {offsets = [0, 16], sizes = [2, 16], strides = [1, 1]} : vector<2x32xf32> to vector<2x16xf32>
    %450 = vector.extract_strided_slice %434 {offsets = [0, 32], sizes = [2, 16], strides = [1, 1]} : vector<2x48xf32> to vector<2x16xf32>
    %451 = vector.extract_strided_slice %437 {offsets = [0, 32], sizes = [2, 16], strides = [1, 1]} : vector<2x48xf32> to vector<2x16xf32>
    %452 = arith.mulf %448, %451 : vector<2x16xf32>
    %453 = arith.addf %450, %452 : vector<2x16xf32>
    %454 = math.tanh %453 : vector<2x16xf32>
    %cst_148 = arith.constant 1.000000e+00 : f32
    %455 = vector.broadcast %cst_148 : f32 to vector<2x16xf32>
    %456 = arith.subf %455, %449 : vector<2x16xf32>
    %457 = arith.mulf %456, %454 : vector<2x16xf32>
    %458 = arith.mulf %449, %430 : vector<2x16xf32>
    %459 = arith.addf %457, %458 : vector<2x16xf32>
    %460 = vector.extract_strided_slice %79 {offsets = [2, 0], sizes = [2, 16], strides = [1, 1]} : vector<12x16xf32> to vector<2x16xf32>
    %cst_149 = arith.constant dense<0.000000e+00> : vector<2x48xf32>
    %461 = tpu.matmul %460, %34, %cst_149 {dimension_numbers = #tpu.dot_dimension_numbers<[1], [0], [0], [1], [0, 0, 1, 1], [], []>} : vector<2x16xf32>, vector<16x48xf32>, vector<2x48xf32> -> vector<2x48xf32>
    %462 = vector.broadcast %38 : vector<1x48xf32> to vector<2x48xf32>
    %463 = arith.addf %461, %462 : vector<2x48xf32>
    %cst_150 = arith.constant dense<0.000000e+00> : vector<2x48xf32>
    %464 = tpu.matmul %459, %36, %cst_150 {dimension_numbers = #tpu.dot_dimension_numbers<[1], [0], [0], [1], [0, 0, 1, 1], [], []>} : vector<2x16xf32>, vector<16x48xf32>, vector<2x48xf32> -> vector<2x48xf32>
    %465 = vector.broadcast %40 : vector<1x48xf32> to vector<2x48xf32>
    %466 = arith.addf %464, %465 : vector<2x48xf32>
    %467 = vector.extract_strided_slice %463 {offsets = [0, 0], sizes = [2, 32], strides = [1, 1]} : vector<2x48xf32> to vector<2x32xf32>
    %468 = vector.extract_strided_slice %466 {offsets = [0, 0], sizes = [2, 32], strides = [1, 1]} : vector<2x48xf32> to vector<2x32xf32>
    %469 = arith.addf %467, %468 : vector<2x32xf32>
    %cst_151 = arith.constant 5.000000e-01 : f32
    %470 = vector.broadcast %cst_151 : f32 to vector<2x32xf32>
    %471 = arith.mulf %470, %469 : vector<2x32xf32>
    %472 = math.tanh %471 : vector<2x32xf32>
    %cst_152 = arith.constant 5.000000e-01 : f32
    %473 = vector.broadcast %cst_152 : f32 to vector<2x32xf32>
    %474 = arith.mulf %473, %472 : vector<2x32xf32>
    %cst_153 = arith.constant 5.000000e-01 : f32
    %475 = vector.broadcast %cst_153 : f32 to vector<2x32xf32>
    %476 = arith.addf %474, %475 : vector<2x32xf32>
    %477 = vector.extract_strided_slice %476 {offsets = [0, 0], sizes = [2, 16], strides = [1, 1]} : vector<2x32xf32> to vector<2x16xf32>
    %478 = vector.extract_strided_slice %476 {offsets = [0, 16], sizes = [2, 16], strides = [1, 1]} : vector<2x32xf32> to vector<2x16xf32>
    %479 = vector.extract_strided_slice %463 {offsets = [0, 32], sizes = [2, 16], strides = [1, 1]} : vector<2x48xf32> to vector<2x16xf32>
    %480 = vector.extract_strided_slice %466 {offsets = [0, 32], sizes = [2, 16], strides = [1, 1]} : vector<2x48xf32> to vector<2x16xf32>
    %481 = arith.mulf %477, %480 : vector<2x16xf32>
    %482 = arith.addf %479, %481 : vector<2x16xf32>
    %483 = math.tanh %482 : vector<2x16xf32>
    %cst_154 = arith.constant 1.000000e+00 : f32
    %484 = vector.broadcast %cst_154 : f32 to vector<2x16xf32>
    %485 = arith.subf %484, %478 : vector<2x16xf32>
    %486 = arith.mulf %485, %483 : vector<2x16xf32>
    %487 = arith.mulf %478, %459 : vector<2x16xf32>
    %488 = arith.addf %486, %487 : vector<2x16xf32>
    %489 = vector.extract_strided_slice %79 {offsets = [4, 0], sizes = [2, 16], strides = [1, 1]} : vector<12x16xf32> to vector<2x16xf32>
    %cst_155 = arith.constant dense<0.000000e+00> : vector<2x48xf32>
    %490 = tpu.matmul %489, %34, %cst_155 {dimension_numbers = #tpu.dot_dimension_numbers<[1], [0], [0], [1], [0, 0, 1, 1], [], []>} : vector<2x16xf32>, vector<16x48xf32>, vector<2x48xf32> -> vector<2x48xf32>
    %491 = vector.broadcast %38 : vector<1x48xf32> to vector<2x48xf32>
    %492 = arith.addf %490, %491 : vector<2x48xf32>
    %cst_156 = arith.constant dense<0.000000e+00> : vector<2x48xf32>
    %493 = tpu.matmul %488, %36, %cst_156 {dimension_numbers = #tpu.dot_dimension_numbers<[1], [0], [0], [1], [0, 0, 1, 1], [], []>} : vector<2x16xf32>, vector<16x48xf32>, vector<2x48xf32> -> vector<2x48xf32>
    %494 = vector.broadcast %40 : vector<1x48xf32> to vector<2x48xf32>
    %495 = arith.addf %493, %494 : vector<2x48xf32>
    %496 = vector.extract_strided_slice %492 {offsets = [0, 0], sizes = [2, 32], strides = [1, 1]} : vector<2x48xf32> to vector<2x32xf32>
    %497 = vector.extract_strided_slice %495 {offsets = [0, 0], sizes = [2, 32], strides = [1, 1]} : vector<2x48xf32> to vector<2x32xf32>
    %498 = arith.addf %496, %497 : vector<2x32xf32>
    %cst_157 = arith.constant 5.000000e-01 : f32
    %499 = vector.broadcast %cst_157 : f32 to vector<2x32xf32>
    %500 = arith.mulf %499, %498 : vector<2x32xf32>
    %501 = math.tanh %500 : vector<2x32xf32>
    %cst_158 = arith.constant 5.000000e-01 : f32
    %502 = vector.broadcast %cst_158 : f32 to vector<2x32xf32>
    %503 = arith.mulf %502, %501 : vector<2x32xf32>
    %cst_159 = arith.constant 5.000000e-01 : f32
    %504 = vector.broadcast %cst_159 : f32 to vector<2x32xf32>
    %505 = arith.addf %503, %504 : vector<2x32xf32>
    %506 = vector.extract_strided_slice %505 {offsets = [0, 0], sizes = [2, 16], strides = [1, 1]} : vector<2x32xf32> to vector<2x16xf32>
    %507 = vector.extract_strided_slice %505 {offsets = [0, 16], sizes = [2, 16], strides = [1, 1]} : vector<2x32xf32> to vector<2x16xf32>
    %508 = vector.extract_strided_slice %492 {offsets = [0, 32], sizes = [2, 16], strides = [1, 1]} : vector<2x48xf32> to vector<2x16xf32>
    %509 = vector.extract_strided_slice %495 {offsets = [0, 32], sizes = [2, 16], strides = [1, 1]} : vector<2x48xf32> to vector<2x16xf32>
    %510 = arith.mulf %506, %509 : vector<2x16xf32>
    %511 = arith.addf %508, %510 : vector<2x16xf32>
    %512 = math.tanh %511 : vector<2x16xf32>
    %cst_160 = arith.constant 1.000000e+00 : f32
    %513 = vector.broadcast %cst_160 : f32 to vector<2x16xf32>
    %514 = arith.subf %513, %507 : vector<2x16xf32>
    %515 = arith.mulf %514, %512 : vector<2x16xf32>
    %516 = arith.mulf %507, %488 : vector<2x16xf32>
    %517 = arith.addf %515, %516 : vector<2x16xf32>
    %518 = vector.extract_strided_slice %79 {offsets = [6, 0], sizes = [2, 16], strides = [1, 1]} : vector<12x16xf32> to vector<2x16xf32>
    %cst_161 = arith.constant dense<0.000000e+00> : vector<2x48xf32>
    %519 = tpu.matmul %518, %34, %cst_161 {dimension_numbers = #tpu.dot_dimension_numbers<[1], [0], [0], [1], [0, 0, 1, 1], [], []>} : vector<2x16xf32>, vector<16x48xf32>, vector<2x48xf32> -> vector<2x48xf32>
    %520 = vector.broadcast %38 : vector<1x48xf32> to vector<2x48xf32>
    %521 = arith.addf %519, %520 : vector<2x48xf32>
    %cst_162 = arith.constant dense<0.000000e+00> : vector<2x48xf32>
    %522 = tpu.matmul %517, %36, %cst_162 {dimension_numbers = #tpu.dot_dimension_numbers<[1], [0], [0], [1], [0, 0, 1, 1], [], []>} : vector<2x16xf32>, vector<16x48xf32>, vector<2x48xf32> -> vector<2x48xf32>
    %523 = vector.broadcast %40 : vector<1x48xf32> to vector<2x48xf32>
    %524 = arith.addf %522, %523 : vector<2x48xf32>
    %525 = vector.extract_strided_slice %521 {offsets = [0, 0], sizes = [2, 32], strides = [1, 1]} : vector<2x48xf32> to vector<2x32xf32>
    %526 = vector.extract_strided_slice %524 {offsets = [0, 0], sizes = [2, 32], strides = [1, 1]} : vector<2x48xf32> to vector<2x32xf32>
    %527 = arith.addf %525, %526 : vector<2x32xf32>
    %cst_163 = arith.constant 5.000000e-01 : f32
    %528 = vector.broadcast %cst_163 : f32 to vector<2x32xf32>
    %529 = arith.mulf %528, %527 : vector<2x32xf32>
    %530 = math.tanh %529 : vector<2x32xf32>
    %cst_164 = arith.constant 5.000000e-01 : f32
    %531 = vector.broadcast %cst_164 : f32 to vector<2x32xf32>
    %532 = arith.mulf %531, %530 : vector<2x32xf32>
    %cst_165 = arith.constant 5.000000e-01 : f32
    %533 = vector.broadcast %cst_165 : f32 to vector<2x32xf32>
    %534 = arith.addf %532, %533 : vector<2x32xf32>
    %535 = vector.extract_strided_slice %534 {offsets = [0, 0], sizes = [2, 16], strides = [1, 1]} : vector<2x32xf32> to vector<2x16xf32>
    %536 = vector.extract_strided_slice %534 {offsets = [0, 16], sizes = [2, 16], strides = [1, 1]} : vector<2x32xf32> to vector<2x16xf32>
    %537 = vector.extract_strided_slice %521 {offsets = [0, 32], sizes = [2, 16], strides = [1, 1]} : vector<2x48xf32> to vector<2x16xf32>
    %538 = vector.extract_strided_slice %524 {offsets = [0, 32], sizes = [2, 16], strides = [1, 1]} : vector<2x48xf32> to vector<2x16xf32>
    %539 = arith.mulf %535, %538 : vector<2x16xf32>
    %540 = arith.addf %537, %539 : vector<2x16xf32>
    %541 = math.tanh %540 : vector<2x16xf32>
    %cst_166 = arith.constant 1.000000e+00 : f32
    %542 = vector.broadcast %cst_166 : f32 to vector<2x16xf32>
    %543 = arith.subf %542, %536 : vector<2x16xf32>
    %544 = arith.mulf %543, %541 : vector<2x16xf32>
    %545 = arith.mulf %536, %517 : vector<2x16xf32>
    %546 = arith.addf %544, %545 : vector<2x16xf32>
    %547 = vector.extract_strided_slice %79 {offsets = [8, 0], sizes = [2, 16], strides = [1, 1]} : vector<12x16xf32> to vector<2x16xf32>
    %cst_167 = arith.constant dense<0.000000e+00> : vector<2x48xf32>
    %548 = tpu.matmul %547, %34, %cst_167 {dimension_numbers = #tpu.dot_dimension_numbers<[1], [0], [0], [1], [0, 0, 1, 1], [], []>} : vector<2x16xf32>, vector<16x48xf32>, vector<2x48xf32> -> vector<2x48xf32>
    %549 = vector.broadcast %38 : vector<1x48xf32> to vector<2x48xf32>
    %550 = arith.addf %548, %549 : vector<2x48xf32>
    %cst_168 = arith.constant dense<0.000000e+00> : vector<2x48xf32>
    %551 = tpu.matmul %546, %36, %cst_168 {dimension_numbers = #tpu.dot_dimension_numbers<[1], [0], [0], [1], [0, 0, 1, 1], [], []>} : vector<2x16xf32>, vector<16x48xf32>, vector<2x48xf32> -> vector<2x48xf32>
    %552 = vector.broadcast %40 : vector<1x48xf32> to vector<2x48xf32>
    %553 = arith.addf %551, %552 : vector<2x48xf32>
    %554 = vector.extract_strided_slice %550 {offsets = [0, 0], sizes = [2, 32], strides = [1, 1]} : vector<2x48xf32> to vector<2x32xf32>
    %555 = vector.extract_strided_slice %553 {offsets = [0, 0], sizes = [2, 32], strides = [1, 1]} : vector<2x48xf32> to vector<2x32xf32>
    %556 = arith.addf %554, %555 : vector<2x32xf32>
    %cst_169 = arith.constant 5.000000e-01 : f32
    %557 = vector.broadcast %cst_169 : f32 to vector<2x32xf32>
    %558 = arith.mulf %557, %556 : vector<2x32xf32>
    %559 = math.tanh %558 : vector<2x32xf32>
    %cst_170 = arith.constant 5.000000e-01 : f32
    %560 = vector.broadcast %cst_170 : f32 to vector<2x32xf32>
    %561 = arith.mulf %560, %559 : vector<2x32xf32>
    %cst_171 = arith.constant 5.000000e-01 : f32
    %562 = vector.broadcast %cst_171 : f32 to vector<2x32xf32>
    %563 = arith.addf %561, %562 : vector<2x32xf32>
    %564 = vector.extract_strided_slice %563 {offsets = [0, 0], sizes = [2, 16], strides = [1, 1]} : vector<2x32xf32> to vector<2x16xf32>
    %565 = vector.extract_strided_slice %563 {offsets = [0, 16], sizes = [2, 16], strides = [1, 1]} : vector<2x32xf32> to vector<2x16xf32>
    %566 = vector.extract_strided_slice %550 {offsets = [0, 32], sizes = [2, 16], strides = [1, 1]} : vector<2x48xf32> to vector<2x16xf32>
    %567 = vector.extract_strided_slice %553 {offsets = [0, 32], sizes = [2, 16], strides = [1, 1]} : vector<2x48xf32> to vector<2x16xf32>
    %568 = arith.mulf %564, %567 : vector<2x16xf32>
    %569 = arith.addf %566, %568 : vector<2x16xf32>
    %570 = math.tanh %569 : vector<2x16xf32>
    %cst_172 = arith.constant 1.000000e+00 : f32
    %571 = vector.broadcast %cst_172 : f32 to vector<2x16xf32>
    %572 = arith.subf %571, %565 : vector<2x16xf32>
    %573 = arith.mulf %572, %570 : vector<2x16xf32>
    %574 = arith.mulf %565, %546 : vector<2x16xf32>
    %575 = arith.addf %573, %574 : vector<2x16xf32>
    %576 = vector.extract_strided_slice %79 {offsets = [10, 0], sizes = [2, 16], strides = [1, 1]} : vector<12x16xf32> to vector<2x16xf32>
    %cst_173 = arith.constant dense<0.000000e+00> : vector<2x48xf32>
    %577 = tpu.matmul %576, %34, %cst_173 {dimension_numbers = #tpu.dot_dimension_numbers<[1], [0], [0], [1], [0, 0, 1, 1], [], []>} : vector<2x16xf32>, vector<16x48xf32>, vector<2x48xf32> -> vector<2x48xf32>
    %578 = vector.broadcast %38 : vector<1x48xf32> to vector<2x48xf32>
    %579 = arith.addf %577, %578 : vector<2x48xf32>
    %cst_174 = arith.constant dense<0.000000e+00> : vector<2x48xf32>
    %580 = tpu.matmul %575, %36, %cst_174 {dimension_numbers = #tpu.dot_dimension_numbers<[1], [0], [0], [1], [0, 0, 1, 1], [], []>} : vector<2x16xf32>, vector<16x48xf32>, vector<2x48xf32> -> vector<2x48xf32>
    %581 = vector.broadcast %40 : vector<1x48xf32> to vector<2x48xf32>
    %582 = arith.addf %580, %581 : vector<2x48xf32>
    %583 = vector.extract_strided_slice %579 {offsets = [0, 0], sizes = [2, 32], strides = [1, 1]} : vector<2x48xf32> to vector<2x32xf32>
    %584 = vector.extract_strided_slice %582 {offsets = [0, 0], sizes = [2, 32], strides = [1, 1]} : vector<2x48xf32> to vector<2x32xf32>
    %585 = arith.addf %583, %584 : vector<2x32xf32>
    %cst_175 = arith.constant 5.000000e-01 : f32
    %586 = vector.broadcast %cst_175 : f32 to vector<2x32xf32>
    %587 = arith.mulf %586, %585 : vector<2x32xf32>
    %588 = math.tanh %587 : vector<2x32xf32>
    %cst_176 = arith.constant 5.000000e-01 : f32
    %589 = vector.broadcast %cst_176 : f32 to vector<2x32xf32>
    %590 = arith.mulf %589, %588 : vector<2x32xf32>
    %cst_177 = arith.constant 5.000000e-01 : f32
    %591 = vector.broadcast %cst_177 : f32 to vector<2x32xf32>
    %592 = arith.addf %590, %591 : vector<2x32xf32>
    %593 = vector.extract_strided_slice %592 {offsets = [0, 0], sizes = [2, 16], strides = [1, 1]} : vector<2x32xf32> to vector<2x16xf32>
    %594 = vector.extract_strided_slice %592 {offsets = [0, 16], sizes = [2, 16], strides = [1, 1]} : vector<2x32xf32> to vector<2x16xf32>
    %595 = vector.extract_strided_slice %579 {offsets = [0, 32], sizes = [2, 16], strides = [1, 1]} : vector<2x48xf32> to vector<2x16xf32>
    %596 = vector.extract_strided_slice %582 {offsets = [0, 32], sizes = [2, 16], strides = [1, 1]} : vector<2x48xf32> to vector<2x16xf32>
    %597 = arith.mulf %593, %596 : vector<2x16xf32>
    %598 = arith.addf %595, %597 : vector<2x16xf32>
    %599 = math.tanh %598 : vector<2x16xf32>
    %cst_178 = arith.constant 1.000000e+00 : f32
    %600 = vector.broadcast %cst_178 : f32 to vector<2x16xf32>
    %601 = arith.subf %600, %594 : vector<2x16xf32>
    %602 = arith.mulf %601, %599 : vector<2x16xf32>
    %603 = arith.mulf %594, %575 : vector<2x16xf32>
    %604 = arith.addf %602, %603 : vector<2x16xf32>
    %605 = tpu.concatenate %313, %604 in 1 : vector<2x16xf32>, vector<2x16xf32> -> vector<2x32xf32>
    %606 = tpu.concatenate %429, %604 in 1 : vector<2x16xf32>, vector<2x16xf32> -> vector<2x32xf32>
    %c28 = arith.constant 28 : index
    %c0_179 = arith.constant 0 : index
    %c0_180 = arith.constant 0 : index
    %607 = vector.load %arg1[%c28, %c0_179, %c0_180] : memref<40x48x96xf32, #tpu.memory_space<vmem>>, vector<1x32x8xf32>
    %608 = vector.shape_cast %607 : vector<1x32x8xf32> to vector<32x8xf32>
    %c29 = arith.constant 29 : index
    %c0_181 = arith.constant 0 : index
    %c0_182 = arith.constant 0 : index
    %609 = vector.load %arg1[%c29, %c0_181, %c0_182] : memref<40x48x96xf32, #tpu.memory_space<vmem>>, vector<1x1x8xf32>
    %610 = vector.shape_cast %609 : vector<1x1x8xf32> to vector<1x8xf32>
    %cst_183 = arith.constant dense<0.000000e+00> : vector<2x8xf32>
    %611 = tpu.matmul %605, %608, %cst_183 {dimension_numbers = #tpu.dot_dimension_numbers<[1], [0], [0], [1], [0, 0, 1, 1], [], []>} : vector<2x32xf32>, vector<32x8xf32>, vector<2x8xf32> -> vector<2x8xf32>
    %612 = vector.broadcast %610 : vector<1x8xf32> to vector<2x8xf32>
    %613 = arith.addf %611, %612 : vector<2x8xf32>
    %c30 = arith.constant 30 : index
    %c0_184 = arith.constant 0 : index
    %c0_185 = arith.constant 0 : index
    %614 = vector.load %arg1[%c30, %c0_184, %c0_185] : memref<40x48x96xf32, #tpu.memory_space<vmem>>, vector<1x32x8xf32>
    %615 = vector.shape_cast %614 : vector<1x32x8xf32> to vector<32x8xf32>
    %c31 = arith.constant 31 : index
    %c0_186 = arith.constant 0 : index
    %c0_187 = arith.constant 0 : index
    %616 = vector.load %arg1[%c31, %c0_186, %c0_187] : memref<40x48x96xf32, #tpu.memory_space<vmem>>, vector<1x1x8xf32>
    %617 = vector.shape_cast %616 : vector<1x1x8xf32> to vector<1x8xf32>
    %cst_188 = arith.constant dense<0.000000e+00> : vector<2x8xf32>
    %618 = tpu.matmul %605, %615, %cst_188 {dimension_numbers = #tpu.dot_dimension_numbers<[1], [0], [0], [1], [0, 0, 1, 1], [], []>} : vector<2x32xf32>, vector<32x8xf32>, vector<2x8xf32> -> vector<2x8xf32>
    %619 = vector.broadcast %617 : vector<1x8xf32> to vector<2x8xf32>
    %620 = arith.addf %618, %619 : vector<2x8xf32>
    %cst_189 = arith.constant 0.000000e+00 : f32
    %621 = vector.broadcast %cst_189 : f32 to vector<2x8xf32>
    %622 = arith.maximumf %620, %621 : vector<2x8xf32>
    %623 = math.absf %620 : vector<2x8xf32>
    %cst_190 = arith.constant 0.000000e+00 : f32
    %624 = vector.broadcast %cst_190 : f32 to vector<2x8xf32>
    %625 = arith.subf %624, %623 : vector<2x8xf32>
    %626 = math.exp %625 : vector<2x8xf32>
    %cst_191 = arith.constant 1.000000e+00 : f32
    %627 = vector.broadcast %cst_191 : f32 to vector<2x8xf32>
    %628 = arith.addf %627, %626 : vector<2x8xf32>
    %629 = math.log %628 : vector<2x8xf32>
    %630 = arith.addf %622, %629 : vector<2x8xf32>
    %c32 = arith.constant 32 : index
    %c0_192 = arith.constant 0 : index
    %c0_193 = arith.constant 0 : index
    %631 = vector.load %arg1[%c32, %c0_192, %c0_193] : memref<40x48x96xf32, #tpu.memory_space<vmem>>, vector<1x32x8xf32>
    %632 = vector.shape_cast %631 : vector<1x32x8xf32> to vector<32x8xf32>
    %c33 = arith.constant 33 : index
    %c0_194 = arith.constant 0 : index
    %c0_195 = arith.constant 0 : index
    %633 = vector.load %arg1[%c33, %c0_194, %c0_195] : memref<40x48x96xf32, #tpu.memory_space<vmem>>, vector<1x1x8xf32>
    %634 = vector.shape_cast %633 : vector<1x1x8xf32> to vector<1x8xf32>
    %cst_196 = arith.constant dense<0.000000e+00> : vector<2x8xf32>
    %635 = tpu.matmul %606, %632, %cst_196 {dimension_numbers = #tpu.dot_dimension_numbers<[1], [0], [0], [1], [0, 0, 1, 1], [], []>} : vector<2x32xf32>, vector<32x8xf32>, vector<2x8xf32> -> vector<2x8xf32>
    %636 = vector.broadcast %634 : vector<1x8xf32> to vector<2x8xf32>
    %637 = arith.addf %635, %636 : vector<2x8xf32>
    %c34 = arith.constant 34 : index
    %c0_197 = arith.constant 0 : index
    %c0_198 = arith.constant 0 : index
    %638 = vector.load %arg1[%c34, %c0_197, %c0_198] : memref<40x48x96xf32, #tpu.memory_space<vmem>>, vector<1x32x8xf32>
    %639 = vector.shape_cast %638 : vector<1x32x8xf32> to vector<32x8xf32>
    %c35 = arith.constant 35 : index
    %c0_199 = arith.constant 0 : index
    %c0_200 = arith.constant 0 : index
    %640 = vector.load %arg1[%c35, %c0_199, %c0_200] : memref<40x48x96xf32, #tpu.memory_space<vmem>>, vector<1x1x8xf32>
    %641 = vector.shape_cast %640 : vector<1x1x8xf32> to vector<1x8xf32>
    %cst_201 = arith.constant dense<0.000000e+00> : vector<2x8xf32>
    %642 = tpu.matmul %606, %639, %cst_201 {dimension_numbers = #tpu.dot_dimension_numbers<[1], [0], [0], [1], [0, 0, 1, 1], [], []>} : vector<2x32xf32>, vector<32x8xf32>, vector<2x8xf32> -> vector<2x8xf32>
    %643 = vector.broadcast %641 : vector<1x8xf32> to vector<2x8xf32>
    %644 = arith.addf %642, %643 : vector<2x8xf32>
    %cst_202 = arith.constant 0.000000e+00 : f32
    %645 = vector.broadcast %cst_202 : f32 to vector<2x8xf32>
    %646 = arith.maximumf %644, %645 : vector<2x8xf32>
    %647 = math.absf %644 : vector<2x8xf32>
    %cst_203 = arith.constant 0.000000e+00 : f32
    %648 = vector.broadcast %cst_203 : f32 to vector<2x8xf32>
    %649 = arith.subf %648, %647 : vector<2x8xf32>
    %650 = math.exp %649 : vector<2x8xf32>
    %cst_204 = arith.constant 1.000000e+00 : f32
    %651 = vector.broadcast %cst_204 : f32 to vector<2x8xf32>
    %652 = arith.addf %651, %650 : vector<2x8xf32>
    %653 = math.log %652 : vector<2x8xf32>
    %654 = arith.addf %646, %653 : vector<2x8xf32>
    %655 = math.log %630 : vector<2x8xf32>
    %656 = math.log %654 : vector<2x8xf32>
    %657 = arith.subf %655, %656 : vector<2x8xf32>
    %658 = arith.mulf %654, %654 : vector<2x8xf32>
    %659 = arith.subf %637, %613 : vector<2x8xf32>
    %660 = arith.mulf %659, %659 : vector<2x8xf32>
    %661 = arith.addf %658, %660 : vector<2x8xf32>
    %cst_205 = arith.constant 2.000000e+00 : f32
    %662 = vector.broadcast %cst_205 : f32 to vector<2x8xf32>
    %663 = arith.mulf %662, %630 : vector<2x8xf32>
    %664 = arith.mulf %663, %630 : vector<2x8xf32>
    %665 = arith.divf %661, %664 : vector<2x8xf32>
    %666 = arith.addf %657, %665 : vector<2x8xf32>
    %cst_206 = arith.constant 5.000000e-01 : f32
    %667 = vector.broadcast %cst_206 : f32 to vector<2x8xf32>
    %668 = arith.subf %666, %667 : vector<2x8xf32>
    %669 = arith.mulf %654, %4 : vector<2x8xf32>
    %670 = arith.addf %637, %669 : vector<2x8xf32>
    %c36 = arith.constant 36 : index
    %c0_207 = arith.constant 0 : index
    %c0_208 = arith.constant 0 : index
    %671 = vector.load %arg1[%c36, %c0_207, %c0_208] : memref<40x48x96xf32, #tpu.memory_space<vmem>>, vector<1x8x16xf32>
    %672 = vector.shape_cast %671 : vector<1x8x16xf32> to vector<8x16xf32>
    %c37 = arith.constant 37 : index
    %c0_209 = arith.constant 0 : index
    %c0_210 = arith.constant 0 : index
    %673 = vector.load %arg1[%c37, %c0_209, %c0_210] : memref<40x48x96xf32, #tpu.memory_space<vmem>>, vector<1x1x16xf32>
    %674 = vector.shape_cast %673 : vector<1x1x16xf32> to vector<1x16xf32>
    %cst_211 = arith.constant dense<0.000000e+00> : vector<2x16xf32>
    %675 = tpu.matmul %670, %672, %cst_211 {dimension_numbers = #tpu.dot_dimension_numbers<[1], [0], [0], [1], [0, 0, 1, 1], [], []>} : vector<2x8xf32>, vector<8x16xf32>, vector<2x16xf32> -> vector<2x16xf32>
    %676 = vector.broadcast %674 : vector<1x16xf32> to vector<2x16xf32>
    %677 = arith.addf %675, %676 : vector<2x16xf32>
    %678 = tpu.concatenate %605, %677 in 1 : vector<2x32xf32>, vector<2x16xf32> -> vector<2x48xf32>
    %c38 = arith.constant 38 : index
    %c0_212 = arith.constant 0 : index
    %c0_213 = arith.constant 0 : index
    %679 = vector.load %arg1[%c38, %c0_212, %c0_213] : memref<40x48x96xf32, #tpu.memory_space<vmem>>, vector<1x48x32xf32>
    %680 = vector.shape_cast %679 : vector<1x48x32xf32> to vector<48x32xf32>
    %c39 = arith.constant 39 : index
    %c0_214 = arith.constant 0 : index
    %c0_215 = arith.constant 0 : index
    %681 = vector.load %arg1[%c39, %c0_214, %c0_215] : memref<40x48x96xf32, #tpu.memory_space<vmem>>, vector<1x1x32xf32>
    %682 = vector.shape_cast %681 : vector<1x1x32xf32> to vector<1x32xf32>
    %cst_216 = arith.constant dense<0.000000e+00> : vector<2x32xf32>
    %683 = tpu.matmul %678, %680, %cst_216 {dimension_numbers = #tpu.dot_dimension_numbers<[1], [0], [0], [1], [0, 0, 1, 1], [], []>} : vector<2x48xf32>, vector<48x32xf32>, vector<2x32xf32> -> vector<2x32xf32>
    %684 = vector.broadcast %682 : vector<1x32xf32> to vector<2x32xf32>
    %685 = arith.addf %683, %684 : vector<2x32xf32>
    %cst_217 = arith.constant 0.000000e+00 : f32
    %686 = vector.broadcast %cst_217 : f32 to vector<2x3xf32>
    %687 = vector.extract_strided_slice %68 {offsets = [14, 0], sizes = [2, 16], strides = [1, 1]} : vector<24x16xf32> to vector<2x16xf32>
    %688 = vector.extract_strided_slice %76 {offsets = [16, 0], sizes = [2, 16], strides = [1, 1]} : vector<24x16xf32> to vector<2x16xf32>
    %689 = tpu.concatenate %687, %688 in 1 : vector<2x16xf32>, vector<2x16xf32> -> vector<2x32xf32>
    %cst_218 = arith.constant dense<0.000000e+00> : vector<2x96xf32>
    %690 = tpu.matmul %689, %42, %cst_218 {dimension_numbers = #tpu.dot_dimension_numbers<[1], [0], [0], [1], [0, 0, 1, 1], [], []>} : vector<2x32xf32>, vector<32x96xf32>, vector<2x96xf32> -> vector<2x96xf32>
    %691 = vector.broadcast %46 : vector<1x96xf32> to vector<2x96xf32>
    %692 = arith.addf %690, %691 : vector<2x96xf32>
    %cst_219 = arith.constant dense<0.000000e+00> : vector<2x96xf32>
    %693 = tpu.matmul %685, %44, %cst_219 {dimension_numbers = #tpu.dot_dimension_numbers<[1], [0], [0], [1], [0, 0, 1, 1], [], []>} : vector<2x32xf32>, vector<32x96xf32>, vector<2x96xf32> -> vector<2x96xf32>
    %694 = vector.broadcast %48 : vector<1x96xf32> to vector<2x96xf32>
    %695 = arith.addf %693, %694 : vector<2x96xf32>
    %696 = vector.extract_strided_slice %692 {offsets = [0, 0], sizes = [2, 64], strides = [1, 1]} : vector<2x96xf32> to vector<2x64xf32>
    %697 = vector.extract_strided_slice %695 {offsets = [0, 0], sizes = [2, 64], strides = [1, 1]} : vector<2x96xf32> to vector<2x64xf32>
    %698 = arith.addf %696, %697 : vector<2x64xf32>
    %cst_220 = arith.constant 5.000000e-01 : f32
    %699 = vector.broadcast %cst_220 : f32 to vector<2x64xf32>
    %700 = arith.mulf %699, %698 : vector<2x64xf32>
    %701 = math.tanh %700 : vector<2x64xf32>
    %cst_221 = arith.constant 5.000000e-01 : f32
    %702 = vector.broadcast %cst_221 : f32 to vector<2x64xf32>
    %703 = arith.mulf %702, %701 : vector<2x64xf32>
    %cst_222 = arith.constant 5.000000e-01 : f32
    %704 = vector.broadcast %cst_222 : f32 to vector<2x64xf32>
    %705 = arith.addf %703, %704 : vector<2x64xf32>
    %706 = vector.extract_strided_slice %705 {offsets = [0, 0], sizes = [2, 32], strides = [1, 1]} : vector<2x64xf32> to vector<2x32xf32>
    %707 = vector.extract_strided_slice %705 {offsets = [0, 32], sizes = [2, 32], strides = [1, 1]} : vector<2x64xf32> to vector<2x32xf32>
    %708 = vector.extract_strided_slice %692 {offsets = [0, 64], sizes = [2, 32], strides = [1, 1]} : vector<2x96xf32> to vector<2x32xf32>
    %709 = vector.extract_strided_slice %695 {offsets = [0, 64], sizes = [2, 32], strides = [1, 1]} : vector<2x96xf32> to vector<2x32xf32>
    %710 = arith.mulf %706, %709 : vector<2x32xf32>
    %711 = arith.addf %708, %710 : vector<2x32xf32>
    %712 = math.tanh %711 : vector<2x32xf32>
    %cst_223 = arith.constant 1.000000e+00 : f32
    %713 = vector.broadcast %cst_223 : f32 to vector<2x32xf32>
    %714 = arith.subf %713, %707 : vector<2x32xf32>
    %715 = arith.mulf %714, %712 : vector<2x32xf32>
    %716 = arith.mulf %707, %685 : vector<2x32xf32>
    %717 = arith.addf %715, %716 : vector<2x32xf32>
    %cst_224 = arith.constant dense<0.000000e+00> : vector<2x16xf32>
    %718 = tpu.matmul %717, %50, %cst_224 {dimension_numbers = #tpu.dot_dimension_numbers<[1], [0], [0], [1], [0, 0, 1, 1], [], []>} : vector<2x32xf32>, vector<32x16xf32>, vector<2x16xf32> -> vector<2x16xf32>
    %719 = vector.broadcast %52 : vector<1x16xf32> to vector<2x16xf32>
    %720 = arith.addf %718, %719 : vector<2x16xf32>
    %cst_225 = arith.constant 0.000000e+00 : f32
    %721 = vector.broadcast %cst_225 : f32 to vector<2x16xf32>
    %722 = arith.maximumf %720, %721 : vector<2x16xf32>
    %cst_226 = arith.constant dense<0.000000e+00> : vector<2x3xf32>
    %723 = tpu.matmul %722, %54, %cst_226 {dimension_numbers = #tpu.dot_dimension_numbers<[1], [0], [0], [1], [0, 0, 1, 1], [], []>} : vector<2x16xf32>, vector<16x3xf32>, vector<2x3xf32> -> vector<2x3xf32>
    %724 = vector.broadcast %56 : vector<1x3xf32> to vector<2x3xf32>
    %725 = arith.addf %723, %724 : vector<2x3xf32>
    %cst_227 = arith.constant dense<0.000000e+00> : vector<2x3xf32>
    %726 = tpu.matmul %717, %58, %cst_227 {dimension_numbers = #tpu.dot_dimension_numbers<[1], [0], [0], [1], [0, 0, 1, 1], [], []>} : vector<2x32xf32>, vector<32x3xf32>, vector<2x3xf32> -> vector<2x3xf32>
    %727 = vector.broadcast %60 : vector<1x3xf32> to vector<2x3xf32>
    %728 = arith.addf %726, %727 : vector<2x3xf32>
    %cst_228 = arith.constant 0.000000e+00 : f32
    %729 = vector.broadcast %cst_228 : f32 to vector<2x3xf32>
    %730 = arith.maximumf %728, %729 : vector<2x3xf32>
    %731 = math.absf %728 : vector<2x3xf32>
    %cst_229 = arith.constant 0.000000e+00 : f32
    %732 = vector.broadcast %cst_229 : f32 to vector<2x3xf32>
    %733 = arith.subf %732, %731 : vector<2x3xf32>
    %734 = math.exp %733 : vector<2x3xf32>
    %cst_230 = arith.constant 1.000000e+00 : f32
    %735 = vector.broadcast %cst_230 : f32 to vector<2x3xf32>
    %736 = arith.addf %735, %734 : vector<2x3xf32>
    %737 = math.log %736 : vector<2x3xf32>
    %738 = arith.addf %730, %737 : vector<2x3xf32>
    %cst_231 = arith.constant 1.000000e-01 : f32
    %739 = vector.broadcast %cst_231 : f32 to vector<2x3xf32>
    %740 = arith.addf %738, %739 : vector<2x3xf32>
    %741 = vector.extract_strided_slice %0 {offsets = [16, 0], sizes = [2, 3], strides = [1, 1]} : vector<24x3xf32> to vector<2x3xf32>
    %742 = arith.subf %741, %725 : vector<2x3xf32>
    %743 = tpu.reciprocal %740 {approx = true} : vector<2x3xf32> -> vector<2x3xf32>
    %744 = arith.mulf %742, %743 : vector<2x3xf32>
    %cst_232 = arith.constant -5.000000e-01 : f32
    %745 = vector.broadcast %cst_232 : f32 to vector<2x3xf32>
    %746 = arith.mulf %745, %744 : vector<2x3xf32>
    %747 = arith.mulf %746, %744 : vector<2x3xf32>
    %748 = math.log %740 : vector<2x3xf32>
    %749 = arith.subf %747, %748 : vector<2x3xf32>
    %cst_233 = arith.constant 0.918938517 : f32
    %750 = vector.broadcast %cst_233 : f32 to vector<2x3xf32>
    %751 = arith.subf %749, %750 : vector<2x3xf32>
    %752 = arith.addf %686, %751 : vector<2x3xf32>
    %753 = vector.extract_strided_slice %3 {offsets = [0, 0], sizes = [2, 3], strides = [1, 1]} : vector<8x3xf32> to vector<2x3xf32>
    %754 = arith.mulf %740, %753 : vector<2x3xf32>
    %755 = arith.addf %725, %754 : vector<2x3xf32>
    %cst_234 = arith.constant dense<0.000000e+00> : vector<2x16xf32>
    %756 = tpu.matmul %755, %6, %cst_234 {dimension_numbers = #tpu.dot_dimension_numbers<[1], [0], [0], [1], [0, 0, 1, 1], [], []>} : vector<2x3xf32>, vector<3x16xf32>, vector<2x16xf32> -> vector<2x16xf32>
    %757 = vector.broadcast %8 : vector<1x16xf32> to vector<2x16xf32>
    %758 = arith.addf %756, %757 : vector<2x16xf32>
    %cst_235 = arith.constant 0.000000e+00 : f32
    %759 = vector.broadcast %cst_235 : f32 to vector<2x16xf32>
    %760 = arith.maximumf %758, %759 : vector<2x16xf32>
    %cst_236 = arith.constant dense<0.000000e+00> : vector<2x16xf32>
    %761 = tpu.matmul %760, %10, %cst_236 {dimension_numbers = #tpu.dot_dimension_numbers<[1], [0], [0], [1], [0, 0, 1, 1], [], []>} : vector<2x16xf32>, vector<16x16xf32>, vector<2x16xf32> -> vector<2x16xf32>
    %762 = vector.broadcast %12 : vector<1x16xf32> to vector<2x16xf32>
    %763 = arith.addf %761, %762 : vector<2x16xf32>
    %764 = vector.extract_strided_slice %76 {offsets = [18, 0], sizes = [2, 16], strides = [1, 1]} : vector<24x16xf32> to vector<2x16xf32>
    %765 = tpu.concatenate %763, %764 in 1 : vector<2x16xf32>, vector<2x16xf32> -> vector<2x32xf32>
    %cst_237 = arith.constant dense<0.000000e+00> : vector<2x96xf32>
    %766 = tpu.matmul %765, %42, %cst_237 {dimension_numbers = #tpu.dot_dimension_numbers<[1], [0], [0], [1], [0, 0, 1, 1], [], []>} : vector<2x32xf32>, vector<32x96xf32>, vector<2x96xf32> -> vector<2x96xf32>
    %767 = vector.broadcast %46 : vector<1x96xf32> to vector<2x96xf32>
    %768 = arith.addf %766, %767 : vector<2x96xf32>
    %cst_238 = arith.constant dense<0.000000e+00> : vector<2x96xf32>
    %769 = tpu.matmul %717, %44, %cst_238 {dimension_numbers = #tpu.dot_dimension_numbers<[1], [0], [0], [1], [0, 0, 1, 1], [], []>} : vector<2x32xf32>, vector<32x96xf32>, vector<2x96xf32> -> vector<2x96xf32>
    %770 = vector.broadcast %48 : vector<1x96xf32> to vector<2x96xf32>
    %771 = arith.addf %769, %770 : vector<2x96xf32>
    %772 = vector.extract_strided_slice %768 {offsets = [0, 0], sizes = [2, 64], strides = [1, 1]} : vector<2x96xf32> to vector<2x64xf32>
    %773 = vector.extract_strided_slice %771 {offsets = [0, 0], sizes = [2, 64], strides = [1, 1]} : vector<2x96xf32> to vector<2x64xf32>
    %774 = arith.addf %772, %773 : vector<2x64xf32>
    %cst_239 = arith.constant 5.000000e-01 : f32
    %775 = vector.broadcast %cst_239 : f32 to vector<2x64xf32>
    %776 = arith.mulf %775, %774 : vector<2x64xf32>
    %777 = math.tanh %776 : vector<2x64xf32>
    %cst_240 = arith.constant 5.000000e-01 : f32
    %778 = vector.broadcast %cst_240 : f32 to vector<2x64xf32>
    %779 = arith.mulf %778, %777 : vector<2x64xf32>
    %cst_241 = arith.constant 5.000000e-01 : f32
    %780 = vector.broadcast %cst_241 : f32 to vector<2x64xf32>
    %781 = arith.addf %779, %780 : vector<2x64xf32>
    %782 = vector.extract_strided_slice %781 {offsets = [0, 0], sizes = [2, 32], strides = [1, 1]} : vector<2x64xf32> to vector<2x32xf32>
    %783 = vector.extract_strided_slice %781 {offsets = [0, 32], sizes = [2, 32], strides = [1, 1]} : vector<2x64xf32> to vector<2x32xf32>
    %784 = vector.extract_strided_slice %768 {offsets = [0, 64], sizes = [2, 32], strides = [1, 1]} : vector<2x96xf32> to vector<2x32xf32>
    %785 = vector.extract_strided_slice %771 {offsets = [0, 64], sizes = [2, 32], strides = [1, 1]} : vector<2x96xf32> to vector<2x32xf32>
    %786 = arith.mulf %782, %785 : vector<2x32xf32>
    %787 = arith.addf %784, %786 : vector<2x32xf32>
    %788 = math.tanh %787 : vector<2x32xf32>
    %cst_242 = arith.constant 1.000000e+00 : f32
    %789 = vector.broadcast %cst_242 : f32 to vector<2x32xf32>
    %790 = arith.subf %789, %783 : vector<2x32xf32>
    %791 = arith.mulf %790, %788 : vector<2x32xf32>
    %792 = arith.mulf %783, %717 : vector<2x32xf32>
    %793 = arith.addf %791, %792 : vector<2x32xf32>
    %cst_243 = arith.constant dense<0.000000e+00> : vector<2x16xf32>
    %794 = tpu.matmul %793, %50, %cst_243 {dimension_numbers = #tpu.dot_dimension_numbers<[1], [0], [0], [1], [0, 0, 1, 1], [], []>} : vector<2x32xf32>, vector<32x16xf32>, vector<2x16xf32> -> vector<2x16xf32>
    %795 = vector.broadcast %52 : vector<1x16xf32> to vector<2x16xf32>
    %796 = arith.addf %794, %795 : vector<2x16xf32>
    %cst_244 = arith.constant 0.000000e+00 : f32
    %797 = vector.broadcast %cst_244 : f32 to vector<2x16xf32>
    %798 = arith.maximumf %796, %797 : vector<2x16xf32>
    %cst_245 = arith.constant dense<0.000000e+00> : vector<2x3xf32>
    %799 = tpu.matmul %798, %54, %cst_245 {dimension_numbers = #tpu.dot_dimension_numbers<[1], [0], [0], [1], [0, 0, 1, 1], [], []>} : vector<2x16xf32>, vector<16x3xf32>, vector<2x3xf32> -> vector<2x3xf32>
    %800 = vector.broadcast %56 : vector<1x3xf32> to vector<2x3xf32>
    %801 = arith.addf %799, %800 : vector<2x3xf32>
    %cst_246 = arith.constant dense<0.000000e+00> : vector<2x3xf32>
    %802 = tpu.matmul %793, %58, %cst_246 {dimension_numbers = #tpu.dot_dimension_numbers<[1], [0], [0], [1], [0, 0, 1, 1], [], []>} : vector<2x32xf32>, vector<32x3xf32>, vector<2x3xf32> -> vector<2x3xf32>
    %803 = vector.broadcast %60 : vector<1x3xf32> to vector<2x3xf32>
    %804 = arith.addf %802, %803 : vector<2x3xf32>
    %cst_247 = arith.constant 0.000000e+00 : f32
    %805 = vector.broadcast %cst_247 : f32 to vector<2x3xf32>
    %806 = arith.maximumf %804, %805 : vector<2x3xf32>
    %807 = math.absf %804 : vector<2x3xf32>
    %cst_248 = arith.constant 0.000000e+00 : f32
    %808 = vector.broadcast %cst_248 : f32 to vector<2x3xf32>
    %809 = arith.subf %808, %807 : vector<2x3xf32>
    %810 = math.exp %809 : vector<2x3xf32>
    %cst_249 = arith.constant 1.000000e+00 : f32
    %811 = vector.broadcast %cst_249 : f32 to vector<2x3xf32>
    %812 = arith.addf %811, %810 : vector<2x3xf32>
    %813 = math.log %812 : vector<2x3xf32>
    %814 = arith.addf %806, %813 : vector<2x3xf32>
    %cst_250 = arith.constant 1.000000e-01 : f32
    %815 = vector.broadcast %cst_250 : f32 to vector<2x3xf32>
    %816 = arith.addf %814, %815 : vector<2x3xf32>
    %817 = vector.extract_strided_slice %0 {offsets = [18, 0], sizes = [2, 3], strides = [1, 1]} : vector<24x3xf32> to vector<2x3xf32>
    %818 = arith.subf %817, %801 : vector<2x3xf32>
    %819 = tpu.reciprocal %816 {approx = true} : vector<2x3xf32> -> vector<2x3xf32>
    %820 = arith.mulf %818, %819 : vector<2x3xf32>
    %cst_251 = arith.constant -5.000000e-01 : f32
    %821 = vector.broadcast %cst_251 : f32 to vector<2x3xf32>
    %822 = arith.mulf %821, %820 : vector<2x3xf32>
    %823 = arith.mulf %822, %820 : vector<2x3xf32>
    %824 = math.log %816 : vector<2x3xf32>
    %825 = arith.subf %823, %824 : vector<2x3xf32>
    %cst_252 = arith.constant 0.918938517 : f32
    %826 = vector.broadcast %cst_252 : f32 to vector<2x3xf32>
    %827 = arith.subf %825, %826 : vector<2x3xf32>
    %828 = arith.addf %752, %827 : vector<2x3xf32>
    %829 = vector.extract_strided_slice %3 {offsets = [2, 0], sizes = [2, 3], strides = [1, 1]} : vector<8x3xf32> to vector<2x3xf32>
    %830 = arith.mulf %816, %829 : vector<2x3xf32>
    %831 = arith.addf %801, %830 : vector<2x3xf32>
    %cst_253 = arith.constant dense<0.000000e+00> : vector<2x16xf32>
    %832 = tpu.matmul %831, %6, %cst_253 {dimension_numbers = #tpu.dot_dimension_numbers<[1], [0], [0], [1], [0, 0, 1, 1], [], []>} : vector<2x3xf32>, vector<3x16xf32>, vector<2x16xf32> -> vector<2x16xf32>
    %833 = vector.broadcast %8 : vector<1x16xf32> to vector<2x16xf32>
    %834 = arith.addf %832, %833 : vector<2x16xf32>
    %cst_254 = arith.constant 0.000000e+00 : f32
    %835 = vector.broadcast %cst_254 : f32 to vector<2x16xf32>
    %836 = arith.maximumf %834, %835 : vector<2x16xf32>
    %cst_255 = arith.constant dense<0.000000e+00> : vector<2x16xf32>
    %837 = tpu.matmul %836, %10, %cst_255 {dimension_numbers = #tpu.dot_dimension_numbers<[1], [0], [0], [1], [0, 0, 1, 1], [], []>} : vector<2x16xf32>, vector<16x16xf32>, vector<2x16xf32> -> vector<2x16xf32>
    %838 = vector.broadcast %12 : vector<1x16xf32> to vector<2x16xf32>
    %839 = arith.addf %837, %838 : vector<2x16xf32>
    %840 = vector.extract_strided_slice %76 {offsets = [20, 0], sizes = [2, 16], strides = [1, 1]} : vector<24x16xf32> to vector<2x16xf32>
    %841 = tpu.concatenate %839, %840 in 1 : vector<2x16xf32>, vector<2x16xf32> -> vector<2x32xf32>
    %cst_256 = arith.constant dense<0.000000e+00> : vector<2x96xf32>
    %842 = tpu.matmul %841, %42, %cst_256 {dimension_numbers = #tpu.dot_dimension_numbers<[1], [0], [0], [1], [0, 0, 1, 1], [], []>} : vector<2x32xf32>, vector<32x96xf32>, vector<2x96xf32> -> vector<2x96xf32>
    %843 = vector.broadcast %46 : vector<1x96xf32> to vector<2x96xf32>
    %844 = arith.addf %842, %843 : vector<2x96xf32>
    %cst_257 = arith.constant dense<0.000000e+00> : vector<2x96xf32>
    %845 = tpu.matmul %793, %44, %cst_257 {dimension_numbers = #tpu.dot_dimension_numbers<[1], [0], [0], [1], [0, 0, 1, 1], [], []>} : vector<2x32xf32>, vector<32x96xf32>, vector<2x96xf32> -> vector<2x96xf32>
    %846 = vector.broadcast %48 : vector<1x96xf32> to vector<2x96xf32>
    %847 = arith.addf %845, %846 : vector<2x96xf32>
    %848 = vector.extract_strided_slice %844 {offsets = [0, 0], sizes = [2, 64], strides = [1, 1]} : vector<2x96xf32> to vector<2x64xf32>
    %849 = vector.extract_strided_slice %847 {offsets = [0, 0], sizes = [2, 64], strides = [1, 1]} : vector<2x96xf32> to vector<2x64xf32>
    %850 = arith.addf %848, %849 : vector<2x64xf32>
    %cst_258 = arith.constant 5.000000e-01 : f32
    %851 = vector.broadcast %cst_258 : f32 to vector<2x64xf32>
    %852 = arith.mulf %851, %850 : vector<2x64xf32>
    %853 = math.tanh %852 : vector<2x64xf32>
    %cst_259 = arith.constant 5.000000e-01 : f32
    %854 = vector.broadcast %cst_259 : f32 to vector<2x64xf32>
    %855 = arith.mulf %854, %853 : vector<2x64xf32>
    %cst_260 = arith.constant 5.000000e-01 : f32
    %856 = vector.broadcast %cst_260 : f32 to vector<2x64xf32>
    %857 = arith.addf %855, %856 : vector<2x64xf32>
    %858 = vector.extract_strided_slice %857 {offsets = [0, 0], sizes = [2, 32], strides = [1, 1]} : vector<2x64xf32> to vector<2x32xf32>
    %859 = vector.extract_strided_slice %857 {offsets = [0, 32], sizes = [2, 32], strides = [1, 1]} : vector<2x64xf32> to vector<2x32xf32>
    %860 = vector.extract_strided_slice %844 {offsets = [0, 64], sizes = [2, 32], strides = [1, 1]} : vector<2x96xf32> to vector<2x32xf32>
    %861 = vector.extract_strided_slice %847 {offsets = [0, 64], sizes = [2, 32], strides = [1, 1]} : vector<2x96xf32> to vector<2x32xf32>
    %862 = arith.mulf %858, %861 : vector<2x32xf32>
    %863 = arith.addf %860, %862 : vector<2x32xf32>
    %864 = math.tanh %863 : vector<2x32xf32>
    %cst_261 = arith.constant 1.000000e+00 : f32
    %865 = vector.broadcast %cst_261 : f32 to vector<2x32xf32>
    %866 = arith.subf %865, %859 : vector<2x32xf32>
    %867 = arith.mulf %866, %864 : vector<2x32xf32>
    %868 = arith.mulf %859, %793 : vector<2x32xf32>
    %869 = arith.addf %867, %868 : vector<2x32xf32>
    %cst_262 = arith.constant dense<0.000000e+00> : vector<2x16xf32>
    %870 = tpu.matmul %869, %50, %cst_262 {dimension_numbers = #tpu.dot_dimension_numbers<[1], [0], [0], [1], [0, 0, 1, 1], [], []>} : vector<2x32xf32>, vector<32x16xf32>, vector<2x16xf32> -> vector<2x16xf32>
    %871 = vector.broadcast %52 : vector<1x16xf32> to vector<2x16xf32>
    %872 = arith.addf %870, %871 : vector<2x16xf32>
    %cst_263 = arith.constant 0.000000e+00 : f32
    %873 = vector.broadcast %cst_263 : f32 to vector<2x16xf32>
    %874 = arith.maximumf %872, %873 : vector<2x16xf32>
    %cst_264 = arith.constant dense<0.000000e+00> : vector<2x3xf32>
    %875 = tpu.matmul %874, %54, %cst_264 {dimension_numbers = #tpu.dot_dimension_numbers<[1], [0], [0], [1], [0, 0, 1, 1], [], []>} : vector<2x16xf32>, vector<16x3xf32>, vector<2x3xf32> -> vector<2x3xf32>
    %876 = vector.broadcast %56 : vector<1x3xf32> to vector<2x3xf32>
    %877 = arith.addf %875, %876 : vector<2x3xf32>
    %cst_265 = arith.constant dense<0.000000e+00> : vector<2x3xf32>
    %878 = tpu.matmul %869, %58, %cst_265 {dimension_numbers = #tpu.dot_dimension_numbers<[1], [0], [0], [1], [0, 0, 1, 1], [], []>} : vector<2x32xf32>, vector<32x3xf32>, vector<2x3xf32> -> vector<2x3xf32>
    %879 = vector.broadcast %60 : vector<1x3xf32> to vector<2x3xf32>
    %880 = arith.addf %878, %879 : vector<2x3xf32>
    %cst_266 = arith.constant 0.000000e+00 : f32
    %881 = vector.broadcast %cst_266 : f32 to vector<2x3xf32>
    %882 = arith.maximumf %880, %881 : vector<2x3xf32>
    %883 = math.absf %880 : vector<2x3xf32>
    %cst_267 = arith.constant 0.000000e+00 : f32
    %884 = vector.broadcast %cst_267 : f32 to vector<2x3xf32>
    %885 = arith.subf %884, %883 : vector<2x3xf32>
    %886 = math.exp %885 : vector<2x3xf32>
    %cst_268 = arith.constant 1.000000e+00 : f32
    %887 = vector.broadcast %cst_268 : f32 to vector<2x3xf32>
    %888 = arith.addf %887, %886 : vector<2x3xf32>
    %889 = math.log %888 : vector<2x3xf32>
    %890 = arith.addf %882, %889 : vector<2x3xf32>
    %cst_269 = arith.constant 1.000000e-01 : f32
    %891 = vector.broadcast %cst_269 : f32 to vector<2x3xf32>
    %892 = arith.addf %890, %891 : vector<2x3xf32>
    %893 = vector.extract_strided_slice %0 {offsets = [20, 0], sizes = [2, 3], strides = [1, 1]} : vector<24x3xf32> to vector<2x3xf32>
    %894 = arith.subf %893, %877 : vector<2x3xf32>
    %895 = tpu.reciprocal %892 {approx = true} : vector<2x3xf32> -> vector<2x3xf32>
    %896 = arith.mulf %894, %895 : vector<2x3xf32>
    %cst_270 = arith.constant -5.000000e-01 : f32
    %897 = vector.broadcast %cst_270 : f32 to vector<2x3xf32>
    %898 = arith.mulf %897, %896 : vector<2x3xf32>
    %899 = arith.mulf %898, %896 : vector<2x3xf32>
    %900 = math.log %892 : vector<2x3xf32>
    %901 = arith.subf %899, %900 : vector<2x3xf32>
    %cst_271 = arith.constant 0.918938517 : f32
    %902 = vector.broadcast %cst_271 : f32 to vector<2x3xf32>
    %903 = arith.subf %901, %902 : vector<2x3xf32>
    %904 = arith.addf %828, %903 : vector<2x3xf32>
    %905 = vector.extract_strided_slice %3 {offsets = [4, 0], sizes = [2, 3], strides = [1, 1]} : vector<8x3xf32> to vector<2x3xf32>
    %906 = arith.mulf %892, %905 : vector<2x3xf32>
    %907 = arith.addf %877, %906 : vector<2x3xf32>
    %cst_272 = arith.constant dense<0.000000e+00> : vector<2x16xf32>
    %908 = tpu.matmul %907, %6, %cst_272 {dimension_numbers = #tpu.dot_dimension_numbers<[1], [0], [0], [1], [0, 0, 1, 1], [], []>} : vector<2x3xf32>, vector<3x16xf32>, vector<2x16xf32> -> vector<2x16xf32>
    %909 = vector.broadcast %8 : vector<1x16xf32> to vector<2x16xf32>
    %910 = arith.addf %908, %909 : vector<2x16xf32>
    %cst_273 = arith.constant 0.000000e+00 : f32
    %911 = vector.broadcast %cst_273 : f32 to vector<2x16xf32>
    %912 = arith.maximumf %910, %911 : vector<2x16xf32>
    %cst_274 = arith.constant dense<0.000000e+00> : vector<2x16xf32>
    %913 = tpu.matmul %912, %10, %cst_274 {dimension_numbers = #tpu.dot_dimension_numbers<[1], [0], [0], [1], [0, 0, 1, 1], [], []>} : vector<2x16xf32>, vector<16x16xf32>, vector<2x16xf32> -> vector<2x16xf32>
    %914 = vector.broadcast %12 : vector<1x16xf32> to vector<2x16xf32>
    %915 = arith.addf %913, %914 : vector<2x16xf32>
    %916 = vector.extract_strided_slice %76 {offsets = [22, 0], sizes = [2, 16], strides = [1, 1]} : vector<24x16xf32> to vector<2x16xf32>
    %917 = tpu.concatenate %915, %916 in 1 : vector<2x16xf32>, vector<2x16xf32> -> vector<2x32xf32>
    %cst_275 = arith.constant dense<0.000000e+00> : vector<2x96xf32>
    %918 = tpu.matmul %917, %42, %cst_275 {dimension_numbers = #tpu.dot_dimension_numbers<[1], [0], [0], [1], [0, 0, 1, 1], [], []>} : vector<2x32xf32>, vector<32x96xf32>, vector<2x96xf32> -> vector<2x96xf32>
    %919 = vector.broadcast %46 : vector<1x96xf32> to vector<2x96xf32>
    %920 = arith.addf %918, %919 : vector<2x96xf32>
    %cst_276 = arith.constant dense<0.000000e+00> : vector<2x96xf32>
    %921 = tpu.matmul %869, %44, %cst_276 {dimension_numbers = #tpu.dot_dimension_numbers<[1], [0], [0], [1], [0, 0, 1, 1], [], []>} : vector<2x32xf32>, vector<32x96xf32>, vector<2x96xf32> -> vector<2x96xf32>
    %922 = vector.broadcast %48 : vector<1x96xf32> to vector<2x96xf32>
    %923 = arith.addf %921, %922 : vector<2x96xf32>
    %924 = vector.extract_strided_slice %920 {offsets = [0, 0], sizes = [2, 64], strides = [1, 1]} : vector<2x96xf32> to vector<2x64xf32>
    %925 = vector.extract_strided_slice %923 {offsets = [0, 0], sizes = [2, 64], strides = [1, 1]} : vector<2x96xf32> to vector<2x64xf32>
    %926 = arith.addf %924, %925 : vector<2x64xf32>
    %cst_277 = arith.constant 5.000000e-01 : f32
    %927 = vector.broadcast %cst_277 : f32 to vector<2x64xf32>
    %928 = arith.mulf %927, %926 : vector<2x64xf32>
    %929 = math.tanh %928 : vector<2x64xf32>
    %cst_278 = arith.constant 5.000000e-01 : f32
    %930 = vector.broadcast %cst_278 : f32 to vector<2x64xf32>
    %931 = arith.mulf %930, %929 : vector<2x64xf32>
    %cst_279 = arith.constant 5.000000e-01 : f32
    %932 = vector.broadcast %cst_279 : f32 to vector<2x64xf32>
    %933 = arith.addf %931, %932 : vector<2x64xf32>
    %934 = vector.extract_strided_slice %933 {offsets = [0, 0], sizes = [2, 32], strides = [1, 1]} : vector<2x64xf32> to vector<2x32xf32>
    %935 = vector.extract_strided_slice %933 {offsets = [0, 32], sizes = [2, 32], strides = [1, 1]} : vector<2x64xf32> to vector<2x32xf32>
    %936 = vector.extract_strided_slice %920 {offsets = [0, 64], sizes = [2, 32], strides = [1, 1]} : vector<2x96xf32> to vector<2x32xf32>
    %937 = vector.extract_strided_slice %923 {offsets = [0, 64], sizes = [2, 32], strides = [1, 1]} : vector<2x96xf32> to vector<2x32xf32>
    %938 = arith.mulf %934, %937 : vector<2x32xf32>
    %939 = arith.addf %936, %938 : vector<2x32xf32>
    %940 = math.tanh %939 : vector<2x32xf32>
    %cst_280 = arith.constant 1.000000e+00 : f32
    %941 = vector.broadcast %cst_280 : f32 to vector<2x32xf32>
    %942 = arith.subf %941, %935 : vector<2x32xf32>
    %943 = arith.mulf %942, %940 : vector<2x32xf32>
    %944 = arith.mulf %935, %869 : vector<2x32xf32>
    %945 = arith.addf %943, %944 : vector<2x32xf32>
    %cst_281 = arith.constant dense<0.000000e+00> : vector<2x16xf32>
    %946 = tpu.matmul %945, %50, %cst_281 {dimension_numbers = #tpu.dot_dimension_numbers<[1], [0], [0], [1], [0, 0, 1, 1], [], []>} : vector<2x32xf32>, vector<32x16xf32>, vector<2x16xf32> -> vector<2x16xf32>
    %947 = vector.broadcast %52 : vector<1x16xf32> to vector<2x16xf32>
    %948 = arith.addf %946, %947 : vector<2x16xf32>
    %cst_282 = arith.constant 0.000000e+00 : f32
    %949 = vector.broadcast %cst_282 : f32 to vector<2x16xf32>
    %950 = arith.maximumf %948, %949 : vector<2x16xf32>
    %cst_283 = arith.constant dense<0.000000e+00> : vector<2x3xf32>
    %951 = tpu.matmul %950, %54, %cst_283 {dimension_numbers = #tpu.dot_dimension_numbers<[1], [0], [0], [1], [0, 0, 1, 1], [], []>} : vector<2x16xf32>, vector<16x3xf32>, vector<2x3xf32> -> vector<2x3xf32>
    %952 = vector.broadcast %56 : vector<1x3xf32> to vector<2x3xf32>
    %953 = arith.addf %951, %952 : vector<2x3xf32>
    %cst_284 = arith.constant dense<0.000000e+00> : vector<2x3xf32>
    %954 = tpu.matmul %945, %58, %cst_284 {dimension_numbers = #tpu.dot_dimension_numbers<[1], [0], [0], [1], [0, 0, 1, 1], [], []>} : vector<2x32xf32>, vector<32x3xf32>, vector<2x3xf32> -> vector<2x3xf32>
    %955 = vector.broadcast %60 : vector<1x3xf32> to vector<2x3xf32>
    %956 = arith.addf %954, %955 : vector<2x3xf32>
    %cst_285 = arith.constant 0.000000e+00 : f32
    %957 = vector.broadcast %cst_285 : f32 to vector<2x3xf32>
    %958 = arith.maximumf %956, %957 : vector<2x3xf32>
    %959 = math.absf %956 : vector<2x3xf32>
    %cst_286 = arith.constant 0.000000e+00 : f32
    %960 = vector.broadcast %cst_286 : f32 to vector<2x3xf32>
    %961 = arith.subf %960, %959 : vector<2x3xf32>
    %962 = math.exp %961 : vector<2x3xf32>
    %cst_287 = arith.constant 1.000000e+00 : f32
    %963 = vector.broadcast %cst_287 : f32 to vector<2x3xf32>
    %964 = arith.addf %963, %962 : vector<2x3xf32>
    %965 = math.log %964 : vector<2x3xf32>
    %966 = arith.addf %958, %965 : vector<2x3xf32>
    %cst_288 = arith.constant 1.000000e-01 : f32
    %967 = vector.broadcast %cst_288 : f32 to vector<2x3xf32>
    %968 = arith.addf %966, %967 : vector<2x3xf32>
    %969 = vector.extract_strided_slice %0 {offsets = [22, 0], sizes = [2, 3], strides = [1, 1]} : vector<24x3xf32> to vector<2x3xf32>
    %970 = arith.subf %969, %953 : vector<2x3xf32>
    %971 = tpu.reciprocal %968 {approx = true} : vector<2x3xf32> -> vector<2x3xf32>
    %972 = arith.mulf %970, %971 : vector<2x3xf32>
    %cst_289 = arith.constant -5.000000e-01 : f32
    %973 = vector.broadcast %cst_289 : f32 to vector<2x3xf32>
    %974 = arith.mulf %973, %972 : vector<2x3xf32>
    %975 = arith.mulf %974, %972 : vector<2x3xf32>
    %976 = math.log %968 : vector<2x3xf32>
    %977 = arith.subf %975, %976 : vector<2x3xf32>
    %cst_290 = arith.constant 0.918938517 : f32
    %978 = vector.broadcast %cst_290 : f32 to vector<2x3xf32>
    %979 = arith.subf %977, %978 : vector<2x3xf32>
    %980 = arith.addf %904, %979 : vector<2x3xf32>
    %cst_291 = arith.constant dense<0.000000e+00> : vector<2xf32>
    %981 = vector.multi_reduction <add>, %980, %cst_291 [1] : vector<2x3xf32> to vector<2xf32>
    %982 = vector.shape_cast %981 : vector<2xf32> to vector<2x1xf32>
    %cst_292 = arith.constant dense<0.000000e+00> : vector<1xf32>
    %983 = vector.multi_reduction <add>, %982, %cst_292 [0] : vector<2x1xf32> to vector<1xf32>
    %984 = vector.shape_cast %983 : vector<1xf32> to vector<1x1xf32>
    %cst_293 = arith.constant 5.000000e-01 : f32
    %985 = vector.broadcast %cst_293 : f32 to vector<1x1xf32>
    %986 = arith.mulf %984, %985 : vector<1x1xf32>
    %c0_294 = arith.constant 0 : index
    %c0_295 = arith.constant 0 : index
    %987 = vector.load %arg2[%c0_294, %c0_295] : memref<1x1xf32, #tpu.memory_space<vmem>>, vector<1x1xf32>
    tpu.vector_store %arg2[%c0_294, %c0_295], %986 {strides = array<i32>} : memref<1x1xf32, #tpu.memory_space<vmem>>, vector<1x1xf32>,
    %cst_296 = arith.constant dense<0.000000e+00> : vector<2xf32>
    %988 = vector.multi_reduction <add>, %668, %cst_296 [1] : vector<2x8xf32> to vector<2xf32>
    %989 = vector.shape_cast %988 : vector<2xf32> to vector<2x1xf32>
    %cst_297 = arith.constant dense<0.000000e+00> : vector<1xf32>
    %990 = vector.multi_reduction <add>, %989, %cst_297 [0] : vector<2x1xf32> to vector<1xf32>
    %991 = vector.shape_cast %990 : vector<1xf32> to vector<1x1xf32>
    %cst_298 = arith.constant 6.250000e-02 : f32
    %992 = vector.broadcast %cst_298 : f32 to vector<1x1xf32>
    %993 = arith.mulf %991, %992 : vector<1x1xf32>
    %c0_299 = arith.constant 0 : index
    %c0_300 = arith.constant 0 : index
    %994 = vector.load %arg3[%c0_299, %c0_300] : memref<1x1xf32, #tpu.memory_space<vmem>>, vector<1x1xf32>
    tpu.vector_store %arg3[%c0_299, %c0_300], %993 {strides = array<i32>} : memref<1x1xf32, #tpu.memory_space<vmem>>, vector<1x1xf32>,
    return
  }
}

</mosaic_0001>

<bundles_post_ra>
// kernel: vsmhn_forward.3
= control target key start
LH: loop header
LB: loop body
LE: loop exit
PB: predicated region body
PF: predicated region fallthrough
CT: control target
= control target key end

     0   :  { %9 = vsyncpa [#allocation3], 0  ;;  %s8839_s0 = inlined_call_operand.vmem [shape: f32[80,8], index: 0, kind: input, shape index: {}]   ;;  %s8840_s1 = inlined_call_operand.hbm [shape: f32[40,48,96], index: 1, kind: input, shape index: {}]   ;;  %s8841_s2 = inlined_call_operand.hbm [shape: f32[1,1], index: 2, kind: output, shape index: {0}]   ;;  %s8842_s3 = inlined_call_operand.hbm [shape: f32[1,1], index: 3, kind: output, shape index: {1}]  }
   0x1   :  { %10 = vsyncpa [#allocation4], 0 }
   0x2   :  { %11 = vsyncpa [#allocation7], 0  ;;  %s7751_s12 = smov [#allocation2]  }
   0x3   :  { %s19_s13 = sshll.u32 %s7751_s12, 4  ;;  %s20_s13 = int_to_ptr.vmem [resolvable:$true] %s19_s13 }
   0x4   :  { %s7693_s14 = scalar_lea.vmem %s20_s13, 30720  ;;  %p7698_p1 = scmp.lt.s32.totalorder %s20_s13, %s20_s13 }
   0x5   :  { %p7694_p0 = scmp.ne.s32.totalorder %s20_s13, %s7693_s14  ;;  %p7699_p2 = scmp.lt.s32.totalorder %s7693_s14, %s7693_s14 }
   0x7   :  { %p7700_p3 = por %p7699_p2, %p7698_p1 }
   0x9   :  { %p7701_p4 = pnand %p7700_p3, %p7694_p0 }
   0xb   :  { %7704 = shalt.err (!%p7701_p4)
}
   0xc   :  { %s7752_s15 = smov 128   ;;  %s7753_s16 = smov 8  }
   0xd   :  { %25 = dma.hbm_to_vmem [thread:$0]  %s8840_s1, 30720, %s20_s13, [#allocation3], %s7752_s15, %s7752_s15, %s7753_s16  }
   0xe   :  { %7745 = dma.done.wait [#allocation3], 30720  }
   0xf   :  { %7746 = vsyncadd [#allocation3], 4294936576  ;;  %v7754_v0 = vmov 0.0   ;;  %vm7755_vm0 = vmmov 0   ;;  %vm129_vm1 = vcmask 1042432   ;;  %vm119_vm2 = vcmask 23552  }
  0x10   :  { %6870 = vmatprep.subr.mxu0 %v7754_v0  ;;  %6872 = vmatprep.mubr.msk.f32.mxu0 %vm7755_vm0, %v7754_v0  ;;  %v39_v1 = vld [vmem:[#allocation2] sm:$0x7]  ;;  %vm324_vm3 = vcmask 1041408   ;;  %v31_v4 = vld [vmem:[%s8839_s0 + $0x10] sm:$0xff]  ;;  %v30_v5 = vld [vmem:[%s8839_s0 + $0x8] sm:$0xff]  ;;  %vm314_vm4 = vcmask 15360  }
  0x11   :  { %7527 = vmatprep.subr.mxu1 %v7754_v0  ;;  %6878 = vmatprep.mubr.msk.f32.mxu1 %vm7755_vm0, %v7754_v0  ;;  %v29_v2 = vld [vmem:[%s8839_s0] sm:$0xff]  ;;  %v32_v6 = vld [vmem:[%s8839_s0 + $0x18] sm:$0xff]  ;;  %v44_v7 = vld [vmem:[#allocation2 + $0x68] sm:$0xff]  ;;  %vm220_vm5 = vcmask 130048   ;;  %s7756_s7 = smov 16   ;;  %s7757_s8 = smov 96  }
  0x12   :  { %6871 = vmatpush3.msk.msra.mxu0 %vm129_vm1, %v39_v1  ;;  %v48_v3 = vld [vmem:[#allocation2 + $0xc0] sm:$0x3]  ;;  %7528 = vmatpush3.msk.msra.mxu1 %vm129_vm1, %v39_v1  ;;  %v34_v10 = vld [vmem:[%s8839_s0 + $0x28] sm:$0xff]  ;;  %v6470_v11 = vld [vmem:[#allocation2 + $0x30] ss:$0 sm:$0xff]  ;;  %vm611_vm6 = vcmask 261120  }
  0x13   :  { %6873 = vmatmul.mubr.msk.f32.vlgmr.msra.gmra.mxu0 %vm119_vm2, %v29_v2  ;;  %6894 = vmatprep.subr.mxu0 %v7754_v0  ;;  %v43_v8 = vld [vmem:[#allocation2 + $0x60] sm:$0xff]  ;;  %v53_v17 = vld [vmem:[#allocation2 + $0x128] sm:$0xff]  ;;  %v6479_v24 = vld [vmem:[#allocation2 + $0xf0] ss:$0 sm:$0xff]  ;;  %s7758_s9 = smov 32   ;;  %s7759_s10 = smov 112  }
  0x14   :  { %6875 = vmatprep.mubr.msk.f32.mxu0 %vm7755_vm0, %v7754_v0  ;;  %6895 = vmatpush3.msk.msra.mxu0 %vm324_vm3, %v48_v3  ;;  %v33_v9 = vld [vmem:[%s8839_s0 + $0x20] sm:$0xff]  ;;  %v35_v32 = vld [vmem:[%s8839_s0 + $0x30] sm:$0xff]  ;;  %v36_v33 = vld [vmem:[%s8839_s0 + $0x38] sm:$0xf]  ;;  %vm4093_vm7 = vcmask 64512   ;;  %vm4185_vm8 = vcmask 392192  }
  0x15   :  { %6879 = vmatmul.mubr.msk.f32.vlgmr.msra.gmra.mxu1 %vm119_vm2, %v31_v4  ;;  %6881 = vmatprep.subr.mxu1 %v7754_v0  ;;  %v52_v22 = vld [vmem:[#allocation2 + $0x120] sm:$0xff]  ;;  %v7855_v35 = vld [vmem:[#allocation2 + $0x1b8] sm:$0xff]  ;;  %v7863_v39 = vld [vmem:[#allocation2 + $0x1b0] sm:$0xff]  ;;  %s7760_s13 = smov 64   ;;  %vm6428_vm9 = vcmask 58368   ;;  %vm6426_vm10 = vcmask 0  }
  0x16   :  { %6885 = vmatprep.mubr.msk.f32.mxu1 %vm7755_vm0, %v7754_v0  ;;  %6882 = vmatpush3.msra.mxu1 %v44_v7  ;;  %v69_v31 = vld [vmem:[#allocation2 + $0x240] sm:$0x3]  ;;  %v7857_v37 = vld [vmem:[#allocation2 + $0x198] sm:$0xff]  ;;  %v7868_v42 = vld [vmem:[#allocation2 + $0x190] sm:$0xff]  ;;  %vm6414_vm11 = vcmask 17408  }
  0x17   :  { %6876 = vmatmul.mubr.msk.f32.gmra.mxu0 %vm119_vm2, %v30_v5  ;;  %6883 = vmatprep.subr.mxu1 %v7754_v0  ;;  %v7876_v46 = vld [vmem:[#allocation2 + $0x188] sm:$0xff]  ;;  %v7882_v47 = vld [vmem:[#allocation2 + $0x180] sm:$0xff]  ;;  %v7901_v54 = vld [vmem:[#allocation2 + $0x150] ss:$0 sm:$0xff] }
  0x18   :  { %6896 = vmatprep.mubr.msk.f32.mxu0 %vm7755_vm0, %v7754_v0  ;;  %6884 = vmatpush3.msra.mxu1 %v43_v8  ;;  %v7909_v60 = vld [vmem:[#allocation2 + $0x210] ss:$0 sm:$0xff] }
  0x19   :  { %6905 = vmatprep.subr.mxu1 %v7754_v0  ;;  %6918 = vmatprep.subr.msk.mxu0 %vm324_vm3, %v69_v31  ;;  %v7917_v5 = vld [vmem:[#allocation2 + $0x90] ss:$0 sm:$0xff] }
  0x1b   :  { %6897 = vmatmul.mubr.msk.f32.vlgmr.msra.gmra.mxu0 %vm314_vm4, %v32_v6 }
  0x1c   :  { %6899 = vmatprep.mubr.msk.f32.mxu0 %vm7755_vm0, %v7754_v0  ;;  %6919 = vmatpush3.msk.msra.mxu0 %vm324_vm3, %v69_v31 }
  0x1d   :  { %6934 = vmatprep.subr.mxu0 %v7754_v0 }
  0x1f   :  { %6900 = vmatmul.mubr.msk.f32.gmra.mxu0 %vm314_vm4, %v33_v9 }
  0x20   :  { %6902 = vmatprep.mubr.msk.f32.mxu0 %vm7755_vm0, %v7754_v0 }
  0x23   :  { %6903 = vmatmul.mubr.msk.f32.gmra.mxu0 %vm314_vm4, %v34_v10  ;;  %v7943_v10 = vld [vmem:[#allocation2 + $0x1e0] ss:$0 sm:$0xff] }
  0x24   :  { %6920 = vmatprep.mubr.msk.f32.mxu0 %vm314_vm4, %v35_v32 }
  0x27   :  { %6921 = vmatmul.mubr.msk.f32.vlgmr.msra.gmra.mxu0 %vm314_vm4, %v36_v33 }
  0x28   :  { %6935 = vmatpush3.msra.mxu0 %v7855_v35  ;;  %6938 = vmatprep.mubr.msk.f32.mxu0 %vm7755_vm0, %v7754_v0 }
  0x29   :  { %6936 = vmatprep.subr.mxu0 %v7754_v0 }
  0x2a   :  { %6937 = vmatpush3.msra.mxu0 %v7863_v39 }
  0x2b   :  { %6939 = vmatmul.mubr.f32.vlgmr.msra.gmra.mxu0 %v7754_v0  ;;  %6952 = vmatprep.subr.mxu0 %v7754_v0 }
  0x2c   :  { %6953 = vmatpush3.msra.mxu0 %v7855_v35  ;;  %6956 = vmatprep.mubr.msk.f32.mxu0 %vm7755_vm0, %v7754_v0 }
  0x2d   :  { %6954 = vmatprep.subr.mxu0 %v7754_v0 }
  0x2e   :  { %6955 = vmatpush3.msra.mxu0 %v7863_v39 }
  0x2f   :  { %6959 = vmatprep.subr.mxu0 %v7754_v0 }
  0xd3   :  { %v199_v12 = vpop.f32.mrf.mxu0 }
  0xd4   :  { %v200_v13 = vadd.f32 %v6470_v11, %v199_v12 }
  0xd5   :  { %v6874_v14 = vpop.f32.mrf.mxu0  ;;  %v209_v15 = vpop.f32.mrf.mxu1 }
  0xd6   :  { %v213_v16 = vmax.f32 %v200_v13, 0.0  ;;  %v210_v21 = vadd.f32 %v6470_v11, %v209_v15 }
  0xd7   :  { %v204_v18 = vpop.f32.mrf.mxu0  ;;  %v6880_v19 = vpop.f32.mrf.mxu1 }
  0xd8   :  { %v205_v20 = vadd.f32 %v6470_v11, %v204_v18  ;;  %6886 = vmatmul.mubr.msk.f32.vlgmr.msra.gmra.mxu1 %vm220_vm5, %v213_v16  ;;  %v215_v27 = vmax.f32 %v210_v21, 0.0 }
  0xd9   :  { %6906 = vmatpush3.msra.mxu1 %v53_v17  ;;  %v6877_v23 = vpop.f32.mrf.mxu0  ;;  %6888 = vmatprep.mubr.msk.f32.mxu1 %vm7755_vm0, %v7754_v0 }
  0xda   :  { %v214_v25 = vmax.f32 %v205_v20, 0.0  ;;  %6907 = vmatprep.subr.mxu1 %v7754_v0 }
  0xdb   :  { %v394_v26 = vpop.f32.mrf.mxu0  ;;  %6908 = vmatpush3.msra.mxu1 %v52_v22 }
  0xdc   :  { %6889 = vmatmul.mubr.msk.f32.gmra.mxu1 %vm220_vm5, %v214_v25  ;;  %v395_v28 = vadd.f32 %v6479_v24, %v394_v26  ;;  %6923 = vmatprep.subr.mxu1 %v7754_v0 }
  0xdd   :  { %6891 = vmatprep.mubr.msk.f32.mxu1 %vm7755_vm0, %v7754_v0  ;;  %v6898_v29 = vpop.f32.mrf.mxu0 }
  0xde   :  { %v408_v30 = vmax.f32 %v395_v28, 0.0 }
  0xdf   :  { %v399_v34 = vpop.f32.mrf.mxu0 }
  0xe0   :  { %6892 = vmatmul.mubr.msk.f32.gmra.mxu1 %vm220_vm5, %v215_v27  ;;  %v400_v36 = vadd.f32 %v6479_v24, %v399_v34 }
  0xe1   :  { %6909 = vmatprep.mubr.msk.f32.mxu1 %vm7755_vm0, %v7754_v0  ;;  %v6901_v38 = vpop.f32.mrf.mxu0 }
  0xe2   :  { %v409_v40 = vmax.f32 %v400_v36, 0.0 }
  0xe3   :  { %v404_v41 = vpop.f32.mrf.mxu0 }
  0xe4   :  { %6910 = vmatmul.mubr.msk.f32.vlgmr.msra.gmra.mxu1 %vm220_vm5, %v408_v30  ;;  %v405_v43 = vadd.f32 %v6479_v24, %v404_v41 }
  0xe5   :  { %6912 = vmatprep.mubr.msk.f32.mxu1 %vm7755_vm0, %v7754_v0  ;;  %6924 = vmatpush3.msra.mxu1 %v7857_v37  ;;  %v6904_v44 = vpop.f32.mrf.mxu0 }
  0xe6   :  { %6925 = vmatprep.subr.mxu1 %v7754_v0  ;;  %v410_v45 = vmax.f32 %v405_v43, 0.0 }
  0xe7   :  { %6926 = vmatpush3.msra.mxu1 %v7868_v42  ;;  %v7905_v58 = vpop.f32.mrf.mxu0 }
  0xe8   :  { %6913 = vmatmul.mubr.msk.f32.gmra.mxu1 %vm220_vm5, %v409_v40  ;;  %6927 = vmatprep.subr.mxu1 %v7754_v0 }
  0xe9   :  { %6915 = vmatprep.mubr.msk.f32.mxu1 %vm7755_vm0, %v7754_v0  ;;  %6928 = vmatpush3.msra.mxu1 %v7876_v46  ;;  %v7907_v59 = vpop.f32.mrf.mxu0 }
  0xea   :  { %6929 = vmatprep.subr.mxu1 %v7754_v0 }
  0xeb   :  { %6930 = vmatpush3.msra.mxu1 %v7882_v47  ;;  %v758_v62 = vpop.f32.mrf.mxu0 }
  0xec   :  { %6916 = vmatmul.mubr.msk.f32.gmra.mxu1 %vm220_vm5, %v410_v45  ;;  %6941 = vmatprep.subr.mxu1 %v7754_v0  ;;  %v759_v1 = vadd.f32 %v7909_v60, %v758_v62 }
  0xed   :  { %6931 = vmatprep.mubr.msk.f32.mxu1 %vm7755_vm0, %v7754_v0  ;;  %v6940_v2 = vpop.f32.mrf.mxu0 }
 0x198   :  { %v296_v48 = vpop.f32.mrf.mxu1 }
 0x199   :  { %v297_v6 = vadd.f32 %v7917_v5, %v296_v48 }
 0x19a   :  { %v6887_v49 = vpop.f32.mrf.mxu1 }
 0x19c   :  { %v7897_v50 = vpop.f32.mrf.mxu1 }
 0x19e   :  { %v6890_v51 = vpop.f32.mrf.mxu1 }
 0x1a0   :  { %v7899_v52 = vpop.f32.mrf.mxu1 }
 0x1a2   :  { %v6893_v53 = vpop.f32.mrf.mxu1 }
 0x1a4   :  { %v490_v55 = vpop.f32.mrf.mxu1 }
 0x1a5   :  { %v491_v56 = vadd.f32 %v7901_v54, %v490_v55 }
 0x1a6   :  { %v6911_v57 = vpop.f32.mrf.mxu1 }
 0x1a7   :  { %595 = vrot.lane.b32.xlu0 %v491_v56, %s7756_s7 }
 0x1a8   :  { %v7911_v61 = vpop.f32.mrf.mxu1 }
 0x1aa   :  { %v6914_v63 = vpop.f32.mrf.mxu1 }
 0x1ab   :  { %768 = vrot.lane.b32.xlu0 %v759_v1, %s7757_s8 }
 0x1ac   :  { %v7914_v3 = vpop.f32.mrf.mxu1 }
 0x1ae   :  { %v6917_v4 = vpop.f32.mrf.mxu1 }
 0x219   :  { %v596_v7 = vpop.permute.xlu0 %595 }
 0x21a   :  { %v7921_v8 = vsel %vm220_vm5, %v297_v6, %v596_v7 }
 0x21b   :  { %6932 = vmatmul.mubr.msk.f32.vlgmr.msra.gmra.mxu1 %vm611_vm6, %v7921_v8  ;;  %v786_v9 = vrot.slane %v7921_v8, 2  ;;  %v958_v32 = vrot.slane %v7921_v8, 4  ;;  %v1130_v7 = vrot.slane %v7921_v8, 6 }
 0x21c   :  { %6942 = vmatpush3.msra.mxu1 %v7857_v37  ;;  %6949 = vmatprep.mubr.msk.f32.mxu1 %vm7755_vm0, %v7754_v0 }
 0x21d   :  { %6943 = vmatprep.subr.mxu1 %v7754_v0  ;;  %v769_v20 = vpop.permute.xlu0 %768 }
 0x21e   :  { %6944 = vmatpush3.msra.mxu1 %v7868_v42 }
 0x21f   :  { %6945 = vmatprep.subr.mxu1 %v7754_v0 }
 0x220   :  { %6946 = vmatpush3.msra.mxu1 %v7876_v46 }
 0x221   :  { %6947 = vmatprep.subr.mxu1 %v7754_v0 }
 0x222   :  { %6948 = vmatpush3.msra.mxu1 %v7882_v47 }
 0x223   :  { %6950 = vmatmul.mubr.msk.f32.vlgmr.msra.gmra.mxu1 %vm611_vm6, %v786_v9  ;;  %6970 = vmatprep.subr.mxu1 %v7754_v0 }
 0x224   :  { %6971 = vmatpush3.msra.mxu1 %v7855_v35  ;;  %6974 = vmatprep.mubr.msk.f32.mxu1 %vm7755_vm0, %v7754_v0 }
 0x225   :  { %6972 = vmatprep.subr.mxu1 %v7754_v0 }
 0x226   :  { %6973 = vmatpush3.msra.mxu1 %v7863_v39 }
 0x227   :  { %6977 = vmatprep.subr.mxu1 %v7754_v0 }
 0x2db   :  { %v681_v11 = vpop.f32.mrf.mxu1 }
 0x2dc   :  { %v682_v12 = vadd.f32 %v7943_v10, %v681_v11 }
 0x2dd   :  { %v6933_v13 = vpop.f32.mrf.mxu1 }
 0x2de   :  { %v762_v14 = vadd.f32 %v759_v1, %v682_v12 }
 0x2e0   :  { %v763_v15 = vmul.f32 0.5, %v762_v14 }
 0x2e2   :  { %7541 = vtanh.f32 %v763_v15 }
 0x2e3   :  { %v855_v16 = vpop.f32.mrf.mxu1 }
 0x2e4   :  { %v856_v41 = vadd.f32 %v7943_v10, %v855_v16 }
 0x2e5   :  { %v6951_v17 = vpop.f32.mrf.mxu1 }
 0x2ef   :  { %v7542_v18 = vpop.eup %7541 }
 0x2f0   :  { %v765_v19 = vmul.f32 0.5, %v7542_v18 }
 0x2f2   :  { %v766_v21 = vadd.f32 0.5, %v765_v19 }
 0x2f4   :  { %v771_v22 = vmul.f32 %v769_v20, %v766_v21  ;;  %v778_v26 = vsub.f32 1.0, %v766_v21  ;;  %v784_v28 = vmul.f32 0.0, %v766_v21 }
 0x2f6   :  { %773 = vrot.lane.b32.xlu1 %v771_v22, %s7758_s9 }
 0x368   :  { %v774_v23 = vpop.permute.xlu1 %773 }
 0x369   :  { %v776_v24 = vadd.f32 %v774_v23, %v682_v12 }
 0x36b   :  { %7543 = vtanh.f32 %v776_v24 }
 0x378   :  { %v7544_v25 = vpop.eup %7543 }
 0x379   :  { %780 = vrot.lane.b32.xlu1 %v7544_v25, %s7759_s10 }
 0x3eb   :  { %v781_v27 = vpop.permute.xlu1 %780 }
 0x3ec   :  { %v783_v29 = vmul.f32 %v781_v27, %v778_v26 }
 0x3ee   :  { %v785_v30 = vadd.f32 %v784_v28, %v783_v29 }
 0x3f0   :  { %860 = vrot.lane.b32.xlu0 %v785_v30, %s7759_s10 }
 0x462   :  { %v861_v31 = vpop.permute.xlu0 %860 }
 0x463   :  { %6957 = vmatmul.mubr.msk.f32.vlgmr.msra.gmra.mxu0 %vm220_vm5, %v861_v31 }
 0x464   :  { %6960 = vmatpush3.msra.mxu0 %v7857_v37  ;;  %6967 = vmatprep.mubr.msk.f32.mxu0 %vm7755_vm0, %v7754_v0 }
 0x465   :  { %6961 = vmatprep.subr.mxu0 %v7754_v0 }
 0x466   :  { %6962 = vmatpush3.msra.mxu0 %v7868_v42 }
 0x467   :  { %6963 = vmatprep.subr.mxu0 %v7754_v0 }
 0x468   :  { %6964 = vmatpush3.msra.mxu0 %v7876_v46 }
 0x469   :  { %6965 = vmatprep.subr.mxu0 %v7754_v0 }
 0x46a   :  { %6966 = vmatpush3.msra.mxu0 %v7882_v47 }
 0x46b   :  { %6968 = vmatmul.mubr.msk.f32.vlgmr.msra.gmra.mxu0 %vm611_vm6, %v958_v32  ;;  %6988 = vmatprep.subr.mxu0 %v7754_v0 }
 0x46c   :  { %6989 = vmatpush3.msra.mxu0 %v7855_v35  ;;  %6992 = vmatprep.mubr.msk.f32.mxu0 %vm7755_vm0, %v7754_v0 }
 0x46d   :  { %6990 = vmatprep.subr.mxu0 %v7754_v0 }
 0x46e   :  { %6991 = vmatpush3.msra.mxu0 %v7863_v39 }
 0x46f   :  { %6995 = vmatprep.subr.mxu0 %v7754_v0 }
 0x523   :  { %v930_v33 = vpop.f32.mrf.mxu0 }
 0x524   :  { %v931_v34 = vadd.f32 %v7909_v60, %v930_v33 }
 0x525   :  { %v6958_v36 = vpop.f32.mrf.mxu0 }
 0x526   :  { %940 = vrot.lane.b32.xlu1 %v931_v34, %s7757_s8  ;;  %v934_v43 = vadd.f32 %v931_v34, %v856_v41 }
 0x528   :  { %v935_v44 = vmul.f32 0.5, %v934_v43 }
 0x52a   :  { %7545 = vtanh.f32 %v935_v44 }
 0x52b   :  { %v1027_v38 = vpop.f32.mrf.mxu0 }
 0x52c   :  { %v1028_v14 = vadd.f32 %v7943_v10, %v1027_v38 }
 0x52d   :  { %v6969_v40 = vpop.f32.mrf.mxu0 }
 0x537   :  { %v7546_v45 = vpop.eup %7545 }
 0x538   :  { %v937_v48 = vmul.f32 0.5, %v7546_v45 }
 0x53a   :  { %v938_v49 = vadd.f32 0.5, %v937_v48 }
 0x53c   :  { %v950_v62 = vsub.f32 1.0, %v938_v49  ;;  %v956_v1 = vmul.f32 %v938_v49, %v785_v30 }
 0x598   :  { %v941_v51 = vpop.permute.xlu1 %940 }
 0x599   :  { %v943_v53 = vmul.f32 %v941_v51, %v938_v49 }
 0x59b   :  { %945 = vrot.lane.b32.xlu0 %v943_v53, %s7758_s9  ;;  %v496_v53 = vadd.f32 %v7901_v54, %v7911_v61 }
 0x60d   :  { %v946_v55 = vpop.permute.xlu0 %945 }
 0x60e   :  { %v948_v56 = vadd.f32 %v946_v55, %v856_v41 }
 0x610   :  { %7547 = vtanh.f32 %v948_v56 }
 0x61d   :  { %v7548_v57 = vpop.eup %7547 }
 0x61e   :  { %952 = vrot.lane.b32.xlu1 %v7548_v57, %s7759_s10 }
 0x690   :  { %v953_v63 = vpop.permute.xlu1 %952 }
 0x691   :  { %v955_v2 = vmul.f32 %v953_v63, %v950_v62  ;;  %v8020_v63 = vadd.f32 %v7917_v5, %v7897_v50 }
 0x693   :  { %v957_v4 = vadd.f32 %v956_v1, %v955_v2 }
 0x695   :  { %1032 = vrot.lane.b32.xlu0 %v957_v4, %s7759_s10 }
 0x707   :  { %v1033_v6 = vpop.permute.xlu0 %1032 }
 0x708   :  { %6975 = vmatmul.mubr.msk.f32.vlgmr.msra.gmra.mxu1 %vm220_vm5, %v1033_v6 }
 0x709   :  { %6978 = vmatpush3.msra.mxu1 %v7857_v37  ;;  %6985 = vmatprep.mubr.msk.f32.mxu1 %vm7755_vm0, %v7754_v0 }
 0x70a   :  { %6979 = vmatprep.subr.mxu1 %v7754_v0 }
 0x70b   :  { %6980 = vmatpush3.msra.mxu1 %v7868_v42 }
 0x70c   :  { %6981 = vmatprep.subr.mxu1 %v7754_v0 }
 0x70d   :  { %6982 = vmatpush3.msra.mxu1 %v7876_v46 }
 0x70e   :  { %6983 = vmatprep.subr.mxu1 %v7754_v0 }
 0x70f   :  { %6984 = vmatpush3.msra.mxu1 %v7882_v47 }
 0x710   :  { %6986 = vmatmul.mubr.msk.f32.vlgmr.msra.gmra.mxu1 %vm611_vm6, %v1130_v7  ;;  %7006 = vmatprep.subr.mxu1 %v7754_v0 }
 0x711   :  { %7007 = vmatpush3.msra.mxu1 %v7855_v35  ;;  %7010 = vmatprep.mubr.msk.f32.mxu1 %vm7755_vm0, %v7754_v0 }
 0x712   :  { %7008 = vmatprep.subr.mxu1 %v7754_v0 }
 0x713   :  { %7009 = vmatpush3.msra.mxu1 %v7863_v39 }
 0x714   :  { %7013 = vmatprep.subr.mxu1 %v7754_v0 }
 0x7c8   :  { %v1102_v8 = vpop.f32.mrf.mxu1 }
 0x7c9   :  { %v1103_v9 = vadd.f32 %v7909_v60, %v1102_v8 }
 0x7ca   :  { %v6976_v11 = vpop.f32.mrf.mxu1 }
 0x7cb   :  { %1112 = vrot.lane.b32.xlu1 %v1103_v9, %s7757_s8  ;;  %v1106_v15 = vadd.f32 %v1103_v9, %v1028_v14 }
 0x7cd   :  { %v1107_v16 = vmul.f32 0.5, %v1106_v15 }
 0x7cf   :  { %7549 = vtanh.f32 %v1107_v16 }
 0x7d0   :  { %v1199_v12 = vpop.f32.mrf.mxu1 }
 0x7d1   :  { %v1200_v34 = vadd.f32 %v7943_v10, %v1199_v12 }
 0x7d2   :  { %v6987_v13 = vpop.f32.mrf.mxu1 }
 0x7dc   :  { %v7550_v17 = vpop.eup %7549 }
 0x7dd   :  { %v1109_v18 = vmul.f32 0.5, %v7550_v17 }
 0x7df   :  { %v1110_v19 = vadd.f32 0.5, %v1109_v18 }
 0x7e1   :  { %v1122_v25 = vsub.f32 1.0, %v1110_v19  ;;  %v1128_v27 = vmul.f32 %v1110_v19, %v957_v4 }
 0x83d   :  { %v1113_v20 = vpop.permute.xlu1 %1112 }
 0x83e   :  { %v1115_v21 = vmul.f32 %v1113_v20, %v1110_v19 }
 0x840   :  { %1117 = vrot.lane.b32.xlu0 %v1115_v21, %s7758_s9 }
 0x8b2   :  { %v1118_v22 = vpop.permute.xlu0 %1117 }
 0x8b3   :  { %v1120_v23 = vadd.f32 %v1118_v22, %v1028_v14 }
 0x8b5   :  { %7551 = vtanh.f32 %v1120_v23 }
 0x8c2   :  { %v7552_v24 = vpop.eup %7551 }
 0x8c3   :  { %1124 = vrot.lane.b32.xlu1 %v7552_v24, %s7759_s10 }
 0x935   :  { %v1125_v26 = vpop.permute.xlu1 %1124 }
 0x936   :  { %v1127_v28 = vmul.f32 %v1125_v26, %v1122_v25 }
 0x938   :  { %v1129_v29 = vadd.f32 %v1128_v27, %v1127_v28 }
 0x93a   :  { %1204 = vrot.lane.b32.xlu0 %v1129_v29, %s7759_s10 }
 0x9ac   :  { %v1205_v30 = vpop.permute.xlu0 %1204 }
 0x9ad   :  { %6993 = vmatmul.mubr.msk.f32.vlgmr.msra.gmra.mxu0 %vm220_vm5, %v1205_v30 }
 0x9ae   :  { %6996 = vmatpush3.msra.mxu0 %v7857_v37  ;;  %7003 = vmatprep.mubr.msk.f32.mxu0 %vm7755_vm0, %v7754_v0 }
 0x9af   :  { %6997 = vmatprep.subr.mxu0 %v7754_v0 }
 0x9b0   :  { %6998 = vmatpush3.msra.mxu0 %v7868_v42 }
 0x9b1   :  { %6999 = vmatprep.subr.mxu0 %v7754_v0 }
 0x9b2   :  { %7000 = vmatpush3.msra.mxu0 %v7876_v46 }
 0x9b3   :  { %7001 = vmatprep.subr.mxu0 %v7754_v0 }
 0x9b4   :  { %7002 = vmatpush3.msra.mxu0 %v7882_v47 }
 0x9b5   :  { %7024 = vmatprep.subr.mxu0 %v7754_v0 }
 0xa6d   :  { %v1274_v31 = vpop.f32.mrf.mxu0 }
 0xa6e   :  { %v1275_v32 = vadd.f32 %v7909_v60, %v1274_v31 }
 0xa6f   :  { %v6994_v33 = vpop.f32.mrf.mxu0 }
 0xa70   :  { %1284 = vrot.lane.b32.xlu1 %v1275_v32, %s7757_s8  ;;  %v1278_v36 = vadd.f32 %v1275_v32, %v1200_v34 }
 0xa72   :  { %v1279_v38 = vmul.f32 0.5, %v1278_v36 }
 0xa74   :  { %7553 = vtanh.f32 %v1279_v38 }
 0xa81   :  { %v7554_v40 = vpop.eup %7553 }
 0xa82   :  { %v1281_v41 = vmul.f32 0.5, %v7554_v40 }
 0xa84   :  { %v1282_v43 = vadd.f32 0.5, %v1281_v41 }
 0xa86   :  { %v1294_v55 = vsub.f32 1.0, %v1282_v43  ;;  %v1300_v57 = vmul.f32 %v1282_v43, %v1129_v29 }
 0xae2   :  { %v1285_v44 = vpop.permute.xlu1 %1284 }
 0xae3   :  { %v1287_v45 = vmul.f32 %v1285_v44, %v1282_v43 }
 0xae5   :  { %1289 = vrot.lane.b32.xlu0 %v1287_v45, %s7758_s9 }
 0xb57   :  { %v1290_v48 = vpop.permute.xlu0 %1289 }
 0xb58   :  { %v1292_v49 = vadd.f32 %v1290_v48, %v1200_v34 }
 0xb5a   :  { %7555 = vtanh.f32 %v1292_v49 }
 0xb67   :  { %v7556_v51 = vpop.eup %7555 }
 0xb68   :  { %1296 = vrot.lane.b32.xlu1 %v7556_v51, %s7759_s10 }
 0xb6c   :  { %597 = vrot.lane.b32.xlu1 %v496_v53, %s7756_s7 }
 0xbda   :  { %v1297_v56 = vpop.permute.xlu1 %1296 }
 0xbdb   :  { %v1299_v62 = vmul.f32 %v1297_v56, %v1294_v55 }
 0xbdd   :  { %v1301_v1 = vadd.f32 %v1300_v57, %v1299_v62 }
 0xbde   :  { %v598_v2 = vpop.permute.xlu1 %597 }
 0xbdf   :  { %v8024_v4 = vsel %vm220_vm5, %v8020_v63, %v598_v2  ;;  %1376 = vrot.lane.b32.xlu0 %v1301_v1, %s7759_s10 }
 0xbe0   :  { %7004 = vmatmul.mubr.msk.f32.vlgmr.msra.gmra.mxu0 %vm611_vm6, %v8024_v4  ;;  %v1474_v61 = vrot.slane %v8024_v4, 2  ;;  %v1646_v31 = vrot.slane %v8024_v4, 4 }
 0xbe1   :  { %7025 = vmatpush3.msra.mxu0 %v7855_v35  ;;  %7028 = vmatprep.mubr.msk.f32.mxu0 %vm7755_vm0, %v7754_v0 }
 0xbe2   :  { %7026 = vmatprep.subr.mxu0 %v7754_v0 }
 0xbe3   :  { %7027 = vmatpush3.msra.mxu0 %v7863_v39 }
 0xbe4   :  { %7031 = vmatprep.subr.mxu0 %v7754_v0 }
 0xc51   :  { %v1377_v50 = vpop.permute.xlu0 %1376 }
 0xc52   :  { %7011 = vmatmul.mubr.msk.f32.vlgmr.msra.gmra.mxu1 %vm220_vm5, %v1377_v50 }
 0xc53   :  { %7014 = vmatpush3.msra.mxu1 %v7857_v37  ;;  %7021 = vmatprep.mubr.msk.f32.mxu1 %vm7755_vm0, %v7754_v0 }
 0xc54   :  { %7015 = vmatprep.subr.mxu1 %v7754_v0 }
 0xc55   :  { %7016 = vmatpush3.msra.mxu1 %v7868_v42 }
 0xc56   :  { %7017 = vmatprep.subr.mxu1 %v7754_v0 }
 0xc57   :  { %7018 = vmatpush3.msra.mxu1 %v7876_v46 }
 0xc58   :  { %7019 = vmatprep.subr.mxu1 %v7754_v0 }
 0xc59   :  { %7020 = vmatpush3.msra.mxu1 %v7882_v47 }
 0xc5a   :  { %7022 = vmatmul.mubr.msk.f32.vlgmr.msra.gmra.mxu1 %vm611_vm6, %v1474_v61  ;;  %7042 = vmatprep.subr.mxu1 %v7754_v0 }
 0xc5b   :  { %7043 = vmatpush3.msra.mxu1 %v7855_v35  ;;  %7046 = vmatprep.mubr.msk.f32.mxu1 %vm7755_vm0, %v7754_v0 }
 0xc5c   :  { %7044 = vmatprep.subr.mxu1 %v7754_v0 }
 0xc5d   :  { %7045 = vmatpush3.msra.mxu1 %v7863_v39 }
 0xc5e   :  { %7049 = vmatprep.subr.mxu1 %v7754_v0 }
 0xca0   :  { %v1371_v6 = vpop.f32.mrf.mxu0 }
 0xca1   :  { %v1372_v14 = vadd.f32 %v7943_v10, %v1371_v6  ;;  %v1818_v6 = vrot.slane %v8024_v4, 6 }
 0xca2   :  { %v7005_v7 = vpop.f32.mrf.mxu0 }
 0xd12   :  { %v1446_v8 = vpop.f32.mrf.mxu1 }
 0xd13   :  { %v1447_v9 = vadd.f32 %v7909_v60, %v1446_v8 }
 0xd14   :  { %v7012_v11 = vpop.f32.mrf.mxu1 }
 0xd15   :  { %1456 = vrot.lane.b32.xlu0 %v1447_v9, %s7757_s8  ;;  %v1450_v15 = vadd.f32 %v1447_v9, %v1372_v14 }
 0xd17   :  { %v1451_v16 = vmul.f32 0.5, %v1450_v15 }
 0xd19   :  { %7557 = vtanh.f32 %v1451_v16 }
 0xd1a   :  { %v1543_v12 = vpop.f32.mrf.mxu1 }
 0xd1b   :  { %v1544_v40 = vadd.f32 %v7943_v10, %v1543_v12 }
 0xd1c   :  { %v7023_v13 = vpop.f32.mrf.mxu1 }
 0xd26   :  { %v7558_v17 = vpop.eup %7557 }
 0xd27   :  { %v1453_v18 = vmul.f32 0.5, %v7558_v17 }
 0xd29   :  { %v1454_v19 = vadd.f32 0.5, %v1453_v18 }
 0xd2b   :  { %v1466_v25 = vsub.f32 1.0, %v1454_v19  ;;  %v1472_v27 = vmul.f32 %v1454_v19, %v1301_v1 }
 0xd87   :  { %v1457_v20 = vpop.permute.xlu0 %1456 }
 0xd88   :  { %v1459_v21 = vmul.f32 %v1457_v20, %v1454_v19 }
 0xd8a   :  { %1461 = vrot.lane.b32.xlu1 %v1459_v21, %s7758_s9 }
 0xdfc   :  { %v1462_v22 = vpop.permute.xlu1 %1461 }
 0xdfd   :  { %v1464_v23 = vadd.f32 %v1462_v22, %v1372_v14 }
 0xdff   :  { %7559 = vtanh.f32 %v1464_v23 }
 0xe0c   :  { %v7560_v24 = vpop.eup %7559 }
 0xe0d   :  { %1468 = vrot.lane.b32.xlu0 %v7560_v24, %s7759_s10 }
 0xe7f   :  { %v1469_v26 = vpop.permute.xlu0 %1468 }
 0xe80   :  { %v1471_v28 = vmul.f32 %v1469_v26, %v1466_v25 }
 0xe82   :  { %v1473_v29 = vadd.f32 %v1472_v27, %v1471_v28 }
 0xe84   :  { %1548 = vrot.lane.b32.xlu1 %v1473_v29, %s7759_s10 }
 0xef6   :  { %v1549_v30 = vpop.permute.xlu1 %1548 }
 0xef7   :  { %7029 = vmatmul.mubr.msk.f32.vlgmr.msra.gmra.mxu0 %vm220_vm5, %v1549_v30 }
 0xef8   :  { %7032 = vmatpush3.msra.mxu0 %v7857_v37  ;;  %7039 = vmatprep.mubr.msk.f32.mxu0 %vm7755_vm0, %v7754_v0 }
 0xef9   :  { %7033 = vmatprep.subr.mxu0 %v7754_v0 }
 0xefa   :  { %7034 = vmatpush3.msra.mxu0 %v7868_v42 }
 0xefb   :  { %7035 = vmatprep.subr.mxu0 %v7754_v0 }
 0xefc   :  { %7036 = vmatpush3.msra.mxu0 %v7876_v46 }
 0xefd   :  { %7037 = vmatprep.subr.mxu0 %v7754_v0 }
 0xefe   :  { %7038 = vmatpush3.msra.mxu0 %v7882_v47 }
 0xeff   :  { %7040 = vmatmul.mubr.msk.f32.vlgmr.msra.gmra.mxu0 %vm611_vm6, %v1646_v31  ;;  %7060 = vmatprep.subr.mxu0 %v7754_v0 }
 0xf00   :  { %7061 = vmatpush3.msra.mxu0 %v7855_v35  ;;  %7064 = vmatprep.mubr.msk.f32.mxu0 %vm7755_vm0, %v7754_v0 }
 0xf01   :  { %7062 = vmatprep.subr.mxu0 %v7754_v0 }
 0xf02   :  { %7063 = vmatpush3.msra.mxu0 %v7863_v39 }
 0xf03   :  { %7067 = vmatprep.subr.mxu0 %v7754_v0 }
 0xfb7   :  { %v1618_v32 = vpop.f32.mrf.mxu0 }
 0xfb8   :  { %v1619_v33 = vadd.f32 %v7909_v60, %v1618_v32 }
 0xfb9   :  { %v7030_v34 = vpop.f32.mrf.mxu0 }
 0xfba   :  { %1628 = vrot.lane.b32.xlu0 %v1619_v33, %s7757_s8  ;;  %v1622_v41 = vadd.f32 %v1619_v33, %v1544_v40 }
 0xfbc   :  { %v1623_v43 = vmul.f32 0.5, %v1622_v41 }
 0xfbe   :  { %7561 = vtanh.f32 %v1623_v43 }
 0xfbf   :  { %v1715_v36 = vpop.f32.mrf.mxu0 }
 0xfc0   :  { %v1716_v12 = vadd.f32 %v7943_v10, %v1715_v36 }
 0xfc1   :  { %v7041_v38 = vpop.f32.mrf.mxu0 }
 0xfcb   :  { %v7562_v44 = vpop.eup %7561 }
 0xfcc   :  { %v1625_v45 = vmul.f32 0.5, %v7562_v44 }
 0xfce   :  { %v1626_v48 = vadd.f32 0.5, %v1625_v45 }
 0xfd0   :  { %v1638_v57 = vsub.f32 1.0, %v1626_v48  ;;  %v1644_v1 = vmul.f32 %v1626_v48, %v1473_v29 }
0x102c   :  { %v1629_v49 = vpop.permute.xlu0 %1628 }
0x102d   :  { %v1631_v51 = vmul.f32 %v1629_v49, %v1626_v48  ;;  %v8128_v49 = vadd.f32 %v7901_v54, %v7914_v3 }
0x102f   :  { %1633 = vrot.lane.b32.xlu1 %v1631_v51, %s7758_s9 }
0x10a1   :  { %v1634_v53 = vpop.permute.xlu1 %1633 }
0x10a2   :  { %v1636_v55 = vadd.f32 %v1634_v53, %v1544_v40 }
0x10a4   :  { %7563 = vtanh.f32 %v1636_v55 }
0x10b1   :  { %v7564_v56 = vpop.eup %7563 }
0x10b2   :  { %1640 = vrot.lane.b32.xlu0 %v7564_v56, %s7759_s10 }
0x1124   :  { %v1641_v62 = vpop.permute.xlu0 %1640 }
0x1125   :  { %v1643_v2 = vmul.f32 %v1641_v62, %v1638_v57  ;;  %v307_v57 = vadd.f32 %v7917_v5, %v7899_v52 }
0x1127   :  { %v1645_v50 = vadd.f32 %v1644_v1, %v1643_v2 }
0x1129   :  { %1720 = vrot.lane.b32.xlu1 %v1645_v50, %s7759_s10 }
0x119b   :  { %v1721_v61 = vpop.permute.xlu1 %1720 }
0x119c   :  { %7047 = vmatmul.mubr.msk.f32.vlgmr.msra.gmra.mxu1 %vm220_vm5, %v1721_v61 }
0x119d   :  { %7050 = vmatpush3.msra.mxu1 %v7857_v37  ;;  %7057 = vmatprep.mubr.msk.f32.mxu1 %vm7755_vm0, %v7754_v0 }
0x119e   :  { %7051 = vmatprep.subr.mxu1 %v7754_v0 }
0x119f   :  { %7052 = vmatpush3.msra.mxu1 %v7868_v42 }
0x11a0   :  { %7053 = vmatprep.subr.mxu1 %v7754_v0 }
0x11a1   :  { %7054 = vmatpush3.msra.mxu1 %v7876_v46 }
0x11a2   :  { %7055 = vmatprep.subr.mxu1 %v7754_v0 }
0x11a3   :  { %7056 = vmatpush3.msra.mxu1 %v7882_v47 }
0x11a4   :  { %7058 = vmatmul.mubr.msk.f32.vlgmr.msra.gmra.mxu1 %vm611_vm6, %v1818_v6  ;;  %7078 = vmatprep.subr.mxu1 %v7754_v0 }
0x11a5   :  { %7079 = vmatpush3.msra.mxu1 %v7855_v35  ;;  %7082 = vmatprep.mubr.msk.f32.mxu1 %vm7755_vm0, %v7754_v0 }
0x11a6   :  { %7080 = vmatprep.subr.mxu1 %v7754_v0 }
0x11a7   :  { %7081 = vmatpush3.msra.mxu1 %v7863_v39 }
0x11a8   :  { %7085 = vmatprep.subr.mxu1 %v7754_v0 }
0x125c   :  { %v1790_v4 = vpop.f32.mrf.mxu1 }
0x125d   :  { %v1791_v7 = vadd.f32 %v7909_v60, %v1790_v4 }
0x125e   :  { %v7048_v8 = vpop.f32.mrf.mxu1 }
0x125f   :  { %1800 = vrot.lane.b32.xlu0 %v1791_v7, %s7757_s8  ;;  %v1794_v13 = vadd.f32 %v1791_v7, %v1716_v12 }
0x1261   :  { %v1795_v14 = vmul.f32 0.5, %v1794_v13 }
0x1263   :  { %7565 = vtanh.f32 %v1795_v14 }
0x1264   :  { %v1887_v9 = vpop.f32.mrf.mxu1 }
0x1265   :  { %v1888_v32 = vadd.f32 %v7943_v10, %v1887_v9 }
0x1266   :  { %v7059_v11 = vpop.f32.mrf.mxu1 }
0x1270   :  { %v7566_v15 = vpop.eup %7565 }
0x1271   :  { %v1797_v16 = vmul.f32 0.5, %v7566_v15 }
0x1273   :  { %v1798_v17 = vadd.f32 0.5, %v1797_v16 }
0x1275   :  { %v1810_v23 = vsub.f32 1.0, %v1798_v17  ;;  %v1816_v25 = vmul.f32 %v1798_v17, %v1645_v50 }
0x12d1   :  { %v1801_v18 = vpop.permute.xlu0 %1800 }
0x12d2   :  { %v1803_v19 = vmul.f32 %v1801_v18, %v1798_v17 }
0x12d4   :  { %1805 = vrot.lane.b32.xlu1 %v1803_v19, %s7758_s9 }
0x1346   :  { %v1806_v20 = vpop.permute.xlu1 %1805 }
0x1347   :  { %v1808_v21 = vadd.f32 %v1806_v20, %v1716_v12 }
0x1349   :  { %7567 = vtanh.f32 %v1808_v21 }
0x1356   :  { %v7568_v22 = vpop.eup %7567 }
0x1357   :  { %1812 = vrot.lane.b32.xlu0 %v7568_v22, %s7759_s10 }
0x13c9   :  { %v1813_v24 = vpop.permute.xlu0 %1812 }
0x13ca   :  { %v1815_v26 = vmul.f32 %v1813_v24, %v1810_v23 }
0x13cc   :  { %v1817_v27 = vadd.f32 %v1816_v25, %v1815_v26 }
0x13ce   :  { %1892 = vrot.lane.b32.xlu1 %v1817_v27, %s7759_s10 }
0x1440   :  { %v1893_v28 = vpop.permute.xlu1 %1892 }
0x1441   :  { %7065 = vmatmul.mubr.msk.f32.vlgmr.msra.gmra.mxu0 %vm220_vm5, %v1893_v28 }
0x1442   :  { %7068 = vmatpush3.msra.mxu0 %v7857_v37  ;;  %7075 = vmatprep.mubr.msk.f32.mxu0 %vm7755_vm0, %v7754_v0 }
0x1443   :  { %7069 = vmatprep.subr.mxu0 %v7754_v0 }
0x1444   :  { %7070 = vmatpush3.msra.mxu0 %v7868_v42 }
0x1445   :  { %7071 = vmatprep.subr.mxu0 %v7754_v0 }
0x1446   :  { %7072 = vmatpush3.msra.mxu0 %v7876_v46 }
0x1447   :  { %7073 = vmatprep.subr.mxu0 %v7754_v0 }
0x1448   :  { %7074 = vmatpush3.msra.mxu0 %v7882_v47 }
0x1449   :  { %7096 = vmatprep.subr.mxu0 %v7754_v0 }
0x1501   :  { %v1962_v29 = vpop.f32.mrf.mxu0 }
0x1502   :  { %v1963_v30 = vadd.f32 %v7909_v60, %v1962_v29 }
0x1503   :  { %v7066_v31 = vpop.f32.mrf.mxu0 }
0x1504   :  { %1972 = vrot.lane.b32.xlu0 %v1963_v30, %s7757_s8  ;;  %v1966_v33 = vadd.f32 %v1963_v30, %v1888_v32 }
0x1506   :  { %v1967_v34 = vmul.f32 0.5, %v1966_v33 }
0x1508   :  { %7569 = vtanh.f32 %v1967_v34 }
0x1515   :  { %v7570_v36 = vpop.eup %7569 }
0x1516   :  { %v1969_v38 = vmul.f32 0.5, %v7570_v36 }
0x1518   :  { %v1970_v40 = vadd.f32 0.5, %v1969_v38 }
0x151a   :  { %v1982_v51 = vsub.f32 1.0, %v1970_v40  ;;  %v1988_v55 = vmul.f32 %v1970_v40, %v1817_v27 }
0x1576   :  { %v1973_v41 = vpop.permute.xlu0 %1972 }
0x1577   :  { %v1975_v43 = vmul.f32 %v1973_v41, %v1970_v40 }
0x1579   :  { %1977 = vrot.lane.b32.xlu1 %v1975_v43, %s7758_s9 }
0x15eb   :  { %v1978_v44 = vpop.permute.xlu1 %1977 }
0x15ec   :  { %v1980_v45 = vadd.f32 %v1978_v44, %v1888_v32 }
0x15ee   :  { %7571 = vtanh.f32 %v1980_v45 }
0x15fb   :  { %v7572_v48 = vpop.eup %7571 }
0x15fc   :  { %1984 = vrot.lane.b32.xlu0 %v7572_v48, %s7759_s10 }
0x1600   :  { %599 = vrot.lane.b32.xlu0 %v8128_v49, %s7756_s7 }
0x166e   :  { %v1985_v53 = vpop.permute.xlu0 %1984 }
0x166f   :  { %v1987_v56 = vmul.f32 %v1985_v53, %v1982_v51 }
0x1671   :  { %v1989_v62 = vadd.f32 %v1988_v55, %v1987_v56  ;;  %v7675_v55 = vld [vmem:[#allocation2 + $0x198] sm:$0xff]  ;;  %v7676_v56 = vld [vmem:[#allocation2 + $0x190] sm:$0xff] }
0x1672   :  { %v600_v1 = vpop.permute.xlu0 %599 }
0x1673   :  { %v8135_v2 = vsel %vm220_vm5, %v307_v57, %v600_v1  ;;  %2064 = vrot.lane.b32.xlu1 %v1989_v62, %s7759_s10 }
0x1674   :  { %7076 = vmatmul.mubr.msk.f32.vlgmr.msra.gmra.mxu0 %vm611_vm6, %v8135_v2  ;;  %v2162_v54 = vrot.slane %v8135_v2, 2  ;;  %v2334_v26 = vrot.slane %v8135_v2, 4  ;;  %v2506_v57 = vrot.slane %v8135_v2, 6 }
0x1675   :  { %7097 = vmatpush3.msra.mxu0 %v7855_v35  ;;  %7100 = vmatprep.mubr.msk.f32.mxu0 %vm7755_vm0, %v7754_v0 }
0x1676   :  { %7098 = vmatprep.subr.mxu0 %v7754_v0 }
0x1677   :  { %7099 = vmatpush3.msra.mxu0 %v7863_v39 }
0x1678   :  { %7103 = vmatprep.subr.mxu0 %v7754_v0 }
0x16e5   :  { %v8146_v52 = vpop.permute.xlu1 %2064 }
0x16e6   :  { %7083 = vmatmul.mubr.msk.f32.vlgmr.msra.gmra.mxu1 %vm220_vm5, %v8146_v52 }
0x16e7   :  { %7086 = vmatpush3.msra.mxu1 %v7857_v37  ;;  %7093 = vmatprep.mubr.msk.f32.mxu1 %vm7755_vm0, %v7754_v0 }
0x16e8   :  { %7087 = vmatprep.subr.mxu1 %v7754_v0 }
0x16e9   :  { %7088 = vmatpush3.msra.mxu1 %v7868_v42 }
0x16ea   :  { %7089 = vmatprep.subr.mxu1 %v7754_v0 }
0x16eb   :  { %7090 = vmatpush3.msra.mxu1 %v7876_v46 }
0x16ec   :  { %7091 = vmatprep.subr.mxu1 %v7754_v0 }
0x16ed   :  { %7092 = vmatpush3.msra.mxu1 %v7882_v47 }
0x16ee   :  { %7094 = vmatmul.mubr.msk.f32.vlgmr.msra.gmra.mxu1 %vm611_vm6, %v2162_v54  ;;  %7114 = vmatprep.subr.mxu1 %v7754_v0 }
0x16ef   :  { %7115 = vmatpush3.msra.mxu1 %v7855_v35  ;;  %7118 = vmatprep.mubr.msk.f32.mxu1 %vm7755_vm0, %v7754_v0 }
0x16f0   :  { %7116 = vmatprep.subr.mxu1 %v7754_v0 }
0x16f1   :  { %7117 = vmatpush3.msra.mxu1 %v7863_v39 }
0x16f2   :  { %7121 = vmatprep.subr.mxu1 %v7754_v0 }
0x1734   :  { %v2059_v3 = vpop.f32.mrf.mxu0 }
0x1735   :  { %v2060_v8 = vadd.f32 %v7943_v10, %v2059_v3 }
0x1736   :  { %v7077_v5 = vpop.f32.mrf.mxu0 }
0x17a6   :  { %v2134_v50 = vpop.f32.mrf.mxu1 }
0x17a7   :  { %v2135_v61 = vadd.f32 %v7909_v60, %v2134_v50 }
0x17a8   :  { %v7084_v6 = vpop.f32.mrf.mxu1 }
0x17a9   :  { %2144 = vrot.lane.b32.xlu1 %v2135_v61, %s7757_s8  ;;  %v2138_v9 = vadd.f32 %v2135_v61, %v2060_v8 }
0x17ab   :  { %v2139_v11 = vmul.f32 0.5, %v2138_v9  ;;  %v8218_v9 = vld [vmem:[#allocation2 + $0x2d8] sm:$0xff] }
0x17ad   :  { %7573 = vtanh.f32 %v2139_v11  ;;  %v8220_v11 = vld [vmem:[#allocation2 + $0x2d0] sm:$0xff] }
0x17ae   :  { %v2231_v4 = vpop.f32.mrf.mxu1 }
0x17af   :  { %v2232_v30 = vadd.f32 %v7943_v10, %v2231_v4 }
0x17b0   :  { %v7095_v7 = vpop.f32.mrf.mxu1 }
0x17ba   :  { %v7574_v12 = vpop.eup %7573 }
0x17bb   :  { %v2141_v13 = vmul.f32 0.5, %v7574_v12 }
0x17bd   :  { %v2142_v14 = vadd.f32 0.5, %v2141_v13 }
0x17bf   :  { %v2154_v20 = vsub.f32 1.0, %v2142_v14  ;;  %v2160_v22 = vmul.f32 %v2142_v14, %v1989_v62 }
0x181b   :  { %v2145_v15 = vpop.permute.xlu1 %2144 }
0x181c   :  { %v2147_v16 = vmul.f32 %v2145_v15, %v2142_v14 }
0x181e   :  { %2149 = vrot.lane.b32.xlu0 %v2147_v16, %s7758_s9 }
0x1890   :  { %v2150_v17 = vpop.permute.xlu0 %2149 }
0x1891   :  { %v2152_v18 = vadd.f32 %v2150_v17, %v2060_v8  ;;  %v8238_v17 = vld [vmem:[#allocation2 + $0x330] ss:$0 sm:$0xff] }
0x1893   :  { %7575 = vtanh.f32 %v2152_v18 }
0x18a0   :  { %v7576_v19 = vpop.eup %7575 }
0x18a1   :  { %2156 = vrot.lane.b32.xlu1 %v7576_v19, %s7759_s10 }
0x1913   :  { %v2157_v21 = vpop.permute.xlu1 %2156 }
0x1914   :  { %v2159_v23 = vmul.f32 %v2157_v21, %v2154_v20  ;;  %v74_v21 = vld [vmem:[#allocation2 + $0x2a8] sm:$0xff] }
0x1916   :  { %v2161_v24 = vadd.f32 %v2160_v22, %v2159_v23  ;;  %v6488_v22 = vld [vmem:[#allocation2 + $0x270] ss:$0 sm:$0xff] }
0x1918   :  { %2236 = vrot.lane.b32.xlu0 %v2161_v24, %s7759_s10 }
0x198a   :  { %v2237_v25 = vpop.permute.xlu0 %2236 }
0x198b   :  { %7101 = vmatmul.mubr.msk.f32.vlgmr.msra.gmra.mxu0 %vm220_vm5, %v2237_v25  ;;  %v584_v25 = vadd.f32 %v6488_v22, %v7907_v59 }
0x198c   :  { %7104 = vmatpush3.msra.mxu0 %v7857_v37  ;;  %7111 = vmatprep.mubr.msk.f32.mxu0 %vm7755_vm0, %v7754_v0 }
0x198d   :  { %7105 = vmatprep.subr.mxu0 %v7754_v0  ;;  %v3025_v59 = vrot.slane %v584_v25, 4 }
0x198e   :  { %7106 = vmatpush3.msra.mxu0 %v7868_v42 }
0x198f   :  { %7107 = vmatprep.subr.mxu0 %v7754_v0 }
0x1990   :  { %7108 = vmatpush3.msra.mxu0 %v7876_v46 }
0x1991   :  { %7109 = vmatprep.subr.mxu0 %v7754_v0 }
0x1992   :  { %7110 = vmatpush3.msra.mxu0 %v7882_v47 }
0x1993   :  { %7112 = vmatmul.mubr.msk.f32.vlgmr.msra.gmra.mxu0 %vm611_vm6, %v2334_v26  ;;  %7132 = vmatprep.subr.mxu0 %v7754_v0  ;;  %v2853_v26 = vrot.slane %v584_v25, 2 }
0x1994   :  { %7133 = vmatpush3.msra.mxu0 %v7855_v35  ;;  %7136 = vmatprep.mubr.msk.f32.mxu0 %vm7755_vm0, %v7754_v0 }
0x1995   :  { %7134 = vmatprep.subr.mxu0 %v7754_v0 }
0x1996   :  { %7135 = vmatpush3.msra.mxu0 %v7863_v39 }
0x1997   :  { %7139 = vmatprep.subr.mxu0 %v7754_v0 }
0x1a4b   :  { %v2306_v37 = vpop.f32.mrf.mxu0 }
0x1a4c   :  { %v2307_v42 = vadd.f32 %v7909_v60, %v2306_v37  ;;  %v3197_v37 = vrot.slane %v584_v25, 6 }
0x1a4d   :  { %v7102_v27 = vpop.f32.mrf.mxu0 }
0x1a4e   :  { %2316 = vrot.lane.b32.xlu1 %v2307_v42, %s7757_s8  ;;  %v2310_v35 = vadd.f32 %v2307_v42, %v2232_v30  ;;  %v589_v42 = vadd.f32 %v7905_v58, %v6488_v22 }
0x1a50   :  { %v2311_v31 = vmul.f32 0.5, %v2310_v35  ;;  %v3541_v27 = vrot.slane %v589_v42, 2 }
0x1a52   :  { %7577 = vtanh.f32 %v2311_v31 }
0x1a53   :  { %v2403_v28 = vpop.f32.mrf.mxu0 }
0x1a54   :  { %v2404_v3 = vadd.f32 %v7943_v10, %v2403_v28 }
0x1a55   :  { %v7113_v29 = vpop.f32.mrf.mxu0 }
0x1a56   :  { %v6517_v29 = vld [vmem:[#allocation2 + $0x300] ss:$0 sm:$0xff] }
0x1a5f   :  { %v7578_v32 = vpop.eup %7577 }
0x1a60   :  { %v2313_v33 = vmul.f32 0.5, %v7578_v32 }
0x1a62   :  { %v2314_v34 = vadd.f32 0.5, %v2313_v33 }
0x1a64   :  { %v2326_v43 = vsub.f32 1.0, %v2314_v34  ;;  %v2332_v45 = vmul.f32 %v2314_v34, %v2161_v24  ;;  %v73_v24 = vld [vmem:[#allocation2 + $0x2a0] sm:$0xff] }
0x1ac0   :  { %v2317_v36 = vpop.permute.xlu1 %2316 }
0x1ac1   :  { %v2319_v39 = vmul.f32 %v2317_v36, %v2314_v34 }
0x1ac3   :  { %2321 = vrot.lane.b32.xlu0 %v2319_v39, %s7758_s9 }
0x1b35   :  { %v2322_v38 = vpop.permute.xlu0 %2321 }
0x1b36   :  { %v2324_v40 = vadd.f32 %v2322_v38, %v2232_v30 }
0x1b38   :  { %7579 = vtanh.f32 %v2324_v40 }
0x1b45   :  { %v7580_v41 = vpop.eup %7579 }
0x1b46   :  { %2328 = vrot.lane.b32.xlu1 %v7580_v41, %s7759_s10 }
0x1bb8   :  { %v2329_v44 = vpop.permute.xlu1 %2328 }
0x1bb9   :  { %v2331_v48 = vmul.f32 %v2329_v44, %v2326_v43 }
0x1bbb   :  { %v2333_v51 = vadd.f32 %v2332_v45, %v2331_v48 }
0x1bbd   :  { %2408 = vrot.lane.b32.xlu0 %v2333_v51, %s7759_s10 }
0x1c2f   :  { %v2409_v53 = vpop.permute.xlu0 %2408 }
0x1c30   :  { %7119 = vmatmul.mubr.msk.f32.vlgmr.msra.gmra.mxu1 %vm220_vm5, %v2409_v53 }
0x1c31   :  { %7122 = vmatpush3.msra.mxu1 %v7675_v55  ;;  %7129 = vmatprep.mubr.msk.f32.mxu1 %vm7755_vm0, %v7754_v0 }
0x1c32   :  { %7123 = vmatprep.subr.mxu1 %v7754_v0 }
0x1c33   :  { %7124 = vmatpush3.msra.mxu1 %v7676_v56 }
0x1c34   :  { %7125 = vmatprep.subr.mxu1 %v7754_v0 }
0x1c35   :  { %7126 = vmatpush3.msra.mxu1 %v7876_v46 }
0x1c36   :  { %7127 = vmatprep.subr.mxu1 %v7754_v0 }
0x1c37   :  { %7128 = vmatpush3.msra.mxu1 %v7882_v47 }
0x1c38   :  { %7130 = vmatmul.mubr.msk.f32.vlgmr.msra.gmra.mxu1 %vm611_vm6, %v2506_v57  ;;  %7146 = vmatprep.subr.mxu1 %v7754_v0 }
0x1c39   :  { %7150 = vmatprep.mubr.msk.f32.mxu1 %vm7755_vm0, %v7754_v0  ;;  %7147 = vmatpush3.msra.mxu1 %v8218_v9 }
0x1c3a   :  { %7148 = vmatprep.subr.mxu1 %v7754_v0 }
0x1c3b   :  { %7149 = vmatpush3.msra.mxu1 %v8220_v11 }
0x1c3c   :  { %7151 = vmatmul.mubr.f32.vlgmr.msra.gmra.mxu1 %v7754_v0  ;;  %7160 = vmatprep.subr.mxu1 %v7754_v0 }
0x1c3d   :  { %7161 = vmatpush3.msra.mxu1 %v8218_v9  ;;  %7164 = vmatprep.mubr.msk.f32.mxu1 %vm7755_vm0, %v7754_v0 }
0x1c3e   :  { %7162 = vmatprep.subr.mxu1 %v7754_v0 }
0x1c3f   :  { %7163 = vmatpush3.msra.mxu1 %v8220_v11 }
0x1c40   :  { %7174 = vmatprep.subr.mxu1 %v7754_v0 }
0x1cf0   :  { %v2478_v62 = vpop.f32.mrf.mxu1 }
0x1cf1   :  { %v2479_v1 = vadd.f32 %v7909_v60, %v2478_v62 }
0x1cf2   :  { %v7120_v54 = vpop.f32.mrf.mxu1 }
0x1cf3   :  { %2488 = vrot.lane.b32.xlu1 %v2479_v1, %s7757_s8  ;;  %v2482_v5 = vadd.f32 %v2479_v1, %v2404_v3 }
0x1cf5   :  { %v2483_v47 = vmul.f32 0.5, %v2482_v5 }
0x1cf7   :  { %7581 = vtanh.f32 %v2483_v47 }
0x1cf8   :  { %v8214_v46 = vpop.f32.mrf.mxu1 }
0x1cfa   :  { %v7131_v2 = vpop.f32.mrf.mxu1 }
0x1cfc   :  { %v2825_v18 = vpop.f32.mrf.mxu1 }
0x1cfd   :  { %v2826_v19 = vadd.f32 %v8238_v17, %v2825_v18 }
0x1cfe   :  { %v7152_v20 = vpop.f32.mrf.mxu1 }
0x1d04   :  { %v7582_v50 = vpop.eup %7581 }
0x1d05   :  { %v2485_v61 = vmul.f32 0.5, %v7582_v50 }
0x1d07   :  { %v2486_v6 = vadd.f32 0.5, %v2485_v61 }
0x1d09   :  { %v2498_v12 = vsub.f32 1.0, %v2486_v6  ;;  %v2504_v14 = vmul.f32 %v2486_v6, %v2333_v51 }
0x1d65   :  { %v2489_v4 = vpop.permute.xlu1 %2488 }
0x1d66   :  { %v2491_v7 = vmul.f32 %v2489_v4, %v2486_v6 }
0x1d68   :  { %2493 = vrot.lane.b32.xlu0 %v2491_v7, %s7758_s9 }
0x1dda   :  { %v2494_v8 = vpop.permute.xlu0 %2493 }
0x1ddb   :  { %v2496_v60 = vadd.f32 %v2494_v8, %v2404_v3 }
0x1ddd   :  { %7583 = vtanh.f32 %v2496_v60 }
0x1dea   :  { %v7584_v10 = vpop.eup %7583 }
0x1deb   :  { %2500 = vrot.lane.b32.xlu1 %v7584_v10, %s7759_s10 }
0x1def   :  { %2835 = vrot.lane.b32.xlu1 %v2826_v19, %s7757_s8 }
0x1e5d   :  { %v2501_v13 = vpop.permute.xlu1 %2500 }
0x1e5e   :  { %v2503_v15 = vmul.f32 %v2501_v13, %v2498_v12 }
0x1e60   :  { %v8234_v16 = vadd.f32 %v2504_v14, %v2503_v15 }
0x1e61   :  { %v2836_v54 = vpop.permute.xlu1 %2835 }
0x1e62   :  { %2580 = vrot.lane.b32.xlu0 %v8234_v16, %s7759_s10 }
0x1ed4   :  { %v2581_v23 = vpop.permute.xlu0 %2580 }
0x1ed5   :  { %7137 = vmatmul.mubr.msk.f32.vlgmr.msra.gmra.mxu0 %vm220_vm5, %v2581_v23 }
0x1ed6   :  { %7140 = vmatpush3.msra.mxu0 %v74_v21  ;;  %7143 = vmatprep.mubr.msk.f32.mxu0 %vm7755_vm0, %v7754_v0 }
0x1ed7   :  { %7141 = vmatprep.subr.mxu0 %v7754_v0 }
0x1ed8   :  { %7142 = vmatpush3.msra.mxu0 %v73_v24 }
0x1ed9   :  { %7144 = vmatmul.mubr.msk.f32.vlgmr.msra.gmra.mxu0 %vm220_vm5, %v584_v25  ;;  %7153 = vmatprep.subr.mxu0 %v7754_v0 }
0x1eda   :  { %7154 = vmatpush3.msra.mxu0 %v74_v21  ;;  %7157 = vmatprep.mubr.msk.f32.mxu0 %vm7755_vm0, %v7754_v0 }
0x1edb   :  { %7155 = vmatprep.subr.mxu0 %v7754_v0 }
0x1edc   :  { %7156 = vmatpush3.msra.mxu0 %v73_v24 }
0x1edd   :  { %7158 = vmatmul.mubr.msk.f32.vlgmr.msra.gmra.mxu0 %vm220_vm5, %v2853_v26  ;;  %7167 = vmatprep.subr.mxu0 %v7754_v0 }
0x1ede   :  { %7168 = vmatpush3.msra.mxu0 %v74_v21  ;;  %7171 = vmatprep.mubr.msk.f32.mxu0 %vm7755_vm0, %v7754_v0 }
0x1edf   :  { %7169 = vmatprep.subr.mxu0 %v7754_v0 }
0x1ee0   :  { %7170 = vmatpush3.msra.mxu0 %v73_v24 }
0x1ee1   :  { %7172 = vmatmul.mubr.msk.f32.vlgmr.msra.gmra.mxu0 %vm220_vm5, %v3025_v59  ;;  %7181 = vmatprep.subr.mxu0 %v7754_v0 }
0x1ee2   :  { %7182 = vmatpush3.msra.mxu0 %v74_v21  ;;  %7185 = vmatprep.mubr.msk.f32.mxu0 %vm7755_vm0, %v7754_v0 }
0x1ee3   :  { %7183 = vmatprep.subr.mxu0 %v7754_v0 }
0x1ee4   :  { %7184 = vmatpush3.msra.mxu0 %v73_v24 }
0x1ee5   :  { %7186 = vmatmul.mubr.msk.f32.vlgmr.msra.gmra.mxu0 %vm220_vm5, %v3197_v37  ;;  %7195 = vmatprep.subr.mxu0 %v7754_v0 }
0x1ee6   :  { %7196 = vmatpush3.msra.mxu0 %v74_v21  ;;  %7199 = vmatprep.mubr.msk.f32.mxu0 %vm7755_vm0, %v7754_v0 }
0x1ee7   :  { %7197 = vmatprep.subr.mxu0 %v7754_v0 }
0x1ee8   :  { %7198 = vmatpush3.msra.mxu0 %v73_v24 }
0x1ee9   :  { %7200 = vmatmul.mubr.msk.f32.vlgmr.msra.gmra.mxu0 %vm220_vm5, %v589_v42  ;;  %7209 = vmatprep.subr.mxu0 %v7754_v0 }
0x1eea   :  { %7210 = vmatpush3.msra.mxu0 %v74_v21  ;;  %7213 = vmatprep.mubr.msk.f32.mxu0 %vm7755_vm0, %v7754_v0 }
0x1eeb   :  { %7211 = vmatprep.subr.mxu0 %v7754_v0 }
0x1eec   :  { %7212 = vmatpush3.msra.mxu0 %v73_v24 }
0x1eed   :  { %7214 = vmatmul.mubr.msk.f32.vlgmr.msra.gmra.mxu0 %vm220_vm5, %v3541_v27  ;;  %7223 = vmatprep.subr.mxu0 %v7754_v0 }
0x1eee   :  { %7231 = vmatprep.mubr.msk.f32.mxu0 %vm7755_vm0, %v7754_v0 }
0x1f95   :  { %v8277_v58 = vpop.f32.mrf.mxu0 }
0x1f97   :  { %v7138_v28 = vpop.f32.mrf.mxu0 }
0x1f99   :  { %v2751_v30 = vpop.f32.mrf.mxu0 }
0x1f9a   :  { %v2752_v35 = vadd.f32 %v6517_v29, %v2751_v30 }
0x1f9b   :  { %v7145_v31 = vpop.f32.mrf.mxu0 }
0x1f9c   :  { %v2829_v32 = vadd.f32 %v2826_v19, %v2752_v35 }
0x1f9d   :  { %v2922_v33 = vpop.f32.mrf.mxu0 }
0x1f9e   :  { %v2830_v34 = vmul.f32 0.5, %v2829_v32  ;;  %v2923_v36 = vadd.f32 %v6517_v29, %v2922_v33 }
0x1f9f   :  { %v7159_v39 = vpop.f32.mrf.mxu0 }
0x1fa0   :  { %7585 = vtanh.f32 %v2830_v34 }
0x1fa1   :  { %v3094_v38 = vpop.f32.mrf.mxu0 }
0x1fa2   :  { %v8279_v40 = vadd.f32 %v6517_v29, %v3094_v38 }
0x1fa3   :  { %v7173_v41 = vpop.f32.mrf.mxu0 }
0x1fa5   :  { %v3266_v43 = vpop.f32.mrf.mxu0 }
0x1fa6   :  { %v8281_v44 = vadd.f32 %v6517_v29, %v3266_v43 }
0x1fa7   :  { %v7187_v45 = vpop.f32.mrf.mxu0 }
0x1fa9   :  { %v3438_v48 = vpop.f32.mrf.mxu0 }
0x1faa   :  { %v8283_v51 = vadd.f32 %v6517_v29, %v3438_v48 }
0x1fab   :  { %v7201_v53 = vpop.f32.mrf.mxu0 }
0x1fad   :  { %v7586_v55 = vpop.eup %7585  ;;  %v3610_v56 = vpop.f32.mrf.mxu0 }
0x1fae   :  { %v8285_v57 = vadd.f32 %v6517_v29, %v3610_v56  ;;  %v2832_v62 = vmul.f32 0.5, %v7586_v55 }
0x1faf   :  { %v7215_v1 = vpop.f32.mrf.mxu0 }
0x1fb0   :  { %v2833_v2 = vadd.f32 0.5, %v2832_v62 }
0x1fb2   :  { %v2838_v3 = vmul.f32 %v2836_v54, %v2833_v2  ;;  %v2845_v61 = vsub.f32 1.0, %v2833_v2  ;;  %v2851_v4 = vmul.f32 0.0, %v2833_v2 }
0x1fb4   :  { %2840 = vrot.lane.b32.xlu0 %v2838_v3, %s7758_s9 }
0x2026   :  { %v2841_v5 = vpop.permute.xlu0 %2840 }
0x2027   :  { %v2843_v47 = vadd.f32 %v2841_v5, %v2752_v35 }
0x2029   :  { %7587 = vtanh.f32 %v2843_v47 }
0x2036   :  { %v7588_v50 = vpop.eup %7587 }
0x2037   :  { %2847 = vrot.lane.b32.xlu1 %v7588_v50, %s7759_s10 }
0x20a9   :  { %v2848_v6 = vpop.permute.xlu1 %2847 }
0x20aa   :  { %v2850_v7 = vmul.f32 %v2848_v6, %v2845_v61 }
0x20ac   :  { %v2852_v8 = vadd.f32 %v2851_v4, %v2850_v7 }
0x20ae   :  { %2927 = vrot.lane.b32.xlu0 %v2852_v8, %s7759_s10 }
0x2120   :  { %v2928_v60 = vpop.permute.xlu0 %2927 }
0x2121   :  { %7165 = vmatmul.mubr.msk.f32.vlgmr.msra.gmra.mxu1 %vm220_vm5, %v2928_v60 }
0x2122   :  { %7175 = vmatpush3.msra.mxu1 %v8218_v9  ;;  %7178 = vmatprep.mubr.msk.f32.mxu1 %vm7755_vm0, %v7754_v0 }
0x2123   :  { %7176 = vmatprep.subr.mxu1 %v7754_v0 }
0x2124   :  { %7177 = vmatpush3.msra.mxu1 %v8220_v11 }
0x2125   :  { %7188 = vmatprep.subr.mxu1 %v7754_v0 }
0x21e1   :  { %v2997_v10 = vpop.f32.mrf.mxu1 }
0x21e2   :  { %v2998_v12 = vadd.f32 %v8238_v17, %v2997_v10 }
0x21e3   :  { %v7166_v13 = vpop.f32.mrf.mxu1 }
0x21e4   :  { %3007 = vrot.lane.b32.xlu1 %v2998_v12, %s7757_s8  ;;  %v3001_v14 = vadd.f32 %v2998_v12, %v2923_v36 }
0x21e6   :  { %v3002_v15 = vmul.f32 0.5, %v3001_v14 }
0x21e8   :  { %7589 = vtanh.f32 %v3002_v15 }
0x21f5   :  { %v7590_v18 = vpop.eup %7589 }
0x21f6   :  { %v3004_v19 = vmul.f32 0.5, %v7590_v18 }
0x21f8   :  { %v3005_v20 = vadd.f32 0.5, %v3004_v19 }
0x21fa   :  { %v3017_v26 = vsub.f32 1.0, %v3005_v20  ;;  %v3023_v37 = vmul.f32 %v3005_v20, %v2852_v8 }
0x2256   :  { %v3008_v21 = vpop.permute.xlu1 %3007 }
0x2257   :  { %v3010_v22 = vmul.f32 %v3008_v21, %v3005_v20 }
0x2259   :  { %3012 = vrot.lane.b32.xlu0 %v3010_v22, %s7758_s9 }
0x22cb   :  { %v3013_v23 = vpop.permute.xlu0 %3012 }
0x22cc   :  { %v3015_v24 = vadd.f32 %v3013_v23, %v2923_v36 }
0x22ce   :  { %7591 = vtanh.f32 %v3015_v24 }
0x22db   :  { %v7592_v25 = vpop.eup %7591 }
0x22dc   :  { %3019 = vrot.lane.b32.xlu1 %v7592_v25, %s7759_s10 }
0x234e   :  { %v3020_v59 = vpop.permute.xlu1 %3019 }
0x234f   :  { %v3022_v42 = vmul.f32 %v3020_v59, %v3017_v26 }
0x2351   :  { %v3024_v27 = vadd.f32 %v3023_v37, %v3022_v42  ;;  %v7677_v42 = vld [vmem:[#allocation2 + $0x210] ss:$0 sm:$0xff] }
0x2353   :  { %3099 = vrot.lane.b32.xlu0 %v3024_v27, %s7759_s10 }
0x23c5   :  { %v3100_v28 = vpop.permute.xlu0 %3099 }
0x23c6   :  { %7179 = vmatmul.mubr.msk.f32.vlgmr.msra.gmra.mxu1 %vm220_vm5, %v3100_v28  ;;  %v7678_v28 = vld [vmem:[#allocation2 + $0x1e0] ss:$0 sm:$0xff] }
0x23c7   :  { %7189 = vmatpush3.msra.mxu1 %v8218_v9  ;;  %7192 = vmatprep.mubr.msk.f32.mxu1 %vm7755_vm0, %v7754_v0 }
0x23c8   :  { %7190 = vmatprep.subr.mxu1 %v7754_v0 }
0x23c9   :  { %7191 = vmatpush3.msra.mxu1 %v8220_v11 }
0x23ca   :  { %7202 = vmatprep.subr.mxu1 %v7754_v0 }
0x2486   :  { %v3169_v29 = vpop.f32.mrf.mxu1 }
0x2487   :  { %v3170_v30 = vadd.f32 %v8238_v17, %v3169_v29  ;;  %v2576_v29 = vadd.f32 %v7678_v28, %v8214_v46  ;;  %v4086_v28 = vld [vmem:[#allocation2 + $0x6c0] sm:$0xff] }
0x2488   :  { %v7180_v35 = vpop.f32.mrf.mxu1 }
0x2489   :  { %3179 = vrot.lane.b32.xlu1 %v3170_v30, %s7757_s8  ;;  %v3173_v31 = vadd.f32 %v3170_v30, %v8279_v40 }
0x248b   :  { %v3174_v32 = vmul.f32 0.5, %v3173_v31 }
0x248d   :  { %7593 = vtanh.f32 %v3174_v32 }
0x249a   :  { %v7594_v33 = vpop.eup %7593 }
0x249b   :  { %v3176_v34 = vmul.f32 0.5, %v7594_v33 }
0x249d   :  { %v3177_v36 = vadd.f32 0.5, %v3176_v34 }
0x249f   :  { %v3189_v48 = vsub.f32 1.0, %v3177_v36  ;;  %v3195_v55 = vmul.f32 %v3177_v36, %v3024_v27  ;;  %v2651_v27 = vadd.f32 %v7677_v42, %v8277_v58 }
0x24a1   :  { %v2654_v30 = vadd.f32 %v2651_v27, %v2576_v29 }
0x24a3   :  { %v2655_v35 = vmul.f32 0.5, %v2654_v30 }
0x24fb   :  { %v3180_v39 = vpop.permute.xlu1 %3179 }
0x24fc   :  { %v3182_v38 = vmul.f32 %v3180_v39, %v3177_v36 }
0x24fe   :  { %3184 = vrot.lane.b32.xlu0 %v3182_v38, %s7758_s9 }
0x2570   :  { %v3185_v41 = vpop.permute.xlu0 %3184 }
0x2571   :  { %v3187_v43 = vadd.f32 %v3185_v41, %v8279_v40 }
0x2573   :  { %7595 = vtanh.f32 %v3187_v43 }
0x2580   :  { %v7596_v45 = vpop.eup %7595 }
0x2581   :  { %3191 = vrot.lane.b32.xlu1 %v7596_v45, %s7759_s10 }
0x25f3   :  { %v3192_v53 = vpop.permute.xlu1 %3191 }
0x25f4   :  { %v3194_v56 = vmul.f32 %v3192_v53, %v3189_v48 }
0x25f6   :  { %v3196_v62 = vadd.f32 %v3195_v55, %v3194_v56 }
0x25f8   :  { %3271 = vrot.lane.b32.xlu0 %v3196_v62, %s7759_s10 }
0x266a   :  { %v3272_v1 = vpop.permute.xlu0 %3271 }
0x266b   :  { %7193 = vmatmul.mubr.msk.f32.vlgmr.msra.gmra.mxu1 %vm220_vm5, %v3272_v1 }
0x266c   :  { %7203 = vmatpush3.msra.mxu1 %v8218_v9  ;;  %7206 = vmatprep.mubr.msk.f32.mxu1 %vm7755_vm0, %v7754_v0 }
0x266d   :  { %7204 = vmatprep.subr.mxu1 %v7754_v0 }
0x266e   :  { %7205 = vmatpush3.msra.mxu1 %v8220_v11 }
0x266f   :  { %7216 = vmatprep.subr.mxu1 %v7754_v0 }
0x272b   :  { %v3341_v40 = vpop.f32.mrf.mxu1 }
0x272c   :  { %v3342_v54 = vadd.f32 %v8238_v17, %v3341_v40  ;;  %v4259_v40 = vrot.slane %v8128_v49, 2 }
0x272d   :  { %v7194_v2 = vpop.f32.mrf.mxu1 }
0x272e   :  { %3351 = vrot.lane.b32.xlu1 %v3342_v54, %s7757_s8  ;;  %v3345_v3 = vadd.f32 %v3342_v54, %v8281_v44 }
0x2730   :  { %v3346_v5 = vmul.f32 0.5, %v3345_v3 }
0x2732   :  { %7597 = vtanh.f32 %v3346_v5 }
0x273f   :  { %v7598_v47 = vpop.eup %7597 }
0x2740   :  { %v3348_v50 = vmul.f32 0.5, %v7598_v47 }
0x2742   :  { %v3349_v61 = vadd.f32 0.5, %v3348_v50 }
0x2744   :  { %v3361_v10 = vsub.f32 1.0, %v3349_v61  ;;  %v3367_v13 = vmul.f32 %v3349_v61, %v3196_v62 }
0x27a0   :  { %v3352_v6 = vpop.permute.xlu1 %3351 }
0x27a1   :  { %v3354_v4 = vmul.f32 %v3352_v6, %v3349_v61 }
0x27a3   :  { %3356 = vrot.lane.b32.xlu0 %v3354_v4, %s7758_s9 }
0x2815   :  { %v3357_v7 = vpop.permute.xlu0 %3356 }
0x2816   :  { %v3359_v8 = vadd.f32 %v3357_v7, %v8281_v44  ;;  %v3724_v7 = vld [vmem:[#allocation2 + $0x558] sm:$0xff] }
0x2817   :  { %7224 = vmatpush3.msra.mxu0 %v3724_v7 }
0x2818   :  { %7599 = vtanh.f32 %v3359_v8  ;;  %v3808_v8 = vld [vmem:[#allocation2 + $0x5b8] sm:$0xff]  ;;  %7225 = vmatprep.subr.mxu0 %v7754_v0 }
0x2825   :  { %v7600_v60 = vpop.eup %7599 }
0x2826   :  { %3363 = vrot.lane.b32.xlu1 %v7600_v60, %s7759_s10  ;;  %v3723_v60 = vld [vmem:[#allocation2 + $0x550] sm:$0xff] }
0x2827   :  { %7226 = vmatpush3.msra.mxu0 %v3723_v60 }
0x2828   :  { %7227 = vmatprep.subr.mxu0 %v7754_v0 }
0x2898   :  { %v3364_v12 = vpop.permute.xlu1 %3363 }
0x2899   :  { %v3366_v14 = vmul.f32 %v3364_v12, %v3361_v10 }
0x289b   :  { %v3368_v15 = vadd.f32 %v3367_v13, %v3366_v14  ;;  %v3722_v13 = vld [vmem:[#allocation2 + $0x548] sm:$0xff] }
0x289c   :  { %v3806_v14 = vld [vmem:[#allocation2 + $0x5a8] sm:$0xff]  ;;  %7228 = vmatpush3.msra.mxu0 %v3722_v13 }
0x289d   :  { %3443 = vrot.lane.b32.xlu0 %v3368_v15, %s7759_s10  ;;  %7229 = vmatprep.subr.mxu0 %v7754_v0 }
0x290f   :  { %v3444_v18 = vpop.permute.xlu0 %3443 }
0x2910   :  { %7207 = vmatmul.mubr.msk.f32.vlgmr.msra.gmra.mxu1 %vm220_vm5, %v3444_v18  ;;  %v3805_v18 = vld [vmem:[#allocation2 + $0x5a0] sm:$0xff] }
0x2911   :  { %7217 = vmatpush3.msra.mxu1 %v8218_v9  ;;  %7220 = vmatprep.mubr.msk.f32.mxu1 %vm7755_vm0, %v7754_v0 }
0x2912   :  { %7218 = vmatprep.subr.mxu1 %v7754_v0 }
0x2913   :  { %7219 = vmatpush3.msra.mxu1 %v8220_v11 }
0x2914   :  { %7234 = vmatprep.subr.mxu1 %v7754_v0 }
0x29d0   :  { %v3513_v44 = vpop.f32.mrf.mxu1 }
0x29d1   :  { %v3514_v19 = vadd.f32 %v8238_v17, %v3513_v44 }
0x29d2   :  { %v7208_v20 = vpop.f32.mrf.mxu1 }
0x29d3   :  { %3523 = vrot.lane.b32.xlu1 %v3514_v19, %s7757_s8  ;;  %v3517_v21 = vadd.f32 %v3514_v19, %v8283_v51 }
0x29d5   :  { %v3518_v22 = vmul.f32 0.5, %v3517_v21 }
0x29d7   :  { %7601 = vtanh.f32 %v3518_v22 }
0x29e4   :  { %v7602_v9 = vpop.eup %7601 }
0x29e5   :  { %v3520_v23 = vmul.f32 0.5, %v7602_v9  ;;  %v3898_v9 = vld [vmem:[#allocation2 + $0x618] sm:$0xff] }
0x29e7   :  { %v3521_v24 = vadd.f32 0.5, %v3520_v23  ;;  %v3982_v23 = vld [vmem:[#allocation2 + $0x678] sm:$0xff] }
0x29e9   :  { %v3533_v32 = vsub.f32 1.0, %v3521_v24 }
0x2a45   :  { %v3524_v25 = vpop.permute.xlu1 %3523 }
0x2a46   :  { %v3526_v26 = vmul.f32 %v3524_v25, %v3521_v24  ;;  %v3897_v25 = vld [vmem:[#allocation2 + $0x610] sm:$0xff] }
0x2a48   :  { %3528 = vrot.lane.b32.xlu0 %v3526_v26, %s7758_s9  ;;  %v3981_v26 = vld [vmem:[#allocation2 + $0x670] sm:$0xff] }
0x2aba   :  { %v3529_v11 = vpop.permute.xlu0 %3528 }
0x2abb   :  { %v3531_v59 = vadd.f32 %v3529_v11, %v8283_v51  ;;  %v3539_v51 = vmul.f32 %v3521_v24, %v3368_v15  ;;  %v3721_v15 = vld [vmem:[#allocation2 + $0x540] sm:$0xff]  ;;  %v3896_v11 = vld [vmem:[#allocation2 + $0x608] sm:$0xff] }
0x2abc   :  { %7230 = vmatpush3.msra.mxu0 %v3721_v15 }
0x2abd   :  { %7603 = vtanh.f32 %v3531_v59  ;;  %7245 = vmatprep.subr.mxu0 %v7754_v0  ;;  %v3980_v59 = vld [vmem:[#allocation2 + $0x668] sm:$0xff] }
0x2abe   :  { %7605 = vtanh.f32 %v2655_v35 }
0x2aca   :  { %v7604_v37 = vpop.eup %7603 }
0x2acb   :  { %3535 = vrot.lane.b32.xlu1 %v7604_v37, %s7759_s10  ;;  %v7606_v31 = vpop.eup %7605  ;;  %v3979_v37 = vld [vmem:[#allocation2 + $0x660] sm:$0xff] }
0x2acc   :  { %v2657_v33 = vmul.f32 0.5, %v7606_v31 }
0x2ace   :  { %v2658_v38 = vadd.f32 0.5, %v2657_v33 }
0x2acf   :  { %2660 = vrot.lane.b32.xlu1 %v2651_v27, %s7757_s8 }
0x2ad0   :  { %v2670_v53 = vsub.f32 1.0, %v2658_v38  ;;  %v2676_v56 = vmul.f32 %v2658_v38, %v8234_v16 }
0x2b3d   :  { %v3536_v34 = vpop.permute.xlu1 %3535 }
0x2b3e   :  { %v3538_v36 = vmul.f32 %v3536_v34, %v3533_v32 }
0x2b40   :  { %v8346_v39 = vadd.f32 %v3539_v51, %v3538_v36  ;;  %v6530_v36 = vld [vmem:[#allocation2 + $0x570] ss:$0 sm:$0xff] }
0x2b41   :  { %v2661_v41 = vpop.permute.xlu1 %2660 }
0x2b42   :  { %v2663_v43 = vmul.f32 %v2661_v41, %v2658_v38  ;;  %3615 = vrot.lane.b32.xlu0 %v8346_v39, %s7759_s10  ;;  %v6534_v38 = vld [vmem:[#allocation2 + $0x630] ss:$0 sm:$0xff] }
0x2b43   :  { %v6536_v41 = vld [vmem:[#allocation2 + $0x690] ss:$0 sm:$0xff] }
0x2b44   :  { %2665 = vrot.lane.b32.xlu1 %v2663_v43, %s7758_s9 }
0x2bb4   :  { %v3616_v46 = vpop.permute.xlu0 %3615 }
0x2bb5   :  { %7221 = vmatmul.mubr.msk.f32.vlgmr.msra.gmra.mxu1 %vm220_vm5, %v3616_v46 }
0x2bb6   :  { %v2666_v58 = vpop.permute.xlu1 %2665  ;;  %7242 = vmatprep.mubr.msk.f32.mxu1 %vm7755_vm0, %v7754_v0  ;;  %7235 = vmatpush3.msra.mxu1 %v3808_v8 }
0x2bb7   :  { %v2668_v45 = vadd.f32 %v2666_v58, %v2576_v29  ;;  %7236 = vmatprep.subr.mxu1 %v7754_v0  ;;  %v6532_v29 = vld [vmem:[#allocation2 + $0x5d0] ss:$0 sm:$0xff] }
0x2bb9   :  { %7607 = vtanh.f32 %v2668_v45 }
0x2bc6   :  { %v7608_v48 = vpop.eup %7607 }
0x2bc7   :  { %2672 = vrot.lane.b32.xlu1 %v7608_v48, %s7759_s10 }
0x2c39   :  { %v2673_v55 = vpop.permute.xlu1 %2672 }
0x2c3a   :  { %v2675_v62 = vmul.f32 %v2673_v55, %v2670_v53 }
0x2c3c   :  { %v2677_v1 = vadd.f32 %v2676_v56, %v2675_v62 }
0x2c3e   :  { %3716 = vrot.lane.b32.xlu1 %v2677_v1, %s7759_s10 }
0x2c42   :  { %4260 = vrot.lane.b32.xlu1 %v4259_v40, %s7756_s7 }
0x2c75   :  { %v3685_v54 = vpop.f32.mrf.mxu1 }
0x2c76   :  { %v3686_v2 = vadd.f32 %v8238_v17, %v3685_v54  ;;  %v3807_v17 = vld [vmem:[#allocation2 + $0x5b0] sm:$0xff] }
0x2c77   :  { %v7222_v3 = vpop.f32.mrf.mxu1  ;;  %7237 = vmatpush3.msra.mxu1 %v3807_v17  ;;  %v38_v17 = vld [vmem:[%s8839_s0 + $0x48] sm:$0x3] }
0x2c78   :  { %3695 = vrot.lane.b32.xlu0 %v3686_v2, %s7757_s8  ;;  %v3689_v5 = vadd.f32 %v3686_v2, %v8285_v57  ;;  %7238 = vmatprep.subr.mxu1 %v7754_v0 }
0x2c79   :  { %7239 = vmatpush3.msra.mxu1 %v3806_v14 }
0x2c7a   :  { %v3690_v47 = vmul.f32 0.5, %v3689_v5  ;;  %7240 = vmatprep.subr.mxu1 %v7754_v0 }
0x2c7b   :  { %7241 = vmatpush3.msra.mxu1 %v3805_v18  ;;  %v8405_v18 = vld [vmem:[#allocation2 + $0x378] sm:$0xff] }
0x2c7c   :  { %7609 = vtanh.f32 %v3690_v47  ;;  %7256 = vmatprep.subr.mxu1 %v7754_v0 }
0x2c89   :  { %v7610_v50 = vpop.eup %7609 }
0x2c8a   :  { %v3692_v16 = vmul.f32 0.5, %v7610_v50 }
0x2c8c   :  { %v3693_v61 = vadd.f32 0.5, %v3692_v16 }
0x2c8e   :  { %v3711_v20 = vmul.f32 %v3693_v61, %v8346_v39 }
0x2cb0   :  { %v3717_v42 = vpop.permute.xlu1 %3716 }
0x2cea   :  { %v3696_v6 = vpop.permute.xlu0 %3695 }
0x2ceb   :  { %v3698_v4 = vmul.f32 %v3696_v6, %v3693_v61 }
0x2ced   :  { %3700 = vrot.lane.b32.xlu0 %v3698_v4, %s7758_s9 }
0x2d5f   :  { %v3701_v10 = vpop.permute.xlu0 %3700 }
0x2d60   :  { %v3703_v12 = vadd.f32 %v3701_v10, %v8285_v57  ;;  %v3705_v57 = vsub.f32 1.0, %v3693_v61 }
0x2d62   :  { %7611 = vtanh.f32 %v3703_v12 }
0x2d6f   :  { %v7612_v44 = vpop.eup %7611 }
0x2d70   :  { %3707 = vrot.lane.b32.xlu0 %v7612_v44, %s7759_s10 }
0x2de2   :  { %v3708_v19 = vpop.permute.xlu0 %3707 }
0x2de3   :  { %v3710_v21 = vmul.f32 %v3708_v19, %v3705_v57  ;;  %v8407_v57 = vpop.permute.xlu1 %4260  ;;  %v8409_v19 = vld [vmem:[#allocation2 + $0x370] sm:$0xff] }
0x2de5   :  { %v3712_v22 = vadd.f32 %v3711_v20, %v3710_v21  ;;  %v8415_v20 = vld [vmem:[#allocation2 + $0x368] sm:$0xff]  ;;  %v4263_v21 = vsel %vm220_vm5, %v8020_v63, %v8407_v57 }
0x2de7   :  { %v8376_v24 = vsel %vm220_vm5, %v8146_v52, %v3712_v22  ;;  %v3895_v52 = vld [vmem:[#allocation2 + $0x600] sm:$0xff]  ;;  %v3719_v27 = vsel %vm220_vm5, %v3717_v42, %v3712_v22  ;;  %v4178_v42 = vld [vmem:[#allocation2 + $0x748] sm:$0xff] }
0x2de8   :  { %7232 = vmatmul.mubr.msk.f32.vlgmr.msra.gmra.mxu0 %vm611_vm6, %v8376_v24  ;;  %7243 = vmatmul.mubr.msk.f32.vlgmr.msra.gmra.mxu1 %vm611_vm6, %v8376_v24 }
0x2de9   :  { %7246 = vmatpush3.msra.mxu0 %v3898_v9  ;;  %7257 = vmatpush3.msra.mxu1 %v3982_v23  ;;  %v8422_v9 = vld [vmem:[#allocation2 + $0x360] sm:$0xff] }
0x2dea   :  { %7247 = vmatprep.subr.mxu0 %v7754_v0  ;;  %7258 = vmatprep.subr.mxu1 %v7754_v0 }
0x2deb   :  { %7248 = vmatpush3.msra.mxu0 %v3897_v25  ;;  %7259 = vmatpush3.msra.mxu1 %v3981_v26  ;;  %v4269_v25 = vrot.slane %v4263_v21, 6 }
0x2dec   :  { %7249 = vmatprep.subr.mxu0 %v7754_v0  ;;  %7260 = vmatprep.subr.mxu1 %v7754_v0 }
0x2ded   :  { %7250 = vmatpush3.msra.mxu0 %v3896_v11  ;;  %7261 = vmatpush3.msra.mxu1 %v3980_v59 }
0x2dee   :  { %7251 = vmatprep.subr.mxu0 %v7754_v0  ;;  %7262 = vmatprep.subr.mxu1 %v7754_v0 }
0x2def   :  { %7252 = vmatpush3.msra.mxu0 %v3895_v52  ;;  %7253 = vmatprep.mubr.msk.f32.mxu0 %vm7755_vm0, %v7754_v0 }
0x2df0   :  { %7263 = vmatpush3.msra.mxu1 %v3979_v37  ;;  %7264 = vmatprep.mubr.msk.f32.mxu1 %vm7755_vm0, %v7754_v0 }
0x2df1   :  { %7254 = vmatmul.mubr.msk.f32.vlgmr.msra.gmra.mxu0 %vm611_vm6, %v3719_v27  ;;  %7265 = vmatmul.mubr.msk.f32.vlgmr.msra.gmra.mxu1 %vm611_vm6, %v3719_v27  ;;  %v4177_v27 = vld [vmem:[#allocation2 + $0x740] sm:$0xff] }
0x2df2   :  { %7267 = vmatprep.subr.mxu0 %v7754_v0  ;;  %7269 = vmatprep.mubr.msk.f32.mxu0 %vm7755_vm0, %v7754_v0 }
0x2df3   :  { %7272 = vmatprep.subr.mxu1 %v7754_v0  ;;  %7284 = vmatprep.mubr.msk.f32.mxu1 %vm7755_vm0, %v7754_v0 }
0x2df4   :  { %7268 = vmatpush3.msra.mxu0 %v4086_v28  ;;  %7273 = vmatpush3.msra.mxu1 %v4178_v42  ;;  %v4176_v28 = vld [vmem:[#allocation2 + $0x738] sm:$0xff] }
0x2df5   :  { %7287 = vmatprep.subr.mxu0 %v7754_v0  ;;  %7274 = vmatprep.subr.mxu1 %v7754_v0 }
0x2df6   :  { %7275 = vmatpush3.msra.mxu1 %v4177_v27 }
0x2df7   :  { %7276 = vmatprep.subr.mxu1 %v7754_v0 }
0x2df8   :  { %7277 = vmatpush3.msra.mxu1 %v4176_v28 }
0x2df9   :  { %7278 = vmatprep.subr.mxu1 %v7754_v0 }
0x2ea8   :  { %v3800_v30 = vpop.f32.mrf.mxu0  ;;  %v3881_v35 = vpop.f32.mrf.mxu1 }
0x2ea9   :  { %v3882_v31 = vadd.f32 %v6532_v29, %v3881_v35  ;;  %v3801_v58 = vadd.f32 %v6530_v36, %v3800_v30  ;;  %v4175_v29 = vld [vmem:[#allocation2 + $0x730] sm:$0xff]  ;;  %v4174_v30 = vld [vmem:[#allocation2 + $0x728] sm:$0xff]  ;;  %v4173_v35 = vld [vmem:[#allocation2 + $0x720] sm:$0xff] }
0x2eaa   :  { %v7233_v32 = vpop.f32.mrf.mxu0  ;;  %v7244_v33 = vpop.f32.mrf.mxu1  ;;  %7279 = vmatpush3.msra.mxu1 %v4175_v29 }
0x2eab   :  { %v3886_v34 = vand.u32 2147483647, %v3882_v31  ;;  %v3885_v50 = vmax.f32 %v3882_v31, 0.0  ;;  %7280 = vmatprep.subr.mxu1 %v7754_v0  ;;  %v8438_v31 = vld [vmem:[#allocation2 + $0x3a8] sm:$0xff]  ;;  %v8440_v32 = vld [vmem:[#allocation2 + $0x3a0] sm:$0xff] }
0x2eac   :  { %7281 = vmatpush3.msra.mxu1 %v4174_v30  ;;  %v6539_v33 = vld [vmem:[#allocation2 + $0x6f0] ss:$0 sm:$0xff]  ;;  %v8539_v30 = vld [vmem:[#allocation2] sm:$0x7] }
0x2ead   :  { %v3887_v51 = vsub.f32 0.0, %v3886_v34  ;;  %7282 = vmatprep.subr.mxu1 %v7754_v0 }
0x2eae   :  { %7283 = vmatpush3.msra.mxu1 %v4173_v35 }
0x2eaf   :  { %v3888_v39 = vmul.f32 1.442695, %v3887_v51  ;;  %7309 = vmatprep.subr.mxu1 %v7754_v0 }
0x2eb1   :  { %7613 = vpow2.f32 %v3888_v39  ;;  %v3974_v43 = vpop.f32.mrf.mxu0  ;;  %v4055_v46 = vpop.f32.mrf.mxu1 }
0x2eb2   :  { %v3975_v45 = vadd.f32 %v6534_v38, %v3974_v43  ;;  %v4056_v48 = vadd.f32 %v6536_v41, %v4055_v46  ;;  %v8452_v46 = vld [vmem:[#allocation2 + $0x398] sm:$0xff] }
0x2eb3   :  { %v7255_v53 = vpop.f32.mrf.mxu0  ;;  %v7266_v55 = vpop.f32.mrf.mxu1 }
0x2eb4   :  { %v4074_v56 = vsub.f32 %v3975_v45, %v3801_v58  ;;  %v4060_v62 = vand.u32 2147483647, %v4056_v48  ;;  %v4059_v8 = vmax.f32 %v4056_v48, 0.0  ;;  %v8456_v58 = vld [vmem:[#allocation2 + $0x390] sm:$0xff] }
0x2eb5   :  { %v8463_v55 = vld [vmem:[#allocation2 + $0x3f0] ss:$0 sm:$0xff] }
0x2eb6   :  { %v4061_v1 = vsub.f32 0.0, %v4060_v62  ;;  %v4075_v12 = vmul.f32 %v4074_v56, %v4074_v56 }
0x2eb8   :  { %v4062_v40 = vmul.f32 1.442695, %v4061_v1 }
0x2eba   :  { %7615 = vpow2.f32 %v4062_v40  ;;  %v8467_v40 = vld [vmem:[#allocation2 + $0x3c0] ss:$0 sm:$0xff] }
0x2ebe   :  { %v7614_v54 = vpop.eup %7613 }
0x2ebf   :  { %v3890_v2 = vadd.f32 1.0, %v7614_v54 }
0x2ec1   :  { %7617 = vlog2.f32 %v3890_v2 }
0x2ec7   :  { %v7616_v3 = vpop.eup %7615 }
0x2ec8   :  { %v4064_v5 = vadd.f32 1.0, %v7616_v3 }
0x2eca   :  { %7619 = vlog2.f32 %v4064_v5 }
0x2ece   :  { %v7618_v47 = vpop.eup %7617 }
0x2ecf   :  { %v3892_v16 = vmul.f32 0.6931472, %v7618_v47 }
0x2ed1   :  { %v3893_v61 = vadd.f32 %v3892_v16, %v3885_v50 }
0x2ed3   :  { %v4077_v6 = vmul.f32 2.0, %v3893_v61 }
0x2ed5   :  { %v4078_v4 = vmul.f32 %v4077_v6, %v3893_v61 }
0x2ed7   :  { %v7620_v7 = vpop.eup %7619  ;;  %7621 = vrcp.f32 %v4078_v4 }
0x2ed8   :  { %v4066_v60 = vmul.f32 0.6931472, %v7620_v7  ;;  %7623 = vlog2.f32 %v3893_v61  ;;  %v8472_v7 = vld [vmem:[#allocation2 + $0x438] sm:$0xff] }
0x2eda   :  { %v4067_v10 = vadd.f32 %v4066_v60, %v4059_v8  ;;  %v8474_v8 = vld [vmem:[#allocation2 + $0x430] sm:$0xff]  ;;  %v8478_v60 = vld [vmem:[#allocation2 + $0x428] sm:$0xff] }
0x2edc   :  { %7625 = vlog2.f32 %v4067_v10  ;;  %v4083_v13 = vmul.f32 %v4067_v10, %v38_v17  ;;  %v4073_v14 = vmul.f32 %v4067_v10, %v4067_v10  ;;  %v8482_v17 = vld [vmem:[#allocation2 + $0x420] sm:$0xff] }
0x2ede   :  { %v4084_v15 = vadd.f32 %v4083_v13, %v3975_v45  ;;  %v4076_v44 = vadd.f32 %v4075_v12, %v4073_v14  ;;  %v6541_v45 = vld [vmem:[#allocation2 + $0x750] ss:$0 sm:$0xff] }
0x2ee0   :  { %7270 = vmatmul.mubr.msk.f32.vlgmr.msra.gmra.mxu0 %vm4093_vm7, %v4084_v15 }
0x2ee1   :  { %7288 = vmatpush3.msra.mxu0 %v8405_v18  ;;  %7295 = vmatprep.mubr.msk.f32.mxu0 %vm7755_vm0, %v7754_v0 }
0x2ee2   :  { %7289 = vmatprep.subr.mxu0 %v7754_v0 }
0x2ee3   :  { %7290 = vmatpush3.msra.mxu0 %v8409_v19 }
0x2ee4   :  { %v7622_v22 = vpop.eup %7621  ;;  %7291 = vmatprep.subr.mxu0 %v7754_v0 }
0x2ee5   :  { %7292 = vmatpush3.msra.mxu0 %v8415_v20  ;;  %v4080_v23 = vmul.f32 %v7622_v22, %v4076_v44  ;;  %v7624_v26 = vpop.eup %7623  ;;  %v8493_v22 = vld [vmem:[#allocation2 + $0x4f8] sm:$0xff] }
0x2ee6   :  { %7293 = vmatprep.subr.mxu0 %v7754_v0  ;;  %v4069_v11 = vmul.f32 0.6931472, %v7624_v26  ;;  %v8505_v26 = vld [vmem:[#allocation2 + $0x4e8] sm:$0xff] }
0x2ee7   :  { %7294 = vmatpush3.msra.mxu0 %v8422_v9 }
0x2ee8   :  { %7296 = vmatmul.mubr.msk.f32.vlgmr.msra.gmra.mxu0 %vm611_vm6, %v4269_v25  ;;  %7298 = vmatprep.subr.mxu0 %v7754_v0  ;;  %v8499_v25 = vld [vmem:[#allocation2 + $0x4f0] sm:$0xff] }
0x2ee9   :  { %v7626_v63 = vpop.eup %7625  ;;  %7306 = vmatprep.mubr.msk.f32.mxu0 %vm7755_vm0, %v7754_v0  ;;  %7299 = vmatpush3.msra.mxu0 %v8438_v31 }
0x2eea   :  { %v4071_v59 = vmul.f32 0.6931472, %v7626_v63  ;;  %7300 = vmatprep.subr.mxu0 %v7754_v0  ;;  %v8509_v63 = vld [vmem:[#allocation2 + $0x4e0] sm:$0xff] }
0x2eeb   :  { %7301 = vmatpush3.msra.mxu0 %v8440_v32 }
0x2eec   :  { %v4072_v52 = vsub.f32 %v4069_v11, %v4071_v59  ;;  %7302 = vmatprep.subr.mxu0 %v7754_v0  ;;  %v8527_v11 = vld [vmem:[#allocation2 + $0x488] sm:$0xff]  ;;  %v8530_v59 = vld [vmem:[#allocation2 + $0x480] sm:$0xff] }
0x2eed   :  { %7303 = vmatpush3.msra.mxu0 %v8452_v46 }
0x2eee   :  { %v8431_v37 = vadd.f32 %v4080_v23, %v4072_v52  ;;  %7304 = vmatprep.subr.mxu0 %v7754_v0  ;;  %v8535_v52 = vld [vmem:[#allocation2 + $0x450] ss:$0 sm:$0xff] }
0x2eef   :  { %7305 = vmatpush3.msra.mxu0 %v8456_v58 }
0x2ef0   :  { %7320 = vmatprep.subr.mxu0 %v7754_v0 }
0x2fa0   :  { %v4163_v34 = vpop.f32.mrf.mxu0 }
0x2fa1   :  { %v4164_v51 = vadd.f32 %v6539_v33, %v4163_v34  ;;  %v8546_v34 = vld [vmem:[#allocation2 + $0x510] ss:$0 sm:$0xff] }
0x2fa2   :  { %v7271_v36 = vpop.f32.mrf.mxu0 }
0x2fa3   :  { %4168 = vrot.lane.b32.xlu0 %v4164_v51, %s7758_s9 }
0x2fa8   :  { %v4338_v39 = vpop.f32.mrf.mxu0 }
0x2fa9   :  { %v4339_v54 = vadd.f32 %v8467_v40, %v4338_v39 }
0x2faa   :  { %v7297_v38 = vpop.f32.mrf.mxu0 }
0x3015   :  { %v4169_v41 = vpop.permute.xlu0 %4168 }
0x3016   :  { %v4171_v43 = vsel %vm611_vm6, %v8376_v24, %v4169_v41 }
0x3017   :  { %7285 = vmatmul.mubr.msk.f32.vlgmr.msra.gmra.mxu1 %vm4185_vm8, %v4171_v43 }
0x3018   :  { %7317 = vmatprep.mubr.msk.f32.mxu1 %vm7755_vm0, %v7754_v0  ;;  %7310 = vmatpush3.msra.mxu1 %v8472_v7 }
0x3019   :  { %7311 = vmatprep.subr.mxu1 %v7754_v0 }
0x301a   :  { %7312 = vmatpush3.msra.mxu1 %v8474_v8 }
0x301b   :  { %7313 = vmatprep.subr.mxu1 %v7754_v0 }
0x301c   :  { %7314 = vmatpush3.msra.mxu1 %v8478_v60 }
0x301d   :  { %7315 = vmatprep.subr.mxu1 %v7754_v0 }
0x301e   :  { %7316 = vmatpush3.msra.mxu1 %v8482_v17 }
0x301f   :  { %7327 = vmatprep.subr.mxu1 %v7754_v0 }
0x30d7   :  { %v4255_v48 = vpop.f32.mrf.mxu1 }
0x30d8   :  { %v4256_v53 = vadd.f32 %v6541_v45, %v4255_v48 }
0x30d9   :  { %v7286_v24 = vpop.f32.mrf.mxu1 }
0x30da   :  { %7307 = vmatmul.mubr.msk.f32.vlgmr.msra.gmra.mxu0 %vm611_vm6, %v4256_v53 }
0x30db   :  { %7324 = vmatprep.mubr.msk.f32.mxu0 %vm7755_vm0, %v7754_v0  ;;  %7321 = vmatpush3.msra.mxu0 %v8527_v11 }
0x30dc   :  { %7322 = vmatprep.subr.mxu0 %v7754_v0 }
0x30dd   :  { %7323 = vmatpush3.msra.mxu0 %v8530_v59 }
0x30de   :  { %7338 = vmatprep.subr.mxu0 %v7754_v0 }
0x319a   :  { %v4415_v56 = vpop.f32.mrf.mxu0 }
0x319b   :  { %v4416_v62 = vadd.f32 %v8463_v55, %v4415_v56 }
0x319c   :  { %v7308_v1 = vpop.f32.mrf.mxu0 }
0x319d   :  { %4425 = vrot.lane.b32.xlu0 %v4416_v62, %s7760_s13  ;;  %v4419_v2 = vadd.f32 %v4416_v62, %v4339_v54  ;;  %v8552_v62 = vld [vmem:[%s8839_s0 + $0x40] sm:$0xff]  ;;  %v8554_v1 = vld [vmem:[#allocation2 + $0x4b0] ss:$0 sm:$0xff] }
0x319f   :  { %v4420_v3 = vmul.f32 0.5, %v4419_v2 }
0x31a1   :  { %7627 = vtanh.f32 %v4420_v3 }
0x31ae   :  { %v7628_v5 = vpop.eup %7627 }
0x31af   :  { %v4422_v47 = vmul.f32 0.5, %v7628_v5 }
0x31b1   :  { %v4423_v50 = vadd.f32 0.5, %v4422_v47  ;;  %v8561_v47 = vld [vmem:[%s8839_s0 + $0x10] sm:$0xff]  ;;  %s7761_s0 = smov [#allocation6]  }
0x31b2   :  { %s6457_s18 = sshll.u32 %s7761_s0, 4  ;;  %s6458_s18 = int_to_ptr.vmem [resolvable:$true] %s6457_s18 }
0x31b3   :  { %v4435_v13 = vsub.f32 1.0, %v4423_v50  ;;  %s7705_s19 = scalar_lea.vmem %s6458_s18, 16  ;;  %s7709_s20 = scalar_lea.vmem %s6458_s18, 32 }
0x31b4   :  { %p7706_p5 = scmp.ne.s32.totalorder %s6458_s18, %s7705_s19  ;;  %p7710_p6 = scmp.lt.s32.totalorder %s6458_s18, %s6458_s18 }
0x31b5   :  { %p7711_p7 = scmp.lt.s32.totalorder %s7709_s20, %s7705_s19 }
0x31b7   :  { %p7712_p8 = por %p7711_p7, %p7710_p6 }
0x31b9   :  { %p7713_p9 = pnand %p7712_p8, %p7706_p5 }
0x320f   :  { %v4426_v16 = vpop.permute.xlu0 %4425 }
0x3210   :  { %v4428_v61 = vmul.f32 %v4426_v16, %v4423_v50 }
0x3212   :  { %4430 = vrot.lane.b32.xlu1 %v4428_v61, %s7760_s13 }
0x3216   :  { %4441 = vrot.lane.b32.xlu1 %v4256_v53, %s7758_s9 }
0x3284   :  { %v4431_v6 = vpop.permute.xlu1 %4430 }
0x3285   :  { %v4433_v4 = vadd.f32 %v4431_v6, %v4339_v54 }
0x3287   :  { %7629 = vtanh.f32 %v4433_v4 }
0x3288   :  { %v4442_v12 = vpop.permute.xlu1 %4441 }
0x3289   :  { %v4444_v15 = vmul.f32 %v4442_v12, %v4423_v50 }
0x3294   :  { %v7630_v10 = vpop.eup %7629 }
0x3295   :  { %4437 = vrot.lane.b32.xlu0 %v7630_v10, %s7757_s8  ;;  %v8565_v10 = vld [vmem:[#allocation2 + $0x68] sm:$0xff] }
0x3307   :  { %v4438_v14 = vpop.permute.xlu0 %4437 }
0x3308   :  { %v4440_v44 = vmul.f32 %v4438_v14, %v4435_v13  ;;  %v8571_v13 = vld [vmem:[#allocation2 + $0x60] sm:$0xff] }
0x330a   :  { %v8489_v21 = vadd.f32 %v4444_v15, %v4440_v44 }
0x330c   :  { %4451 = vrot.lane.b32.xlu0 %v8489_v21, %s7757_s8 }
0x337e   :  { %v8495_v23 = vpop.permute.xlu0 %4451 }
0x337f   :  { %7318 = vmatmul.mubr.msk.f32.vlgmr.msra.gmra.mxu1 %vm611_vm6, %v8495_v23 }
0x3380   :  { %7328 = vmatpush3.msra.mxu1 %v8493_v22  ;;  %7335 = vmatprep.mubr.msk.f32.mxu1 %vm7755_vm0, %v7754_v0 }
0x3381   :  { %7329 = vmatprep.subr.mxu1 %v7754_v0 }
0x3382   :  { %7330 = vmatpush3.msra.mxu1 %v8499_v25 }
0x3383   :  { %7331 = vmatprep.subr.mxu1 %v7754_v0 }
0x3384   :  { %7332 = vmatpush3.msra.mxu1 %v8505_v26 }
0x3385   :  { %7333 = vmatprep.subr.mxu1 %v7754_v0 }
0x3386   :  { %7334 = vmatpush3.msra.mxu1 %v8509_v63 }
0x3387   :  { %7336 = vmatmul.mubr.msk.f32.vlgmr.msra.gmra.mxu1 %vm611_vm6, %v8495_v23  ;;  %7350 = vmatprep.subr.mxu1 %v7754_v0 }
0x3388   :  { %7351 = vmatpush3.msra.mxu1 %v8405_v18  ;;  %7358 = vmatprep.mubr.msk.f32.mxu1 %vm7755_vm0, %v7754_v0 }
0x3389   :  { %7352 = vmatprep.subr.mxu1 %v7754_v0 }
0x338a   :  { %7353 = vmatpush3.msra.mxu1 %v8409_v19 }
0x338b   :  { %7354 = vmatprep.subr.mxu1 %v7754_v0 }
0x338c   :  { %7355 = vmatpush3.msra.mxu1 %v8415_v20 }
0x338d   :  { %7356 = vmatprep.subr.mxu1 %v7754_v0 }
0x338e   :  { %7357 = vmatpush3.msra.mxu1 %v8422_v9 }
0x338f   :  { %7372 = vmatprep.subr.mxu1 %v7754_v0 }
0x343f   :  { %v4521_v42 = vpop.f32.mrf.mxu1 }
0x3440   :  { %v4522_v27 = vadd.f32 %v8535_v52, %v4521_v42 }
0x3441   :  { %v7319_v28 = vpop.f32.mrf.mxu1 }
0x3442   :  { %v4525_v29 = vmax.f32 %v4522_v27, 0.0  ;;  %v8581_v27 = vld [vmem:[#allocation2 + $0x30] ss:$0 sm:$0xff] }
0x3444   :  { %7325 = vmatmul.mubr.msk.f32.vlgmr.msra.gmra.mxu0 %vm220_vm5, %v4525_v29 }
0x3445   :  { %7339 = vmatpush3.msk.msra.mxu0 %vm129_vm1, %v8539_v30  ;;  %7340 = vmatprep.mubr.msk.f32.mxu0 %vm7755_vm0, %v7754_v0 }
0x3446   :  { %7343 = vmatprep.subr.mxu0 %v7754_v0 }
0x3447   :  { %v4673_v35 = vpop.f32.mrf.mxu1 }
0x3448   :  { %v4674_v51 = vadd.f32 %v8546_v34, %v4673_v35 }
0x3449   :  { %v7337_v33 = vpop.f32.mrf.mxu1 }
0x344a   :  { %v4678_v36 = vand.u32 2147483647, %v4674_v51  ;;  %v4677_v53 = vmax.f32 %v4674_v51, 0.0  ;;  %v8603_v51 = vld [vmem:[#allocation2 + $0x90] ss:$0 sm:$0xff] }
0x344c   :  { %v4679_v39 = vsub.f32 0.0, %v4678_v36 }
0x344e   :  { %v4680_v38 = vmul.f32 1.442695, %v4679_v39 }
0x3450   :  { %7631 = vpow2.f32 %v4680_v38 }
0x345d   :  { %v7632_v41 = vpop.eup %7631 }
0x345e   :  { %v4682_v43 = vadd.f32 1.0, %v7632_v41 }
0x3460   :  { %7633 = vlog2.f32 %v4682_v43 }
0x346d   :  { %v7634_v45 = vpop.eup %7633 }
0x346e   :  { %v4684_v48 = vmul.f32 0.6931472, %v7634_v45 }
0x3470   :  { %v4685_v24 = vadd.f32 %v4684_v48, %v4677_v53 }
0x3472   :  { %v4686_v56 = vadd.f32 0.1, %v4685_v24 }
0x3474   :  { %7635 = vrcp.f32 %v4686_v56  ;;  %v4697_v3 = vmul.f32 %v4686_v56, %v8552_v62 }
0x3475   :  { %7637 = vlog2.f32 %v4686_v56 }
0x3481   :  { %v7636_v61 = vpop.eup %7635 }
0x3482   :  { %v7638_v4 = vpop.eup %7637 }
0x3483   :  { %v8576_v15 = vmul.f32 0.6931472, %v7638_v4 }
0x3504   :  { %v4599_v54 = vpop.f32.mrf.mxu0 }
0x3505   :  { %v4600_v2 = vadd.f32 %v8554_v1, %v4599_v54 }
0x3506   :  { %v7326_v5 = vpop.f32.mrf.mxu0 }
0x3507   :  { %v4687_v50 = vsub.f32 %v8561_v47, %v4600_v2  ;;  %v4698_v16 = vadd.f32 %v4697_v3, %v4600_v2 }
0x3509   :  { %v4689_v6 = vmul.f32 %v7636_v61, %v4687_v50  ;;  %7341 = vmatmul.mubr.msk.f32.vlgmr.msra.gmra.mxu0 %vm119_vm2, %v4698_v16 }
0x350a   :  { %7344 = vmatpush3.msra.mxu0 %v8565_v10  ;;  %7347 = vmatprep.mubr.msk.f32.mxu0 %vm7755_vm0, %v7754_v0 }
0x350b   :  { %v4690_v12 = vmul.f32 -0.5, %v4689_v6  ;;  %7345 = vmatprep.subr.mxu0 %v7754_v0 }
0x350c   :  { %7346 = vmatpush3.msra.mxu0 %v8571_v13 }
0x350d   :  { %v8574_v14 = vmul.f32 %v4690_v12, %v4689_v6  ;;  %7361 = vmatprep.subr.mxu0 %v7754_v0  ;;  %v5417_v6 = vrot.slane %v8128_v49, 4 }
0x350f   :  { %v4694_v44 = vsub.f32 %v8574_v14, %v8576_v15 }
0x35c9   :  { %v4768_v42 = vpop.f32.mrf.mxu0 }
0x35ca   :  { %v4769_v28 = vadd.f32 %v8581_v27, %v4768_v42 }
0x35cb   :  { %v7342_v29 = vpop.f32.mrf.mxu0 }
0x35cc   :  { %v4772_v35 = vmax.f32 %v4769_v28, 0.0 }
0x35ce   :  { %7348 = vmatmul.mubr.msk.f32.vlgmr.msra.gmra.mxu0 %vm220_vm5, %v4772_v35 }
0x35cf   :  { %7362 = vmatpush3.msra.mxu0 %v8438_v31  ;;  %7369 = vmatprep.mubr.msk.f32.mxu0 %vm7755_vm0, %v7754_v0 }
0x35d0   :  { %7363 = vmatprep.subr.mxu0 %v7754_v0 }
0x35d1   :  { %7364 = vmatpush3.msra.mxu0 %v8440_v32 }
0x35d2   :  { %7365 = vmatprep.subr.mxu0 %v7754_v0 }
0x35d3   :  { %7366 = vmatpush3.msra.mxu0 %v8452_v46 }
0x35d4   :  { %7367 = vmatprep.subr.mxu0 %v7754_v0 }
0x35d5   :  { %7368 = vmatpush3.msra.mxu0 %v8456_v58 }
0x35d6   :  { %7370 = vmatmul.mubr.msk.f32.vlgmr.msra.gmra.mxu0 %vm611_vm6, %v8495_v23  ;;  %7383 = vmatprep.subr.mxu0 %v7754_v0 }
0x35d7   :  { %7384 = vmatpush3.msra.mxu0 %v8527_v11  ;;  %7387 = vmatprep.mubr.msk.f32.mxu0 %vm7755_vm0, %v7754_v0 }
0x35d8   :  { %7385 = vmatprep.subr.mxu0 %v7754_v0 }
0x35d9   :  { %7386 = vmatpush3.msra.mxu0 %v8530_v59 }
0x35da   :  { %7390 = vmatprep.subr.mxu0 %v7754_v0 }
0x368e   :  { %v4842_v33 = vpop.f32.mrf.mxu0 }
0x368f   :  { %v4843_v36 = vadd.f32 %v8603_v51, %v4842_v33 }
0x3690   :  { %v7349_v39 = vpop.f32.mrf.mxu0 }
0x3691   :  { %v4846_v23 = vsel %vm220_vm5, %v4843_v36, %v8407_v57 }
0x3692   :  { %7359 = vmatmul.mubr.msk.f32.vlgmr.msra.gmra.mxu1 %vm611_vm6, %v4846_v23 }
0x3693   :  { %7373 = vmatpush3.msra.mxu1 %v8472_v7  ;;  %7380 = vmatprep.mubr.msk.f32.mxu1 %vm7755_vm0, %v7754_v0 }
0x3694   :  { %7374 = vmatprep.subr.mxu1 %v7754_v0 }
0x3695   :  { %7375 = vmatpush3.msra.mxu1 %v8474_v8 }
0x3696   :  { %v4986_v38 = vpop.f32.mrf.mxu0  ;;  %7376 = vmatprep.subr.mxu1 %v7754_v0 }
0x3697   :  { %v4987_v41 = vadd.f32 %v8463_v55, %v4986_v38  ;;  %7377 = vmatpush3.msra.mxu1 %v8478_v60 }
0x3698   :  { %v7371_v43 = vpop.f32.mrf.mxu0  ;;  %7378 = vmatprep.subr.mxu1 %v7754_v0 }
0x3699   :  { %4996 = vrot.lane.b32.xlu1 %v4987_v41, %s7760_s13  ;;  %7379 = vmatpush3.msra.mxu1 %v8482_v17 }
0x369a   :  { %7401 = vmatprep.subr.mxu1 %v7754_v0 }
0x370b   :  { %v4997_v3 = vpop.permute.xlu1 %4996 }
0x3752   :  { %v4916_v57 = vpop.f32.mrf.mxu1 }
0x3753   :  { %v4917_v45 = vadd.f32 %v8467_v40, %v4916_v57 }
0x3754   :  { %v7360_v48 = vpop.f32.mrf.mxu1 }
0x3755   :  { %v4990_v53 = vadd.f32 %v4987_v41, %v4917_v45 }
0x3757   :  { %v4991_v24 = vmul.f32 0.5, %v4990_v53 }
0x3759   :  { %7639 = vtanh.f32 %v4991_v24 }
0x3766   :  { %v7640_v56 = vpop.eup %7639 }
0x3767   :  { %v4993_v54 = vmul.f32 0.5, %v7640_v56 }
0x3769   :  { %v4994_v2 = vadd.f32 0.5, %v4993_v54 }
0x376b   :  { %v4999_v5 = vmul.f32 %v4997_v3, %v4994_v2  ;;  %v5006_v4 = vsub.f32 1.0, %v4994_v2  ;;  %v5012_v42 = vmul.f32 %v4994_v2, %v8489_v21 }
0x376d   :  { %5001 = vrot.lane.b32.xlu0 %v4999_v5, %s7760_s13  ;;  %v5266_v5 = vrot.slane %v8552_v62, 2 }
0x37df   :  { %v5002_v50 = vpop.permute.xlu0 %5001 }
0x37e0   :  { %v5004_v16 = vadd.f32 %v5002_v50, %v4917_v45 }
0x37e2   :  { %7641 = vtanh.f32 %v5004_v16 }
0x37ef   :  { %v7642_v61 = vpop.eup %7641 }
0x37f0   :  { %5008 = vrot.lane.b32.xlu1 %v7642_v61, %s7757_s8 }
0x37f4   :  { %5418 = vrot.lane.b32.xlu1 %v5417_v6, %s7756_s7 }
0x3862   :  { %v5009_v12 = vpop.permute.xlu1 %5008 }
0x3863   :  { %v5011_v28 = vmul.f32 %v5009_v12, %v5006_v4 }
0x3865   :  { %v8627_v29 = vadd.f32 %v5012_v42, %v5011_v28 }
0x3867   :  { %5015 = vrot.lane.b32.xlu0 %v8627_v29, %s7757_s8 }
0x38d9   :  { %v8631_v35 = vpop.permute.xlu0 %5015 }
0x38da   :  { %7381 = vmatmul.mubr.msk.f32.vlgmr.msra.gmra.mxu1 %vm611_vm6, %v8631_v35 }
0x38db   :  { %7402 = vmatpush3.msk.msra.mxu1 %vm129_vm1, %v8539_v30  ;;  %7403 = vmatprep.mubr.msk.f32.mxu1 %vm7755_vm0, %v7754_v0 }
0x38dc   :  { %7406 = vmatprep.subr.mxu1 %v7754_v0 }
0x399a   :  { %v5085_v21 = vpop.f32.mrf.mxu1 }
0x399b   :  { %v5086_v33 = vadd.f32 %v8535_v52, %v5085_v21 }
0x399c   :  { %v7382_v36 = vpop.f32.mrf.mxu1 }
0x399d   :  { %v5089_v39 = vmax.f32 %v5086_v33, 0.0 }
0x399f   :  { %7388 = vmatmul.mubr.msk.f32.vlgmr.msra.gmra.mxu0 %vm220_vm5, %v5089_v39 }
0x39a0   :  { %7391 = vmatpush3.msra.mxu0 %v8493_v22  ;;  %7398 = vmatprep.mubr.msk.f32.mxu0 %vm7755_vm0, %v7754_v0 }
0x39a1   :  { %7392 = vmatprep.subr.mxu0 %v7754_v0 }
0x39a2   :  { %7393 = vmatpush3.msra.mxu0 %v8499_v25 }
0x39a3   :  { %7394 = vmatprep.subr.mxu0 %v7754_v0 }
0x39a4   :  { %7395 = vmatpush3.msra.mxu0 %v8505_v26 }
0x39a5   :  { %7396 = vmatprep.subr.mxu0 %v7754_v0 }
0x39a6   :  { %7397 = vmatpush3.msra.mxu0 %v8509_v63 }
0x39a7   :  { %7399 = vmatmul.mubr.msk.f32.vlgmr.msra.gmra.mxu0 %vm611_vm6, %v8631_v35  ;;  %7413 = vmatprep.subr.mxu0 %v7754_v0 }
0x39a8   :  { %7414 = vmatpush3.msra.mxu0 %v8405_v18  ;;  %7421 = vmatprep.mubr.msk.f32.mxu0 %vm7755_vm0, %v7754_v0 }
0x39a9   :  { %7415 = vmatprep.subr.mxu0 %v7754_v0 }
0x39aa   :  { %7416 = vmatpush3.msra.mxu0 %v8409_v19 }
0x39ab   :  { %7417 = vmatprep.subr.mxu0 %v7754_v0 }
0x39ac   :  { %7418 = vmatpush3.msra.mxu0 %v8415_v20 }
0x39ad   :  { %7419 = vmatprep.subr.mxu0 %v7754_v0 }
0x39ae   :  { %7420 = vmatpush3.msra.mxu0 %v8422_v9 }
0x39af   :  { %7435 = vmatprep.subr.mxu0 %v7754_v0 }
0x3a5f   :  { %v5159_v23 = vpop.f32.mrf.mxu0 }
0x3a60   :  { %v5160_v61 = vadd.f32 %v8554_v1, %v5159_v23 }
0x3a61   :  { %v7389_v38 = vpop.f32.mrf.mxu0 }
0x3a62   :  { %v5244_v12 = vrot.slane %v5160_v61, 6 }
0x3a64   :  { %v5246_v21 = vsub.f32 %v8561_v47, %v5244_v12 }
0x3a67   :  { %v5229_v41 = vpop.f32.mrf.mxu0 }
0x3a68   :  { %v5230_v43 = vadd.f32 %v8546_v34, %v5229_v41 }
0x3a69   :  { %v7400_v57 = vpop.f32.mrf.mxu0 }
0x3a6a   :  { %v5234_v45 = vand.u32 2147483647, %v5230_v43  ;;  %v5233_v2 = vmax.f32 %v5230_v43, 0.0 }
0x3a6c   :  { %v5235_v48 = vsub.f32 0.0, %v5234_v45  ;;  %v6553_v45 = vadd.f32 -0.9189385, %v4694_v44  ;;  %v5419_v44 = vpop.permute.xlu1 %5418 }
0x3a6e   :  { %v5236_v53 = vmul.f32 1.442695, %v5235_v48 }
0x3a70   :  { %7643 = vpow2.f32 %v5236_v53 }
0x3a7d   :  { %v7644_v24 = vpop.eup %7643 }
0x3a7e   :  { %v5238_v56 = vadd.f32 1.0, %v7644_v24 }
0x3a80   :  { %7645 = vlog2.f32 %v5238_v56 }
0x3a8d   :  { %v7646_v54 = vpop.eup %7645 }
0x3a8e   :  { %v5240_v3 = vmul.f32 0.6931472, %v7646_v54 }
0x3a90   :  { %v5241_v50 = vadd.f32 %v5240_v3, %v5233_v2 }
0x3a92   :  { %v5242_v16 = vadd.f32 0.1, %v5241_v50 }
0x3a94   :  { %7647 = vrcp.f32 %v5242_v16  ;;  %v5268_v6 = vmul.f32 %v5266_v5, %v5242_v16 }
0x3a95   :  { %7649 = vlog2.f32 %v5242_v16 }
0x3a96   :  { %v5269_v4 = vadd.f32 %v5268_v6, %v5160_v61 }
0x3a98   :  { %7404 = vmatmul.mubr.msk.f32.vlgmr.msra.gmra.mxu1 %vm119_vm2, %v5269_v4 }
0x3a99   :  { %7407 = vmatpush3.msra.mxu1 %v8565_v10  ;;  %7410 = vmatprep.mubr.msk.f32.mxu1 %vm7755_vm0, %v7754_v0 }
0x3a9a   :  { %7408 = vmatprep.subr.mxu1 %v7754_v0 }
0x3a9b   :  { %7409 = vmatpush3.msra.mxu1 %v8571_v13 }
0x3a9c   :  { %7424 = vmatprep.subr.mxu1 %v7754_v0 }
0x3aa1   :  { %v7648_v42 = vpop.eup %7647 }
0x3aa2   :  { %v7650_v28 = vpop.eup %7649  ;;  %v5249_v33 = vrot.slane %v7648_v42, 6 }
0x3aa3   :  { %v5255_v39 = vmul.f32 0.6931472, %v7650_v28 }
0x3aa4   :  { %v5251_v36 = vmul.f32 %v5249_v33, %v5246_v21 }
0x3aa5   :  { %v5257_v41 = vrot.slane %v5255_v39, 6 }
0x3aa6   :  { %v5252_v23 = vmul.f32 -0.5, %v5251_v36 }
0x3aa8   :  { %v5253_v38 = vmul.f32 %v5252_v23, %v5251_v36 }
0x3aaa   :  { %v5259_v43 = vsub.f32 %v5253_v38, %v5257_v41 }
0x3aac   :  { %v6562_v57 = vadd.f32 -0.9189385, %v5259_v43  ;;  %v5991_v43 = vrot.slane %v8128_v49, 6 }
0x3aae   :  { %v5262_v48 = vrot.slane %v6562_v57, 2 }
0x3ab0   :  { %v8678_v53 = vadd.f32 %v6553_v45, %v5262_v48 }
0x3b58   :  { %v5339_v24 = vpop.f32.mrf.mxu1 }
0x3b59   :  { %v5340_v56 = vadd.f32 %v8581_v27, %v5339_v24 }
0x3b5a   :  { %v7405_v54 = vpop.f32.mrf.mxu1 }
0x3b5b   :  { %v5343_v2 = vmax.f32 %v5340_v56, 0.0 }
0x3b5d   :  { %7411 = vmatmul.mubr.msk.f32.vlgmr.msra.gmra.mxu1 %vm220_vm5, %v5343_v2 }
0x3b5e   :  { %7425 = vmatpush3.msra.mxu1 %v8438_v31  ;;  %7432 = vmatprep.mubr.msk.f32.mxu1 %vm7755_vm0, %v7754_v0 }
0x3b5f   :  { %7426 = vmatprep.subr.mxu1 %v7754_v0 }
0x3b60   :  { %7427 = vmatpush3.msra.mxu1 %v8440_v32 }
0x3b61   :  { %7428 = vmatprep.subr.mxu1 %v7754_v0 }
0x3b62   :  { %7429 = vmatpush3.msra.mxu1 %v8452_v46 }
0x3b63   :  { %7430 = vmatprep.subr.mxu1 %v7754_v0 }
0x3b64   :  { %7431 = vmatpush3.msra.mxu1 %v8456_v58 }
0x3b65   :  { %7433 = vmatmul.mubr.msk.f32.vlgmr.msra.gmra.mxu1 %vm611_vm6, %v8631_v35  ;;  %7446 = vmatprep.subr.mxu1 %v7754_v0 }
0x3b66   :  { %7447 = vmatpush3.msra.mxu1 %v8527_v11  ;;  %7450 = vmatprep.mubr.msk.f32.mxu1 %vm7755_vm0, %v7754_v0 }
0x3b67   :  { %7448 = vmatprep.subr.mxu1 %v7754_v0 }
0x3b68   :  { %7449 = vmatpush3.msra.mxu1 %v8530_v59 }
0x3b69   :  { %7453 = vmatprep.subr.mxu1 %v7754_v0 }
0x3c1d   :  { %v5413_v14 = vpop.f32.mrf.mxu1 }
0x3c1e   :  { %v5414_v15 = vadd.f32 %v8603_v51, %v5413_v14 }
0x3c1f   :  { %v7412_v3 = vpop.f32.mrf.mxu1 }
0x3c20   :  { %v5421_v35 = vsel %vm220_vm5, %v5414_v15, %v5419_v44 }
0x3c21   :  { %7422 = vmatmul.mubr.msk.f32.vlgmr.msra.gmra.mxu0 %vm611_vm6, %v5421_v35 }
0x3c22   :  { %7436 = vmatpush3.msra.mxu0 %v8472_v7  ;;  %7443 = vmatprep.mubr.msk.f32.mxu0 %vm7755_vm0, %v7754_v0 }
0x3c23   :  { %7437 = vmatprep.subr.mxu0 %v7754_v0 }
0x3c24   :  { %7438 = vmatpush3.msra.mxu0 %v8474_v8 }
0x3c25   :  { %v5561_v5 = vpop.f32.mrf.mxu1  ;;  %7439 = vmatprep.subr.mxu0 %v7754_v0 }
0x3c26   :  { %v5562_v50 = vadd.f32 %v8463_v55, %v5561_v5  ;;  %7440 = vmatpush3.msra.mxu0 %v8478_v60 }
0x3c27   :  { %v7434_v16 = vpop.f32.mrf.mxu1  ;;  %7441 = vmatprep.subr.mxu0 %v7754_v0 }
0x3c28   :  { %5571 = vrot.lane.b32.xlu0 %v5562_v50, %s7760_s13  ;;  %7442 = vmatpush3.msra.mxu0 %v8482_v17 }
0x3c29   :  { %7464 = vmatprep.subr.mxu0 %v7754_v0 }
0x3c9a   :  { %v5572_v36 = vpop.permute.xlu0 %5571 }
0x3ce1   :  { %v5491_v61 = vpop.f32.mrf.mxu0 }
0x3ce2   :  { %v5492_v6 = vadd.f32 %v8467_v40, %v5491_v61 }
0x3ce3   :  { %v7423_v4 = vpop.f32.mrf.mxu0 }
0x3ce4   :  { %v5565_v12 = vadd.f32 %v5562_v50, %v5492_v6 }
0x3ce6   :  { %v5566_v42 = vmul.f32 0.5, %v5565_v12 }
0x3ce8   :  { %7651 = vtanh.f32 %v5566_v42 }
0x3cf5   :  { %v7652_v28 = vpop.eup %7651 }
0x3cf6   :  { %v5568_v21 = vmul.f32 0.5, %v7652_v28 }
0x3cf8   :  { %v5569_v33 = vadd.f32 0.5, %v5568_v21 }
0x3cfa   :  { %v5574_v39 = vmul.f32 %v5572_v36, %v5569_v33  ;;  %v5581_v57 = vsub.f32 1.0, %v5569_v33  ;;  %v5587_v48 = vmul.f32 %v5569_v33, %v8627_v29 }
0x3cfc   :  { %5576 = vrot.lane.b32.xlu1 %v5574_v39, %s7760_s13 }
0x3d6e   :  { %v5577_v23 = vpop.permute.xlu1 %5576 }
0x3d6f   :  { %v5579_v38 = vadd.f32 %v5577_v23, %v5492_v6 }
0x3d71   :  { %7653 = vtanh.f32 %v5579_v38 }
0x3d7e   :  { %v7654_v41 = vpop.eup %7653 }
0x3d7f   :  { %5583 = vrot.lane.b32.xlu0 %v7654_v41, %s7757_s8 }
0x3d83   :  { %5992 = vrot.lane.b32.xlu0 %v5991_v43, %s7756_s7 }
0x3df1   :  { %v5584_v45 = vpop.permute.xlu0 %5583 }
0x3df2   :  { %v5586_v24 = vmul.f32 %v5584_v45, %v5581_v57 }
0x3df4   :  { %v8721_v56 = vadd.f32 %v5587_v48, %v5586_v24 }
0x3df6   :  { %5590 = vrot.lane.b32.xlu1 %v8721_v56, %s7757_s8 }
0x3e68   :  { %v8725_v54 = vpop.permute.xlu1 %5590 }
0x3e69   :  { %7444 = vmatmul.mubr.msk.f32.vlgmr.msra.gmra.mxu0 %vm611_vm6, %v8725_v54 }
0x3e6a   :  { %7465 = vmatpush3.msk.msra.mxu0 %vm129_vm1, %v8539_v30  ;;  %7466 = vmatprep.mubr.msk.f32.mxu0 %vm7755_vm0, %v7754_v0 }
0x3e6b   :  { %7469 = vmatprep.subr.mxu0 %v7754_v0 }
0x3f29   :  { %v5660_v49 = vpop.f32.mrf.mxu0 }
0x3f2a   :  { %v5661_v29 = vadd.f32 %v8535_v52, %v5660_v49 }
0x3f2b   :  { %v7445_v2 = vpop.f32.mrf.mxu0 }
0x3f2c   :  { %v5664_v14 = vmax.f32 %v5661_v29, 0.0 }
0x3f2e   :  { %7451 = vmatmul.mubr.msk.f32.vlgmr.msra.gmra.mxu1 %vm220_vm5, %v5664_v14 }
0x3f2f   :  { %7454 = vmatpush3.msra.mxu1 %v8493_v22  ;;  %7461 = vmatprep.mubr.msk.f32.mxu1 %vm7755_vm0, %v7754_v0 }
0x3f30   :  { %7455 = vmatprep.subr.mxu1 %v7754_v0 }
0x3f31   :  { %7456 = vmatpush3.msra.mxu1 %v8499_v25 }
0x3f32   :  { %7457 = vmatprep.subr.mxu1 %v7754_v0 }
0x3f33   :  { %7458 = vmatpush3.msra.mxu1 %v8505_v26 }
0x3f34   :  { %7459 = vmatprep.subr.mxu1 %v7754_v0 }
0x3f35   :  { %7460 = vmatpush3.msra.mxu1 %v8509_v63 }
0x3f36   :  { %7462 = vmatmul.mubr.msk.f32.vlgmr.msra.gmra.mxu1 %vm611_vm6, %v8725_v54  ;;  %7476 = vmatprep.subr.mxu1 %v7754_v0 }
0x3f37   :  { %7477 = vmatpush3.msra.mxu1 %v8405_v18  ;;  %7484 = vmatprep.mubr.msk.f32.mxu1 %vm7755_vm0, %v7754_v0 }
0x3f38   :  { %7478 = vmatprep.subr.mxu1 %v7754_v0 }
0x3f39   :  { %7479 = vmatpush3.msra.mxu1 %v8409_v19 }
0x3f3a   :  { %7480 = vmatprep.subr.mxu1 %v7754_v0 }
0x3f3b   :  { %7481 = vmatpush3.msra.mxu1 %v8415_v20 }
0x3f3c   :  { %7482 = vmatprep.subr.mxu1 %v7754_v0 }
0x3f3d   :  { %7483 = vmatpush3.msra.mxu1 %v8422_v9  ;;  %v5840_v9 = vrot.slane %v8552_v62, 4 }
0x3f3e   :  { %7498 = vmatprep.subr.mxu1 %v7754_v0 }
0x3fee   :  { %v5734_v30 = vpop.f32.mrf.mxu1 }
0x3fef   :  { %v5735_v42 = vadd.f32 %v8554_v1, %v5734_v30 }
0x3ff0   :  { %v7452_v15 = vpop.f32.mrf.mxu1 }
0x3ff1   :  { %v5819_v62 = vrot.slane %v5735_v42, 4 }
0x3ff3   :  { %v5821_v39 = vsub.f32 %v8561_v47, %v5819_v62 }
0x3ff6   :  { %v5804_v18 = vpop.f32.mrf.mxu1 }
0x3ff7   :  { %v5805_v44 = vadd.f32 %v8546_v34, %v5804_v18 }
0x3ff8   :  { %v7463_v3 = vpop.f32.mrf.mxu1 }
0x3ff9   :  { %v5809_v35 = vand.u32 2147483647, %v5805_v44  ;;  %v5808_v61 = vmax.f32 %v5805_v44, 0.0 }
0x3ffb   :  { %v5810_v5 = vsub.f32 0.0, %v5809_v35 }
0x3ffd   :  { %v5811_v50 = vmul.f32 1.442695, %v5810_v5 }
0x3fff   :  { %7655 = vpow2.f32 %v5811_v50 }
0x400c   :  { %v7656_v19 = vpop.eup %7655 }
0x400d   :  { %v5813_v16 = vadd.f32 1.0, %v7656_v19 }
0x400f   :  { %7657 = vlog2.f32 %v5813_v16 }
0x401c   :  { %v7658_v20 = vpop.eup %7657 }
0x401d   :  { %v5815_v6 = vmul.f32 0.6931472, %v7658_v20  ;;  %v6538_v20 = vadd.f32 -0.5, %v8431_v37 }
0x401f   :  { %v5816_v4 = vadd.f32 %v5815_v6, %v5808_v61  ;;  %v6429_v61 = vsel %vm6428_vm9, %v6538_v20, 0.0 }
0x4021   :  { %v5817_v12 = vadd.f32 0.1, %v5816_v4 }
0x4023   :  { %7659 = vrcp.f32 %v5817_v12  ;;  %v5842_v28 = vmul.f32 %v5840_v9, %v5817_v12 }
0x4024   :  { %7661 = vlog2.f32 %v5817_v12 }
0x4025   :  { %v5843_v21 = vadd.f32 %v5842_v28, %v5735_v42 }
0x4027   :  { %7467 = vmatmul.mubr.msk.f32.vlgmr.msra.gmra.mxu0 %vm119_vm2, %v5843_v21 }
0x4028   :  { %7470 = vmatpush3.msra.mxu0 %v8565_v10  ;;  %7473 = vmatprep.mubr.msk.f32.mxu0 %vm7755_vm0, %v7754_v0 }
0x4029   :  { %7471 = vmatprep.subr.mxu0 %v7754_v0 }
0x402a   :  { %7472 = vmatpush3.msra.mxu0 %v8571_v13 }
0x402b   :  { %7487 = vmatprep.subr.mxu0 %v7754_v0 }
0x4030   :  { %v7660_v33 = vpop.eup %7659 }
0x4031   :  { %v7662_v36 = vpop.eup %7661  ;;  %v5824_v23 = vrot.slane %v7660_v33, 4 }
0x4032   :  { %v5830_v41 = vmul.f32 0.6931472, %v7662_v36 }
0x4033   :  { %v5826_v38 = vmul.f32 %v5824_v23, %v5821_v39 }
0x4034   :  { %v5832_v10 = vrot.slane %v5830_v41, 4 }
0x4035   :  { %v5827_v43 = vmul.f32 -0.5, %v5826_v38 }
0x4037   :  { %v5828_v57 = vmul.f32 %v5827_v43, %v5826_v38 }
0x4039   :  { %v5834_v45 = vsub.f32 %v5828_v57, %v5832_v10 }
0x403b   :  { %v6571_v48 = vadd.f32 -0.9189385, %v5834_v45 }
0x403d   :  { %v5837_v24 = vrot.slane %v6571_v48, 4 }
0x403f   :  { %v8770_v49 = vadd.f32 %v5837_v24, %v8678_v53 }
0x40e7   :  { %v5913_v13 = vpop.f32.mrf.mxu0 }
0x40e8   :  { %v5914_v29 = vadd.f32 %v8581_v27, %v5913_v13 }
0x40e9   :  { %v7468_v2 = vpop.f32.mrf.mxu0 }
0x40ea   :  { %v5917_v14 = vmax.f32 %v5914_v29, 0.0 }
0x40ec   :  { %7474 = vmatmul.mubr.msk.f32.vlgmr.msra.gmra.mxu0 %vm220_vm5, %v5917_v14 }
0x40ed   :  { %7488 = vmatpush3.msra.mxu0 %v8438_v31  ;;  %7495 = vmatprep.mubr.msk.f32.mxu0 %vm7755_vm0, %v7754_v0 }
0x40ee   :  { %7489 = vmatprep.subr.mxu0 %v7754_v0 }
0x40ef   :  { %7490 = vmatpush3.msra.mxu0 %v8440_v32 }
0x40f0   :  { %7491 = vmatprep.subr.mxu0 %v7754_v0 }
0x40f1   :  { %7492 = vmatpush3.msra.mxu0 %v8452_v46  ;;  %v5993_v46 = vpop.permute.xlu0 %5992 }
0x40f2   :  { %7493 = vmatprep.subr.mxu0 %v7754_v0 }
0x40f3   :  { %7494 = vmatpush3.msra.mxu0 %v8456_v58 }
0x40f4   :  { %7496 = vmatmul.mubr.msk.f32.vlgmr.msra.gmra.mxu0 %vm611_vm6, %v8725_v54  ;;  %7509 = vmatprep.subr.mxu0 %v7754_v0 }
0x40f5   :  { %7510 = vmatpush3.msra.mxu0 %v8527_v11  ;;  %7513 = vmatprep.mubr.msk.f32.mxu0 %vm7755_vm0, %v7754_v0 }
0x40f6   :  { %7511 = vmatprep.subr.mxu0 %v7754_v0 }
0x40f7   :  { %7512 = vmatpush3.msra.mxu0 %v8530_v59 }
0x40f8   :  { %7516 = vmatprep.subr.mxu0 %v7754_v0 }
0x41ac   :  { %v5987_v31 = vpop.f32.mrf.mxu0 }
0x41ad   :  { %v5988_v32 = vadd.f32 %v8603_v51, %v5987_v31 }
0x41ae   :  { %v7475_v58 = vpop.f32.mrf.mxu0 }
0x41af   :  { %v5995_v27 = vsel %vm220_vm5, %v5988_v32, %v5993_v46 }
0x41b0   :  { %7485 = vmatmul.mubr.msk.f32.vlgmr.msra.gmra.mxu1 %vm611_vm6, %v5995_v27 }
0x41b1   :  { %7499 = vmatpush3.msra.mxu1 %v8472_v7  ;;  %7506 = vmatprep.mubr.msk.f32.mxu1 %vm7755_vm0, %v7754_v0 }
0x41b2   :  { %7500 = vmatprep.subr.mxu1 %v7754_v0 }
0x41b3   :  { %7501 = vmatpush3.msra.mxu1 %v8474_v8 }
0x41b4   :  { %v6135_v11 = vpop.f32.mrf.mxu0  ;;  %7502 = vmatprep.subr.mxu1 %v7754_v0 }
0x41b5   :  { %v6136_v59 = vadd.f32 %v8463_v55, %v6135_v11  ;;  %7503 = vmatpush3.msra.mxu1 %v8478_v60 }
0x41b6   :  { %v7497_v51 = vpop.f32.mrf.mxu0  ;;  %7504 = vmatprep.subr.mxu1 %v7754_v0 }
0x41b7   :  { %6145 = vrot.lane.b32.xlu1 %v6136_v59, %s7760_s13  ;;  %7505 = vmatpush3.msra.mxu1 %v8482_v17 }
0x4229   :  { %v6146_v55 = vpop.permute.xlu1 %6145 }
0x4270   :  { %v6065_v7 = vpop.f32.mrf.mxu1 }
0x4271   :  { %v6066_v53 = vadd.f32 %v8467_v40, %v6065_v7 }
0x4272   :  { %v7486_v54 = vpop.f32.mrf.mxu1 }
0x4273   :  { %v6139_v30 = vadd.f32 %v6136_v59, %v6066_v53 }
0x4275   :  { %v6140_v8 = vmul.f32 0.5, %v6139_v30 }
0x4277   :  { %7663 = vtanh.f32 %v6140_v8 }
0x4284   :  { %v7664_v15 = vpop.eup %7663 }
0x4285   :  { %v6142_v18 = vmul.f32 0.5, %v7664_v15 }
0x4287   :  { %v6143_v44 = vadd.f32 0.5, %v6142_v18 }
0x4289   :  { %v6148_v3 = vmul.f32 %v6146_v55, %v6143_v44  ;;  %v6155_v17 = vsub.f32 1.0, %v6143_v44  ;;  %v6161_v40 = vmul.f32 %v6143_v44, %v8721_v56 }
0x428b   :  { %6150 = vrot.lane.b32.xlu0 %v6148_v3, %s7760_s13 }
0x42fd   :  { %v6151_v60 = vpop.permute.xlu0 %6150 }
0x42fe   :  { %v6153_v35 = vadd.f32 %v6151_v60, %v6066_v53 }
0x4300   :  { %7665 = vtanh.f32 %v6153_v35 }
0x430d   :  { %v7666_v5 = vpop.eup %7665 }
0x430e   :  { %6157 = vrot.lane.b32.xlu1 %v7666_v5, %s7757_s8 }
0x4380   :  { %v6158_v50 = vpop.permute.xlu1 %6157 }
0x4381   :  { %v6160_v19 = vmul.f32 %v6158_v50, %v6155_v17 }
0x4383   :  { %v6162_v16 = vadd.f32 %v6161_v40, %v6160_v19 }
0x4385   :  { %6164 = vrot.lane.b32.xlu0 %v6162_v16, %s7757_s8 }
0x43a4   :  { %6430 = vadd.xlane.f32.xlu0 %v6429_v61 }
0x43f7   :  { %v6165_v6 = vpop.permute.xlu0 %6164 }
0x43f8   :  { %7507 = vmatmul.mubr.msk.f32.vlgmr.msra.gmra.mxu1 %vm611_vm6, %v6165_v6 }
0x442d   :  { %v6431_v9 = vpop.xlane.xlu0 %6430 }
0x442e   :  { %v6432_v4 = vsel %vm324_vm3, %v6431_v9, 0.0 }
0x442f   :  { %v6433_v12 = vrot.slane %v6432_v4, 4 }
0x4431   :  { %v6434_v42 = vadd.f32 %v6433_v12, %v6432_v4 }
0x4433   :  { %v6435_v28 = vrot.slane %v6434_v42, 2 }
0x4435   :  { %v6436_v21 = vadd.f32 %v6435_v28, %v6434_v42 }
0x4437   :  { %v6437_v56 = vrot.slane %v6436_v21, 1 }
0x4439   :  { %v6438_v62 = vadd.f32 %v6437_v56, %v6436_v21 }
0x443b   :  { %v6439_v33 = vmul.f32 0.0625, %v6438_v62 }
0x443d   :  { %6440 = vst.msk [vmem:[#allocation6] sm:$0x1] %vm6426_vm10, %v6439_v33 }
0x44b8   :  { %v6234_v37 = vpop.f32.mrf.mxu1 }
0x44b9   :  { %v6235_v36 = vadd.f32 %v8535_v52, %v6234_v37 }
0x44ba   :  { %v7508_v39 = vpop.f32.mrf.mxu1 }
0x44bb   :  { %v6238_v23 = vmax.f32 %v6235_v36, 0.0 }
0x44bd   :  { %7514 = vmatmul.mubr.msk.f32.vlgmr.msra.gmra.mxu0 %vm220_vm5, %v6238_v23 }
0x44be   :  { %7517 = vmatpush3.msra.mxu0 %v8493_v22  ;;  %7524 = vmatprep.mubr.msk.f32.mxu0 %vm7755_vm0, %v7754_v0 }
0x44bf   :  { %7518 = vmatprep.subr.mxu0 %v7754_v0 }
0x44c0   :  { %7519 = vmatpush3.msra.mxu0 %v8499_v25 }
0x44c1   :  { %7520 = vmatprep.subr.mxu0 %v7754_v0 }
0x44c2   :  { %7521 = vmatpush3.msra.mxu0 %v8505_v26 }
0x44c3   :  { %7522 = vmatprep.subr.mxu0 %v7754_v0 }
0x44c4   :  { %7523 = vmatpush3.msra.mxu0 %v8509_v63 }
0x44c5   :  { %7525 = vmatmul.mubr.msk.f32.vlgmr.msra.gmra.mxu0 %vm611_vm6, %v6165_v6 }
0x457d   :  { %v6308_v52 = vpop.f32.mrf.mxu0 }
0x457e   :  { %v6309_v29 = vadd.f32 %v8554_v1, %v6308_v52 }
0x457f   :  { %v7515_v38 = vpop.f32.mrf.mxu0 }
0x4580   :  { %v6393_v2 = vrot.slane %v6309_v29, 2 }
0x4582   :  { %v6395_v31 = vsub.f32 %v8561_v47, %v6393_v2 }
0x4585   :  { %v6378_v22 = vpop.f32.mrf.mxu0 }
0x4586   :  { %v6379_v41 = vadd.f32 %v8546_v34, %v6378_v22 }
0x4587   :  { %v7526_v43 = vpop.f32.mrf.mxu0 }
0x4588   :  { %v6383_v57 = vand.u32 2147483647, %v6379_v41  ;;  %v6382_v24 = vmax.f32 %v6379_v41, 0.0 }
0x458a   :  { %v6384_v10 = vsub.f32 0.0, %v6383_v57 }
0x458c   :  { %v6385_v45 = vmul.f32 1.442695, %v6384_v10 }
0x458e   :  { %7667 = vpow2.f32 %v6385_v45 }
0x459b   :  { %v7668_v25 = vpop.eup %7667 }
0x459c   :  { %v6387_v48 = vadd.f32 1.0, %v7668_v25 }
0x459e   :  { %7669 = vlog2.f32 %v6387_v48 }
0x45ab   :  { %v7670_v26 = vpop.eup %7669 }
0x45ac   :  { %v6389_v0 = vmul.f32 0.6931472, %v7670_v26 }
0x45ae   :  { %v6390_v13 = vadd.f32 %v6389_v0, %v6382_v24 }
0x45b0   :  { %v6391_v63 = vadd.f32 0.1, %v6390_v13 }
0x45b2   :  { %7671 = vrcp.f32 %v6391_v63 }
0x45b3   :  { %7673 = vlog2.f32 %v6391_v63 }
0x45bf   :  { %v7672_v14 = vpop.eup %7671 }
0x45c0   :  { %v7674_v34 = vpop.eup %7673  ;;  %v6398_v32 = vrot.slane %v7672_v14, 2 }
0x45c1   :  { %v6404_v58 = vmul.f32 0.6931472, %v7674_v34 }
0x45c2   :  { %v6400_v46 = vmul.f32 %v6398_v32, %v6395_v31 }
0x45c3   :  { %v6406_v59 = vrot.slane %v6404_v58, 2 }
0x45c4   :  { %v6401_v27 = vmul.f32 -0.5, %v6400_v46 }
0x45c6   :  { %v6402_v11 = vmul.f32 %v6401_v27, %v6400_v46 }
0x45c8   :  { %v6408_v51 = vsub.f32 %v6402_v11, %v6406_v59 }
0x45ca   :  { %v6580_v7 = vadd.f32 -0.9189385, %v6408_v51 }
0x45cc   :  { %v6411_v53 = vrot.slane %v6580_v7, 6 }
0x45ce   :  { %v6413_v54 = vadd.f32 %v6411_v53, %v8770_v49 }
0x45d0   :  { %v6415_v30 = vsel %vm6414_vm11, %v6413_v54, 0.0 }
0x45d1   :  { %6416 = vadd.xlane.f32.xlu1 %v6415_v30 }
0x45d2   :  { %7716 = shalt.err (!%p7713_p9)
}
0x45d3   :  { %6460 = dma.vmem_to_hbm [thread:$0]  %s6458_s18, 16, %s8842_s3, [#allocation7]  }
0x45d4   :  { %s7762_s22 = smov [#allocation5]  }
0x45d5   :  { %s6447_s23 = sshll.u32 %s7762_s22, 4  ;;  %s6448_s23 = int_to_ptr.vmem [resolvable:$true] %s6447_s23 }
0x45d6   :  { %s7725_s24 = scalar_lea.vmem %s6448_s23, 16  ;;  %s7729_s25 = scalar_lea.vmem %s6448_s23, 32 }
0x45d7   :  { %p7726_p10 = scmp.ne.s32.totalorder %s6448_s23, %s7725_s24  ;;  %p7730_p11 = scmp.lt.s32.totalorder %s6448_s23, %s6448_s23 }
0x45d8   :  { %p7731_p12 = scmp.lt.s32.totalorder %s7729_s25, %s7725_s24 }
0x45da   :  { %p7732_p13 = por %p7731_p12, %p7730_p11 }
0x45dc   :  { %p7733_p0 = pnand %p7732_p13, %p7726_p10 }
0x465a   :  { %v6417_v1 = vpop.xlane.xlu1 %6416 }
0x465b   :  { %v6418_v47 = vsel %vm324_vm3, %v6417_v1, 0.0 }
0x465c   :  { %v6419_v49 = vrot.slane %v6418_v47, 4 }
0x465e   :  { %v6420_v8 = vadd.f32 %v6419_v49, %v6418_v47 }
0x4660   :  { %v6421_v15 = vrot.slane %v6420_v8, 2 }
0x4662   :  { %v6422_v18 = vadd.f32 %v6421_v15, %v6420_v8 }
0x4664   :  { %v6423_v44 = vrot.slane %v6422_v18, 1 }
0x4666   :  { %v6424_v55 = vadd.f32 %v6423_v44, %v6422_v18 }
0x4668   :  { %v6425_v3 = vmul.f32 0.5, %v6424_v55 }
0x466a   :  { %6427 = vst.msk [vmem:[#allocation5] sm:$0x1] %vm6426_vm10, %v6425_v3 }
0x466b   :  { %7736 = shalt.err (!%p7733_p0)
}
0x466c   :  { %6450 = dma.vmem_to_hbm [thread:$0]  %s6448_s23, 16, %s8841_s2, [#allocation4]  }
0x466d   :  { %7747 = dma.done.wait [#allocation4], 16  }
0x466e   :  { %7748 = vsyncadd [#allocation4], 4294967280 }
0x466f   :  { %7749 = dma.done.wait [#allocation7], 16  }
0x4670   :  { %7750 = vsyncadd [#allocation7], 4294967280 }
0x4671   :  { %6467 = vsyncpa [#allocation3], 1 }
0x4672   :  { %6468 = vsyncpa [#allocation4], 1 }
0x4673   :  { %6469 = vsyncpa [#allocation7], 1 }

</bundles_post_ra>
